<compile_context>
chip_gen: v6e
topology: v6e:2x2x1
jax: 0.10.0
libtpu: 0.0.40
codegen_flags: <defaults>
</compile_context>

<pallas_src>
import functools

import jax
import jax.numpy as jnp
from jax.experimental import pallas as pl
from jax.experimental.pallas import tpu as pltpu

EPS = 1e-12


def bert_output_kernel(hs_ref, res_ref, w_ref, p_ref, o_ref, *, matmul_dtype):
    # dense: [tm, I] @ [I, H] -> [tm, H] on the MXU; operands cast to bf16
    # in-register (no extra HBM pass), f32 accumulation.
    x = jnp.dot(hs_ref[...].astype(matmul_dtype), w_ref[...],
                preferred_element_type=jnp.float32)

    params = p_ref[...]                       # (3, H) f32: [bias; gamma; beta]
    bias = params[0:1, :]
    gamma = params[1:2, :]
    beta = params[2:3, :]

    # bias + (dropout == identity) + residual, in f32
    x = x + bias + res_ref[...].astype(jnp.float32)

    # LayerNorm over last axis (eps=1e-12), two-pass variance (x is resident;
    # avoids E[x^2]-mean^2 cancellation).
    mean = jnp.mean(x, axis=-1, keepdims=True)
    centered = x - mean
    var = jnp.mean(centered * centered, axis=-1, keepdims=True)
    inv = jax.lax.rsqrt(var + EPS)            # EUP slot, effectively free
    y = centered * (inv * gamma) + beta
    o_ref[...] = y.astype(o_ref.dtype)


def _device_kind() -> str:
    try:
        return jax.devices()[0].device_kind.lower()
    except Exception:
        return ""


def _vmem_capacity_bytes() -> int:
    try:
        return int(pltpu.get_tpu_info().vmem_capacity_bytes)
    except Exception:
        return 128 * 1024 * 1024


def _default_vmem_limit() -> int:
    # Leave ~25% headroom for compiler-internal scratch; cap at 100 MiB.
    cap = _vmem_capacity_bytes()
    return min(100 * 1024 * 1024, (cap * 3) // 4)


def _default_tile_m(kind: str) -> int:
    # v6e: bandwidth-exposed, VMEM plentiful -> bigger row tiles.
    # v5e (MXU-bound) and v7x (64 MiB VMEM) -> 256.
    return 512 if "v6" in kind else 256


def _sublane_granularity(dtype) -> int:
    # f32 -> 8, bf16 -> 16, int8/fp8 -> 32 (sub-32-bit packs along sublanes).
    return max(8, 32 // jnp.dtype(dtype).itemsize)


def bert_output(hidden_states, input_tensor, weight, bias, gamma, beta, *,
                tile_m=None, matmul_dtype=jnp.bfloat16,
                vmem_limit_bytes=None, io_buffers=None):
    """hidden_states: [B,S,I], input_tensor: [B,S,H].
    weight: [I,H] (already transposed from PyTorch's [H,I]); bias/gamma/beta: [H].
    Matmul operands are cast to `matmul_dtype` (bf16) inside the kernel with f32
    accumulation; LayerNorm math in f32; output in the model (input_tensor) dtype."""
    B, S, I = hidden_states.shape
    H = input_tensor.shape[-1]
    M = B * S

    kind = _device_kind()
    if tile_m is None:
        tile_m = _default_tile_m(kind)
    if vmem_limit_bytes is None:
        vmem_limit_bytes = _default_vmem_limit()
    if io_buffers is None:
        io_buffers = 3 if "v6" in kind else 2

    # Row tile: clamp to M, round to the sublane granularity of the activation
    # and residual dtypes so blocks stay lane/sublane-dense.
    gran = max(_sublane_granularity(hidden_states.dtype),
               _sublane_granularity(input_tensor.dtype))
    tm = min(tile_m, M)
    tm = max(gran, (tm // gran) * gran)

    # Native-dtype views; reshape of contiguous [B,S,D] -> [M,D] is free.
    hs2 = hidden_states.reshape(M, I)
    res2 = input_tensor.reshape(M, H)
    w = weight.astype(matmul_dtype)                               # resident weight (one-time cast)
    params = jnp.stack([bias, gamma, beta]).astype(jnp.float32)   # (3, H), one DMA

    # Ragged tail handled by the grid: out-of-bounds rows of the last block are
    # never written back (output shape is exactly (M, H)), so no pad / slice.
    grid = (pl.cdiv(M, tm),)

    out_dtype = input_tensor.dtype
    itemsize = lambda a: jnp.dtype(a.dtype).itemsize
    cost = pl.CostEstimate(
        flops=2 * M * I * H,
        transcendentals=0,
        bytes_accessed=(hs2.size * itemsize(hs2)
                        + res2.size * itemsize(res2)
                        + w.size * itemsize(w)
                        + params.size * 4
                        + M * H * jnp.dtype(out_dtype).itemsize),
    )

    kernel = functools.partial(bert_output_kernel, matmul_dtype=matmul_dtype)

    def build_and_call(custom_pipeline: bool):
        def spec(shape, imap, bufs):
            if custom_pipeline and bufs is not None:
                return pl.BlockSpec(shape, imap, pipeline_mode=pl.Buffered(bufs))
            return pl.BlockSpec(shape, imap)

        return pl.pallas_call(
            kernel,
            out_shape=jax.ShapeDtypeStruct((M, H), out_dtype),
            grid_spec=pltpu.PrefetchScalarGridSpec(
                num_scalar_prefetch=0,
                grid=grid,
                in_specs=[
                    # streamed activation rows (native dtype; bf16 cast in-kernel)
                    spec((tm, I), lambda i: (i, 0), io_buffers),
                    # streamed residual rows (native / model dtype)
                    spec((tm, H), lambda i: (i, 0), io_buffers),
                    # resident dense weight (bf16) -- never re-fetched: single buffer
                    spec((I, H), lambda i: (0, 0), 1),
                    # resident packed bias/gamma/beta (f32) -- single buffer
                    spec((3, H), lambda i: (0, 0), 1),
                ],
                # H is 128-aligned for real BERT (768/1024) -> lane-dense stores.
                out_specs=spec((tm, H), lambda i: (i, 0), io_buffers),
            ),
            compiler_params=pltpu.CompilerParams(
                dimension_semantics=("parallel",),      # megacore / 2-TC sharding
                vmem_limit_bytes=vmem_limit_bytes,
            ),
            cost_estimate=cost,
        )(hs2, res2, w, params)

    try:
        out = build_and_call(True)
    except Exception:
        # Fallback: default (double) buffering everywhere if this JAX build
        # rejects the custom pipeline_mode configuration.
        out = build_and_call(False)

    return out.reshape(B, S, H)


def bert_output_ref(hidden_states, input_tensor, weight, bias, gamma, beta,
                    matmul_dtype=jnp.bfloat16):
    """Reference with the same matmul operand dtype (f32 accumulation)."""
    x = jnp.einsum(
        "bsi,ih->bsh",
        hidden_states.astype(matmul_dtype),
        weight.astype(matmul_dtype),
        preferred_element_type=jnp.float32,
    )
    x = x + bias + input_tensor.astype(jnp.float32)
    mean = jnp.mean(x, axis=-1, keepdims=True)
    var = jnp.mean((x - mean) ** 2, axis=-1, keepdims=True)
    xn = (x - mean) / jnp.sqrt(var + EPS)
    return (xn * gamma + beta).astype(input_tensor.dtype)


if __name__ == "__main__":
    # Small BERT-like shapes: batch=2, seq=256, hidden=128, intermediate=4*hidden.
    # (H is a multiple of 128 -> lane-dense output stores; M = 512 rows.)
    B, S, H, I = 2, 256, 128, 512
    key = jax.random.PRNGKey(0)
    k1, k2, k3, k4 = jax.random.split(key, 4)

    hidden_states = jax.random.normal(k1, (B, S, I), dtype=jnp.float32)
    input_tensor = jax.random.normal(k2, (B, S, H), dtype=jnp.float32)

    # Synthetic deterministic parameters: Linear weight [I, H] (transposed from
    # PyTorch's [H, I]), bias [H]; LayerNorm gamma/beta.
    weight = jax.random.normal(k3, (I, H), dtype=jnp.float32) * (1.0 / jnp.sqrt(I))
    bias = jax.random.normal(k4, (H,), dtype=jnp.float32) * 0.02
    gamma = jnp.ones((H,), dtype=jnp.float32)
    beta = jnp.zeros((H,), dtype=jnp.float32)

    out = bert_output(hidden_states, input_tensor, weight, bias, gamma, beta)
    out = jax.block_until_ready(out)

    ref = bert_output_ref(hidden_states, input_tensor, weight, bias, gamma, beta)
    assert out.shape == (B, S, H)
    assert jnp.allclose(out, ref, atol=5e-3, rtol=5e-3), "mismatch vs reference"

    print("KERNEL_OK")
</pallas_src>

<mosaic_0001>
module attributes {stable_mosaic.version = 11 : i64} {
  func.func @bert_output_kernel(%arg0: i32, %arg1: memref<256x512xf32, #tpu.memory_space<vmem>>, %arg2: memref<256x128xf32, #tpu.memory_space<vmem>>, %arg3: memref<512x128xbf16, #tpu.memory_space<vmem>>, %arg4: memref<3x128xf32, #tpu.memory_space<vmem>>, %arg5: memref<256x128xf32, #tpu.memory_space<vmem>>) attributes {dimension_semantics = [#tpu.dimension_semantics<parallel>], iteration_bounds = array<i64: 2>, scalar_prefetch = 0 : i64, scratch_operands = 0 : i64, tpu.core_type = #tpu.core_type<tc>, window_params = [{pipeline_mode = #tpu.pipeline_mode<double_buffered>, transform_indices = @transform_0, window_bounds = array<i64: 256, 512>}, {pipeline_mode = #tpu.pipeline_mode<double_buffered>, transform_indices = @transform_1, window_bounds = array<i64: 256, 128>}, {pipeline_mode = #tpu.pipeline_mode<synchronous>, transform_indices = @transform_2, window_bounds = array<i64: 512, 128>}, {pipeline_mode = #tpu.pipeline_mode<synchronous>, transform_indices = @transform_3, window_bounds = array<i64: 3, 128>}, {pipeline_mode = #tpu.pipeline_mode<double_buffered>, transform_indices = @transform_4, window_bounds = array<i64: 256, 128>}]} {
    %c0 = arith.constant 0 : index
    %c0_0 = arith.constant 0 : index
    %0 = vector.load %arg1[%c0, %c0_0] : memref<256x512xf32, #tpu.memory_space<vmem>>, vector<256x512xf32>
    %1 = arith.truncf %0 : vector<256x512xf32> to vector<256x512xbf16>
    %c0_1 = arith.constant 0 : index
    %c0_2 = arith.constant 0 : index
    %2 = vector.load %arg3[%c0_1, %c0_2] : memref<512x128xbf16, #tpu.memory_space<vmem>>, vector<512x128xbf16>
    %cst = arith.constant dense<0.000000e+00> : vector<256x128xf32>
    %3 = tpu.matmul %1, %2, %cst {dimension_numbers = #tpu.dot_dimension_numbers<[1], [0], [0], [1], [0, 0, 1, 1], [], []>} : vector<256x512xbf16>, vector<512x128xbf16>, vector<256x128xf32> -> vector<256x128xf32>
    %c0_3 = arith.constant 0 : index
    %c0_4 = arith.constant 0 : index
    %4 = vector.load %arg4[%c0_3, %c0_4] : memref<3x128xf32, #tpu.memory_space<vmem>>, vector<3x128xf32>
    %5 = vector.extract_strided_slice %4 {offsets = [0, 0], sizes = [1, 128], strides = [1, 1]} : vector<3x128xf32> to vector<1x128xf32>
    %6 = vector.extract_strided_slice %4 {offsets = [1, 0], sizes = [1, 128], strides = [1, 1]} : vector<3x128xf32> to vector<1x128xf32>
    %7 = vector.extract_strided_slice %4 {offsets = [2, 0], sizes = [1, 128], strides = [1, 1]} : vector<3x128xf32> to vector<1x128xf32>
    %8 = vector.broadcast %5 : vector<1x128xf32> to vector<256x128xf32>
    %9 = arith.addf %3, %8 : vector<256x128xf32>
    %c0_5 = arith.constant 0 : index
    %c0_6 = arith.constant 0 : index
    %10 = vector.load %arg2[%c0_5, %c0_6] : memref<256x128xf32, #tpu.memory_space<vmem>>, vector<256x128xf32>
    %11 = arith.addf %9, %10 : vector<256x128xf32>
    %cst_7 = arith.constant dense<0.000000e+00> : vector<256xf32>
    %12 = vector.multi_reduction <add>, %11, %cst_7 [1] : vector<256x128xf32> to vector<256xf32>
    %13 = vector.shape_cast %12 : vector<256xf32> to vector<256x1xf32>
    %cst_8 = arith.constant 1.280000e+02 : f32
    %14 = vector.broadcast %cst_8 : f32 to vector<256x1xf32>
    %15 = arith.divf %13, %14 : vector<256x1xf32>
    %16 = vector.broadcast %15 : vector<256x1xf32> to vector<256x128xf32>
    %17 = arith.subf %11, %16 : vector<256x128xf32>
    %18 = arith.mulf %17, %17 : vector<256x128xf32>
    %cst_9 = arith.constant dense<0.000000e+00> : vector<256xf32>
    %19 = vector.multi_reduction <add>, %18, %cst_9 [1] : vector<256x128xf32> to vector<256xf32>
    %20 = vector.shape_cast %19 : vector<256xf32> to vector<256x1xf32>
    %cst_10 = arith.constant 1.280000e+02 : f32
    %21 = vector.broadcast %cst_10 : f32 to vector<256x1xf32>
    %22 = arith.divf %20, %21 : vector<256x1xf32>
    %cst_11 = arith.constant 9.99999996E-13 : f32
    %23 = vector.broadcast %cst_11 : f32 to vector<256x1xf32>
    %24 = arith.addf %22, %23 : vector<256x1xf32>
    %25 = math.rsqrt %24 : vector<256x1xf32>
    %26 = vector.broadcast %25 : vector<256x1xf32> to vector<256x128xf32>
    %27 = vector.broadcast %6 : vector<1x128xf32> to vector<256x128xf32>
    %28 = arith.mulf %26, %27 : vector<256x128xf32>
    %29 = arith.mulf %17, %28 : vector<256x128xf32>
    %30 = vector.broadcast %7 : vector<1x128xf32> to vector<256x128xf32>
    %31 = arith.addf %29, %30 : vector<256x128xf32>
    %c0_12 = arith.constant 0 : index
    %c0_13 = arith.constant 0 : index
    %32 = vector.load %arg5[%c0_12, %c0_13] : memref<256x128xf32, #tpu.memory_space<vmem>>, vector<256x128xf32>
    tpu.vector_store %arg5[%c0_12, %c0_13], %31 {strides = array<i32>} : memref<256x128xf32, #tpu.memory_space<vmem>>, vector<256x128xf32>,
    return
  }
  func.func @transform_0(%arg0: i32) -> (i32, i32) {
    %c0_i32 = arith.constant 0 : i32
    %c0_i32_0 = arith.constant 0 : i32
    return %arg0, %c0_i32 : i32, i32
  }
  func.func @transform_1(%arg0: i32) -> (i32, i32) {
    %c0_i32 = arith.constant 0 : i32
    %c0_i32_0 = arith.constant 0 : i32
    return %arg0, %c0_i32 : i32, i32
  }
  func.func @transform_2(%arg0: i32) -> (i32, i32) {
    %c0_i32 = arith.constant 0 : i32
    %c0_i32_0 = arith.constant 0 : i32
    %c0_i32_1 = arith.constant 0 : i32
    return %c0_i32, %c0_i32_0 : i32, i32
  }
  func.func @transform_3(%arg0: i32) -> (i32, i32) {
    %c0_i32 = arith.constant 0 : i32
    %c0_i32_0 = arith.constant 0 : i32
    %c0_i32_1 = arith.constant 0 : i32
    return %c0_i32, %c0_i32_0 : i32, i32
  }
  func.func @transform_4(%arg0: i32) -> (i32, i32) {
    %c0_i32 = arith.constant 0 : i32
    %c0_i32_0 = arith.constant 0 : i32
    return %arg0, %c0_i32 : i32, i32
  }
}

module attributes {stable_mosaic.version = 11 : i64} {
  func.func @bert_output_kernel(%arg0: i32, %arg1: memref<256x512xf32, #tpu.memory_space<vmem>>, %arg2: memref<256x128xf32, #tpu.memory_space<vmem>>, %arg3: memref<512x128xbf16, #tpu.memory_space<vmem>>, %arg4: memref<3x128xf32, #tpu.memory_space<vmem>>, %arg5: memref<256x128xf32, #tpu.memory_space<vmem>>) attributes {dimension_semantics = [#tpu.dimension_semantics<parallel>], iteration_bounds = array<i64: 2>, scalar_prefetch = 0 : i64, scratch_operands = 0 : i64, tpu.core_type = #tpu.core_type<tc>, window_params = [{transform_indices = @transform_0, window_bounds = array<i64: 256, 512>}, {transform_indices = @transform_1, window_bounds = array<i64: 256, 128>}, {pipeline_mode = #tpu.pipeline_mode<synchronous>, transform_indices = @transform_2, window_bounds = array<i64: 512, 128>}, {pipeline_mode = #tpu.pipeline_mode<synchronous>, transform_indices = @transform_3, window_bounds = array<i64: 3, 128>}, {transform_indices = @transform_4, window_bounds = array<i64: 256, 128>}]} {
    %c0 = arith.constant 0 : index
    %c0_0 = arith.constant 0 : index
    %0 = vector.load %arg1[%c0, %c0_0] : memref<256x512xf32, #tpu.memory_space<vmem>>, vector<256x512xf32>
    %1 = arith.truncf %0 : vector<256x512xf32> to vector<256x512xbf16>
    %c0_1 = arith.constant 0 : index
    %c0_2 = arith.constant 0 : index
    %2 = vector.load %arg3[%c0_1, %c0_2] : memref<512x128xbf16, #tpu.memory_space<vmem>>, vector<512x128xbf16>
    %cst = arith.constant dense<0.000000e+00> : vector<256x128xf32>
    %3 = tpu.matmul %1, %2, %cst {dimension_numbers = #tpu.dot_dimension_numbers<[1], [0], [0], [1], [0, 0, 1, 1], [], []>} : vector<256x512xbf16>, vector<512x128xbf16>, vector<256x128xf32> -> vector<256x128xf32>
    %c0_3 = arith.constant 0 : index
    %c0_4 = arith.constant 0 : index
    %4 = vector.load %arg4[%c0_3, %c0_4] : memref<3x128xf32, #tpu.memory_space<vmem>>, vector<3x128xf32>
    %5 = vector.extract_strided_slice %4 {offsets = [0, 0], sizes = [1, 128], strides = [1, 1]} : vector<3x128xf32> to vector<1x128xf32>
    %6 = vector.extract_strided_slice %4 {offsets = [1, 0], sizes = [1, 128], strides = [1, 1]} : vector<3x128xf32> to vector<1x128xf32>
    %7 = vector.extract_strided_slice %4 {offsets = [2, 0], sizes = [1, 128], strides = [1, 1]} : vector<3x128xf32> to vector<1x128xf32>
    %8 = vector.broadcast %5 : vector<1x128xf32> to vector<256x128xf32>
    %9 = arith.addf %3, %8 : vector<256x128xf32>
    %c0_5 = arith.constant 0 : index
    %c0_6 = arith.constant 0 : index
    %10 = vector.load %arg2[%c0_5, %c0_6] : memref<256x128xf32, #tpu.memory_space<vmem>>, vector<256x128xf32>
    %11 = arith.addf %9, %10 : vector<256x128xf32>
    %cst_7 = arith.constant dense<0.000000e+00> : vector<256xf32>
    %12 = vector.multi_reduction <add>, %11, %cst_7 [1] : vector<256x128xf32> to vector<256xf32>
    %13 = vector.shape_cast %12 : vector<256xf32> to vector<256x1xf32>
    %cst_8 = arith.constant 1.280000e+02 : f32
    %14 = vector.broadcast %cst_8 : f32 to vector<256x1xf32>
    %15 = arith.divf %13, %14 : vector<256x1xf32>
    %16 = vector.broadcast %15 : vector<256x1xf32> to vector<256x128xf32>
    %17 = arith.subf %11, %16 : vector<256x128xf32>
    %18 = arith.mulf %17, %17 : vector<256x128xf32>
    %cst_9 = arith.constant dense<0.000000e+00> : vector<256xf32>
    %19 = vector.multi_reduction <add>, %18, %cst_9 [1] : vector<256x128xf32> to vector<256xf32>
    %20 = vector.shape_cast %19 : vector<256xf32> to vector<256x1xf32>
    %cst_10 = arith.constant 1.280000e+02 : f32
    %21 = vector.broadcast %cst_10 : f32 to vector<256x1xf32>
    %22 = arith.divf %20, %21 : vector<256x1xf32>
    %cst_11 = arith.constant 9.99999996E-13 : f32
    %23 = vector.broadcast %cst_11 : f32 to vector<256x1xf32>
    %24 = arith.addf %22, %23 : vector<256x1xf32>
    %25 = math.rsqrt %24 : vector<256x1xf32>
    %26 = vector.broadcast %25 : vector<256x1xf32> to vector<256x128xf32>
    %27 = vector.broadcast %6 : vector<1x128xf32> to vector<256x128xf32>
    %28 = arith.mulf %26, %27 : vector<256x128xf32>
    %29 = arith.mulf %17, %28 : vector<256x128xf32>
    %30 = vector.broadcast %7 : vector<1x128xf32> to vector<256x128xf32>
    %31 = arith.addf %29, %30 : vector<256x128xf32>
    %c0_12 = arith.constant 0 : index
    %c0_13 = arith.constant 0 : index
    %32 = vector.load %arg5[%c0_12, %c0_13] : memref<256x128xf32, #tpu.memory_space<vmem>>, vector<256x128xf32>
    tpu.vector_store %arg5[%c0_12, %c0_13], %31 {strides = array<i32>} : memref<256x128xf32, #tpu.memory_space<vmem>>, vector<256x128xf32>,
    return
  }
  func.func @transform_0(%arg0: i32) -> (i32, i32) {
    %c0_i32 = arith.constant 0 : i32
    %c0_i32_0 = arith.constant 0 : i32
    return %arg0, %c0_i32 : i32, i32
  }
  func.func @transform_1(%arg0: i32) -> (i32, i32) {
    %c0_i32 = arith.constant 0 : i32
    %c0_i32_0 = arith.constant 0 : i32
    return %arg0, %c0_i32 : i32, i32
  }
  func.func @transform_2(%arg0: i32) -> (i32, i32) {
    %c0_i32 = arith.constant 0 : i32
    %c0_i32_0 = arith.constant 0 : i32
    %c0_i32_1 = arith.constant 0 : i32
    return %c0_i32, %c0_i32_0 : i32, i32
  }
  func.func @transform_3(%arg0: i32) -> (i32, i32) {
    %c0_i32 = arith.constant 0 : i32
    %c0_i32_0 = arith.constant 0 : i32
    %c0_i32_1 = arith.constant 0 : i32
    return %c0_i32, %c0_i32_0 : i32, i32
  }
  func.func @transform_4(%arg0: i32) -> (i32, i32) {
    %c0_i32 = arith.constant 0 : i32
    %c0_i32_0 = arith.constant 0 : i32
    return %arg0, %c0_i32 : i32, i32
  }
}

</mosaic_0001>

<bundles_post_ra>
// kernel: tpu_custom_call.1
= control target key start
LH: loop header
LB: loop body
LE: loop exit
PB: predicated region body
PF: predicated region fallthrough
CT: control target
= control target key end

     0   :  { %s3163_s0 = inlined_call_operand.hbm [shape: f32[512,512], index: 0, kind: input, shape index: {}]   ;;  %s3164_s1 = inlined_call_operand.hbm [shape: f32[512,128], index: 1, kind: input, shape index: {}]   ;;  %s3165_s2 = inlined_call_operand.hbm [shape: bf16[512,128], index: 2, kind: input, shape index: {}]   ;;  %s3166_s3 = inlined_call_operand.vmem [shape: f32[3,128], index: 3, kind: input, shape index: {}]   ;;  %s3167_s4 = inlined_call_operand.hbm [shape: f32[512,128], index: 4, kind: output, shape index: {}]  }
   0x1   :  { %3171 = sst [smem:[#allocation13_spill]] %s3163_s0 }
   0x2   :  { %3172 = sst [smem:[#allocation14_spill]] %s3165_s2 }
   0x3   :  { %9 = vsyncpa [#allocation3], 0 }
   0x4   :  { %11 = vsyncpa [#allocation3 + $0x1], 0 }
   0x5   :  { %12 = vsyncpa [#allocation6], 0 }
   0x6   :  { %14 = vsyncpa [#allocation6 + $0x1], 0 }
   0x7   :  { %15 = vsyncpa [#allocation4], 0 }
   0x8   :  { %17 = vsyncpa [#allocation4 + $0x1], 0  ;;  %s2330_s15 = smov 0   ;;  %s2332_s16 = smov 0  }
   0x9   :  { %s2334_s17 = smov 0   ;;  %s2336_s18 = smov 0  }
   0xa LB: > { %s2351_s19 = sadd.s32 4294967295, %s2291_s18   ;;  %s1690_s20 = sadd.s32 4294967294, %s2291_s18   ;;  %s2291_s18 = sphi %s2336_s18, %s3191_s18   ;;  %s2287_s17 = sphi %s2334_s17, %s3190_s17   ;;  %s2283_s16 = sphi %s2332_s16, %s3189_s16   ;;  %s2279_s15 = sphi %s2330_s15, %s3188_s15  }
   0xb   : > { %p43_p0 = scmp.ne.s32.totalorder %s2283_s16, %s2279_s15  ;;  %p3168_p1 = scmp.eq.s32.totalorder %s2351_s19, 0 }
   0xc   : > { %p141_p3 = scmp.eq.s32.totalorder %s1690_s20, 1  ;;  %p1691_p5 = scmp.ge.s32.totalorder %s2291_s18, 1 }
   0xd   : > { %p2360_p4 = por %p3168_p1, %p43_p0  ;;  %p148_p7 = scmp.lt.s32.totalorder %s2291_s18, 3 }
   0xe   : > { %p2365_p6 = por %p141_p3, %p43_p0  ;;  %s2293_s24 = smov [#allocation7]  }
   0xf   : > { %s3173_s21 = scalar_select %p2360_p4, 1, 0 }
  0x10   : > { %s3174_s22 = scalar_select %p2365_p6, 1, 0 }
  0x11   : > { %p2370_p8 = pnand %p1691_p5, %p148_p7  ;;  %s160_s25 = sshll.u32 %s2293_s24, 4  ;;  %s161_s25 = int_to_ptr.vmem [resolvable:$true] %s160_s25 }
  0x12   : > { %s2384_s27 = sadd.s32 1, %s2291_s18   ;;  %s30_s28 = sadd.s32 1, %s2287_s17 }
  0x13   : > { %p1981_p9 = pneg %p2370_p8  ;;  %s27_s29 = ssub.s32 %s2291_s18, %s2384_s27 }
  0x14   : > { %s2148_s30 = scalar_lea.vmem %s161_s25, 4096  ;;  %p2156_p5 = scmp.lt.s32.totalorder %s161_s25, %s161_s25 }
  0x15   : > { %p2379_p11 = pnand %p1981_p9, %p3168_p1  ;;  %p2149_p13 = scmp.ne.s32.totalorder %s161_s25, %s2148_s30 }
  0x16   : > { %p2157_p7 = scmp.lt.s32.totalorder %s2148_s30, %s2148_s30 }
  0x17   : > { %p2139_p12 = pneg %p2379_p11 }
  0x18   : > { %p2158_p10 = por %p2157_p7, %p2156_p5 }
  0x19   : > { %p2151_p0 = pnand %p2149_p13, %p2139_p12 }
  0x1b   : > { %p2152_p3 = pneg %p2151_p0 }
  0x1d   : > { %p2159_p2 = pnand %p2158_p10, %p2152_p3 }
  0x1f   : > { %2162 = shalt.err (!%p2159_p2)
}
  0x20   : > { %s2294_s5 = smov 64   ;;  %s2295_s6 = smov 4  }
  0x21   : > { %s3177_s2 = sld [smem:[#allocation14_spill]]  ;;  %p28_p9 = scmp.eq.s32.totalorder %s27_s29, 0 }
  0x22   : > { %p37_p12 = scmp.ne.s32.totalorder %s2287_s17, %s2283_s16  ;;  %p38_p10 = scmp.eq.s32.totalorder %s2291_s18, 0 }
  0x23   : > { %p1997_p2 = scmp.lt.s32.totalorder %s2291_s18, 2  ;;  %p3178_p0 = scmp.eq.s32.totalorder %s2351_s19, 1 }
  0x24   : > { %s2401_s9 = scalar_select %p28_p9, %s2287_s17, %s30_s28  }
  0x25   : > { %p39_p13 = por %p38_p10, %p37_p12  ;;  %p2405_p3 = por %p3178_p0, %p37_p12 }
  0x26   : > { %s2410_s11 = sand.u32 1, %s2287_s17   ;;  %s1744_s12 = sshll.u32 %s2291_s18, 14 }
  0x27   : > { %1984 = dma.hbm_to_vmem [thread:$0]  (!%p2379_p11), %s3177_s2, 4096, %s161_s25, [#allocation6], %s2294_s5, %s2294_s5, %s2295_s6  }
  0x28   : > { %s3179_s10 = scalar_select %p2405_p3, 1, 0 }
  0x29   : > { %s1694_s13 = sshll.u32 %s2410_s11, 10  ;;  %s3180_s0 = sld [smem:[#allocation13_spill]] }
  0x2a   : > { %s181_s25 = scalar_lea.vmem [#allocation2], %s1694_s13  ;;  %p2419_p11 = pnand %p1997_p2, %p39_p13 }
  0x2b   : > { %s189_s26 = sshll.u32 %s181_s25, 4  ;;  %s178_s29 = scalar_lea.sflag [#allocation3], %s2410_s11  ;;  %s2423_s26 = int_to_ptr.vmem [resolvable:$true] %s189_s26 }
  0x2c   : > { %p2165_p7 = pneg %p2419_p11 }
  0x2f   : > { %s2417_s24 = scalar_lea.hbm %s3180_s0, %s1744_s12  ;;  %s2168_s7 = scalar_lea.hbm %s3180_s0, 32768 }
  0x30   : > { %s2163_s30 = scalar_lea.hbm %s2417_s24, 16384  ;;  %p2169_p10 = scmp.lt.s32.totalorder %s2417_s24, %s3180_s0 }
  0x31   : > { %p2164_p5 = scmp.ne.s32.totalorder %s2417_s24, %s2163_s30  ;;  %p2170_p2 = scmp.lt.s32.totalorder %s2168_s7, %s2163_s30 }
  0x33   : > { %p2166_p9 = pnand %p2165_p7, %p2164_p5  ;;  %p2171_p13 = por %p2170_p2, %p2169_p10 }
  0x35   : > { %p2167_p12 = pneg %p2166_p9 }
  0x37   : > { %p2172_p0 = pnand %p2171_p13, %p2167_p12 }
  0x39   : > { %2175 = shalt.err (!%p2172_p0)
}
  0x3a   : > { %s2176_s13 = scalar_lea.vmem %s2423_s26, 16384  ;;  %s2296_s14 = smov [#allocation2]  }
  0x3b   : > { %p2177_p1 = scmp.ne.s32.totalorder %s2423_s26, %s2176_s13  ;;  %s2181_s20 = sshll.u32 %s2296_s14, 4  ;;  %s2182_s20 = int_to_ptr.vmem [resolvable:$false] %s2181_s20 }
  0x3c   : > { %s2183_s25 = scalar_lea.vmem %s2182_s20, 32768  ;;  %p2184_p6 = scmp.lt.s32.totalorder %s2423_s26, %s2182_s20 }
  0x3d   : > { %p2179_p5 = pnand %p2177_p1, %p2165_p7  ;;  %p2185_p3 = scmp.lt.s32.totalorder %s2183_s25, %s2176_s13 }
  0x3f   : > { %p2180_p9 = pneg %p2179_p5  ;;  %p2186_p4 = por %p2185_p3, %p2184_p6 }
  0x41   : > { %p2187_p10 = pnand %p2186_p4, %p2180_p9 }
  0x43   : > { %2190 = shalt.err (!%p2187_p10)
}
  0x44   : > { %s2297_s30 = smov 512   ;;  %s2298_s5 = smov 32  }
  0x45   : > { %1988 = dma.hbm_to_vmem [thread:$0]  (!%p2419_p11), %s2417_s24, 16384, %s2423_s26, %s178_s29, %s2297_s30, %s2297_s30, %s2298_s5  }
  0x46   : > { %s199_s6 = sand.u32 1, %s2291_s18   ;;  %s1698_s7 = sshll.u32 %s2410_s11, 8 }
  0x47   : > { %s1745_s8 = sshll.u32 %s2291_s18, 12  ;;  %s203_s12 = scalar_lea.vmem [#allocation5], %s1698_s7 }
  0x48   : > { %s210_s13 = sshll.u32 %s203_s12, 4  ;;  %s2458_s25 = scalar_lea.hbm %s3164_s1, %s1745_s8  ;;  %s2460_s13 = int_to_ptr.vmem [resolvable:$true] %s210_s13 }
  0x49   : > { %s2462_s0 = scalar_lea.sflag [#allocation6], %s199_s6  ;;  %s2191_s2 = scalar_lea.hbm %s2458_s25, 4096 }
  0x4a   : > { %p2192_p1 = scmp.ne.s32.totalorder %s2458_s25, %s2191_s2  ;;  %s2196_s26 = scalar_lea.hbm %s3164_s1, 8192 }
  0x4b   : > { %p2197_p3 = scmp.lt.s32.totalorder %s2458_s25, %s3164_s1  ;;  %p2198_p12 = scmp.lt.s32.totalorder %s2196_s26, %s2191_s2 }
  0x4c   : > { %p2194_p4 = pnand %p2192_p1, %p2165_p7 }
  0x4d   : > { %p2199_p2 = por %p2198_p12, %p2197_p3 }
  0x4e   : > { %p2195_p6 = pneg %p2194_p4 }
  0x50   : > { %p2200_p13 = pnand %p2199_p2, %p2195_p6 }
  0x52   : > { %2203 = shalt.err (!%p2200_p13)
}
  0x53   : > { %s2204_s5 = scalar_lea.vmem %s2460_s13, 4096  ;;  %s2299_s6 = smov [#allocation5]  }
  0x54   : > { %p2205_p0 = scmp.ne.s32.totalorder %s2460_s13, %s2204_s5  ;;  %s2209_s7 = sshll.u32 %s2299_s6, 4  ;;  %s2210_s7 = int_to_ptr.vmem [resolvable:$false] %s2209_s7 }
  0x55   : > { %s2211_s8 = scalar_lea.vmem %s2210_s7, 8192  ;;  %p2212_p10 = scmp.lt.s32.totalorder %s2460_s13, %s2210_s7 }
  0x56   : > { %p2207_p5 = pnand %p2205_p0, %p2165_p7  ;;  %p2213_p1 = scmp.lt.s32.totalorder %s2211_s8, %s2204_s5 }
  0x58   : > { %p2208_p9 = pneg %p2207_p5  ;;  %p2214_p4 = por %p2213_p1, %p2212_p10 }
  0x5a   : > { %p2215_p3 = pnand %p2214_p4, %p2208_p9 }
  0x5c   : > { %2218 = shalt.err (!%p2215_p3)
}
  0x5d   : > { %s2300_s2 = smov 128   ;;  %s2301_s12 = smov 8  }
  0x5e   : > { %1991 = dma.hbm_to_vmem [thread:$0]  (!%p2419_p11), %s2458_s25, 4096, %s2460_s13, %s2462_s0, %s2300_s2, %s2300_s2, %s2301_s12  }
  0x5f   : > { %222 = sbr.rel (%p2370_p8) target bundleno = 788 (0x314), region = 36  ;;  %s2490_s14 = sand.u32 (!%p2370_p8), 1, %s2283_s16  }
  0x60   : > { %s1702_s20 = sshll.u32 (!%p2370_p8), %s2490_s14, 10  ;;  %s225_s11 = scalar_lea.sflag (!%p2370_p8), [#allocation3], %s2490_s14 }
  0x61   : > { %s2494_s24 = scalar_lea.vmem (!%p2370_p8), [#allocation2], %s1702_s20  ;;  %p3182_p7 = scmp.ne.s32.totalorder (!%p2370_p8), %s3173_s21, 0 }
  0x64   : > { %2262 = dma.done.wait (%p3182_p7), %s225_s11, 16384  }
  0x65   : > { %2264 = vsyncadd (%p3182_p7), %s225_s11, 4294950912  ;;  %s233_s0 = sand.u32 1, %s2351_s19   ;;  %s1703_s23 = sshll.u32 %s2490_s14, 8 }
  0x66   : > { %s234_s28 = scalar_lea.sflag [#allocation6], %s233_s0  ;;  %s2504_s13 = scalar_lea.vmem [#allocation5], %s1703_s23 }
  0x67   : > { %2266 = dma.done.wait (%p3182_p7), %s234_s28, 4096  }
  0x68   : > { %2268 = vsyncadd (%p3182_p7), %s234_s28, 4294963200  ;;  %p3183_p8 = scmp.eq.s32.totalorder %s2351_s19, 0 }
  0x6a   : > { %2270 = dma.done.wait (%p3183_p8), [#allocation6], 4096   ;;  %p3184_p11 = pmov %p3183_p8 }
  0x6b   : > { %v2041_v0 = vld [vmem:[#allocation7 + $0x78] sm:$0xff]   ;;  %v2045_v4 = vld [vmem:[#allocation7 + $0x70] sm:$0xff]   ;;  %v2049_v8 = vld [vmem:[#allocation7 + $0x68] sm:$0xff]   ;;  %s2987_s26 = scalar_lea.vmem [#allocation8], %s1703_s23  ;;  %s1746_s29 = sshll.u32 %s2351_s19, 12 }
  0x6c   : > { %2272 = vsyncadd (%p3184_p11), [#allocation6], 4294963200  ;;  %v2042_v1 = vld [vmem:[#allocation7 + $0xf8] sm:$0xff]   ;;  %1747 = vmatprep.subr.bf16.mxu0 %v2041_v0  ;;  %v2046_v5 = vld [vmem:[#allocation7 + $0xf0] sm:$0xff]   ;;  %s1585_s30 = sshll.u32 %s2987_s26, 4  ;;  %s3116_s7 = scalar_lea.hbm %s3167_s4, %s1746_s29  ;;  %s3118_s30 = int_to_ptr.vmem [resolvable:$true] %s1585_s30 }
  0x6d   : > { %v2043_v2 = vld [vmem:[#allocation7 + $0x38] sm:$0xff]   ;;  %1859 = vmatprep.subr.bf16.mxu1 %v2042_v1  ;;  %v2047_v6 = vld [vmem:[#allocation7 + $0x30] sm:$0xff]   ;;  %v2050_v9 = vld [vmem:[#allocation7 + $0xe8] sm:$0xff]   ;;  %s1572_s8 = scalar_lea.sflag [#allocation4], %s2490_s14  ;;  %s2219_s2 = scalar_lea.vmem %s3118_s30, 4096 }
  0x6e   : > { %v2044_v3 = vld [vmem:[#allocation7 + $0xb8] sm:$0xff]   ;;  %1748 = vmatpush3.bf16.msra.mxu0 %v2043_v2  ;;  %v2048_v7 = vld [vmem:[#allocation7 + $0xb0] sm:$0xff]   ;;  %v2051_v10 = vld [vmem:[#allocation7 + $0x28] sm:$0xff]   ;;  %p2220_p6 = scmp.ne.s32.totalorder %s3118_s30, %s2219_s2  ;;  %p3185_p12 = scmp.ne.s32.totalorder %s3179_s10, 0 }
  0x6f   : > { %1860 = vmatpush3.bf16.msra.mxu1 %v2044_v3  ;;  %1749 = vmatprep.subr.bf16.mxu0 %v2045_v4  ;;  %v2052_v11 = vld [vmem:[#allocation7 + $0xa8] sm:$0xff]   ;;  %v2053_v12 = vld [vmem:[#allocation7 + $0x60] sm:$0xff]   ;;  %v2057_v16 = vld [vmem:[#allocation7 + $0x58] sm:$0xff]   ;;  %s2302_s19 = smov [#allocation8]  }
  0x70   : > { %1861 = vmatprep.subr.bf16.mxu1 %v2046_v5  ;;  %v2054_v13 = vld [vmem:[#allocation7 + $0xe0] sm:$0xff]   ;;  %v2058_v17 = vld [vmem:[#allocation7 + $0xd8] sm:$0xff]   ;;  %v2061_v20 = vld [vmem:[#allocation7 + $0x50] sm:$0xff]   ;;  %p2221_p2 = pnand %p2220_p6, %p3185_p12  ;;  %s2223_s12 = sshll.u32 %s2302_s19, 4  ;;  %s2224_s12 = int_to_ptr.vmem [resolvable:$false] %s2223_s12 }
  0x71   : > { %v2055_v14 = vld [vmem:[#allocation7 + $0x20] sm:$0xff]   ;;  %v2059_v18 = vld [vmem:[#allocation7 + $0x18] sm:$0xff]   ;;  %v2062_v21 = vld [vmem:[#allocation7 + $0xd0] sm:$0xff]   ;;  %s2225_s20 = scalar_lea.vmem %s2224_s12, 8192  ;;  %p2226_p0 = scmp.lt.s32.totalorder %s3118_s30, %s2224_s12 }
  0x72   : > { %1750 = vmatpush3.bf16.msra.mxu0 %v2047_v6  ;;  %v2056_v15 = vld [vmem:[#allocation7 + $0xa0] sm:$0xff]   ;;  %v2060_v19 = vld [vmem:[#allocation7 + $0x98] sm:$0xff]   ;;  %v2063_v22 = vld [vmem:[#allocation7 + $0x10] sm:$0xff]   ;;  %p2222_p13 = pneg %p2221_p2  ;;  %p2227_p5 = scmp.lt.s32.totalorder %s2225_s20, %s2219_s2 }
  0x73   : > { %1862 = vmatpush3.bf16.msra.mxu1 %v2048_v7  ;;  %1751 = vmatprep.subr.bf16.mxu0 %v2049_v8  ;;  %v2064_v23 = vld [vmem:[#allocation7 + $0x90] sm:$0xff]   ;;  %v2065_v24 = vld [vmem:[#allocation7 + $0x48] sm:$0xff]   ;;  %v2069_v28 = vld [vmem:[#allocation7 + $0x40] sm:$0xff]  }
  0x74   : > { %1863 = vmatprep.subr.bf16.mxu1 %v2050_v9  ;;  %v2066_v25 = vld [vmem:[#allocation7 + $0xc8] sm:$0xff]   ;;  %v2070_v29 = vld [vmem:[#allocation7 + $0xc0] sm:$0xff]   ;;  %v278_v34 = vld [vmem:[%s2494_s24 + $0x18] sm:$0xff]  ;;  %p2228_p9 = por %p2227_p5, %p2226_p0 }
  0x75   : > { %v2067_v26 = vld [vmem:[#allocation7 + $0x8] sm:$0xff]   ;;  %v2071_v30 = vld [vmem:[#allocation7] sm:$0xff]   ;;  %v282_v36 = vld [vmem:[%s2494_s24 + $0x38] sm:$0xff] }
  0x76   : > { %1752 = vmatpush3.bf16.msra.mxu0 %v2051_v10  ;;  %v2068_v27 = vld [vmem:[#allocation7 + $0x88] sm:$0xff]   ;;  %v2072_v31 = vld [vmem:[#allocation7 + $0x80] sm:$0xff]   ;;  %v406_v39 = vpack.c.bf16 %v282_v36, %v278_v34  ;;  %v277_v41 = vld [vmem:[%s2494_s24 + $0x10] sm:$0xff]  ;;  %p2229_p10 = pnand %p2228_p9, %p2222_p13 }
  0x77   : > { %1864 = vmatpush3.bf16.msra.mxu1 %v2052_v11  ;;  %1753 = vmatprep.subr.bf16.mxu0 %v2053_v12  ;;  %v276_v32 = vld [vmem:[%s2494_s24 + $0x8] sm:$0xff]  ;;  %v275_v37 = vld [vmem:[%s2494_s24] sm:$0xff]  ;;  %v281_v42 = vld [vmem:[%s2494_s24 + $0x30] sm:$0xff] }
  0x78   : > { %1865 = vmatprep.subr.bf16.mxu1 %v2054_v13  ;;  %v280_v33 = vld [vmem:[%s2494_s24 + $0x28] sm:$0xff]  ;;  %v279_v38 = vld [vmem:[%s2494_s24 + $0x20] sm:$0xff]  ;;  %v405_v44 = vpack.c.bf16 %v281_v42, %v277_v41  ;;  %v286_v46 = vld [vmem:[%s2494_s24 + $0x58] sm:$0xff]  ;;  %921 = vmatprep.mubr.bf16.mxu1 %v406_v39 }
  0x79   : > { %v404_v35 = vpack.c.bf16 %v280_v33, %v276_v32  ;;  %v403_v40 = vpack.c.bf16 %v279_v38, %v275_v37  ;;  %v284_v43 = vld [vmem:[%s2494_s24 + $0x48] sm:$0xff]  ;;  %v290_v47 = vld [vmem:[%s2494_s24 + $0x78] sm:$0xff]  ;;  %v283_v50 = vld [vmem:[%s2494_s24 + $0x40] sm:$0xff] }
  0x7a   : > { %1754 = vmatpush3.bf16.msra.mxu0 %v2055_v14  ;;  %v288_v45 = vld [vmem:[%s2494_s24 + $0x68] sm:$0xff]  ;;  %v410_v49 = vpack.c.bf16 %v290_v47, %v286_v46  ;;  %v287_v51 = vld [vmem:[%s2494_s24 + $0x60] sm:$0xff]  ;;  %v285_v52 = vld [vmem:[%s2494_s24 + $0x50] sm:$0xff] }
  0x7b   : > { %1866 = vmatpush3.bf16.msra.mxu1 %v2056_v15  ;;  %1755 = vmatprep.subr.bf16.mxu0 %v2057_v16  ;;  %v408_v48 = vpack.c.bf16 %v288_v45, %v284_v43  ;;  %v289_v53 = vld [vmem:[%s2494_s24 + $0x70] sm:$0xff]  ;;  %v292_v54 = vld [vmem:[%s2494_s24 + $0x88] sm:$0xff]  ;;  %v294_v56 = vld [vmem:[%s2494_s24 + $0x98] sm:$0xff]  ;;  %v407_v58 = vpack.c.bf16 %v287_v51, %v283_v50 }
  0x7c   : > { %1867 = vmatprep.subr.bf16.mxu1 %v2058_v17  ;;  %760 = vmatprep.mubr.bf16.mxu0 %v404_v35  ;;  %v296_v55 = vld [vmem:[%s2494_s24 + $0xa8] sm:$0xff]  ;;  %v298_v57 = vld [vmem:[%s2494_s24 + $0xb8] sm:$0xff]  ;;  %v409_v59 = vpack.c.bf16 %v289_v53, %v285_v52  ;;  %v291_v62 = vld [vmem:[%s2494_s24 + $0x80] sm:$0xff] }
  0x7d   : > { %v412_v60 = vpack.c.bf16 %v296_v55, %v292_v54  ;;  %v414_v61 = vpack.c.bf16 %v298_v57, %v294_v56  ;;  %v295_v63 = vld [vmem:[%s2494_s24 + $0xa0] sm:$0xff]  ;;  %v293_v0 = vld [vmem:[%s2494_s24 + $0x90] sm:$0xff]  ;;  %v300_v2 = vld [vmem:[%s2494_s24 + $0xc8] sm:$0xff] }
  0x7e   : > { %1756 = vmatpush3.bf16.msra.mxu0 %v2059_v18  ;;  %v297_v1 = vld [vmem:[%s2494_s24 + $0xb0] sm:$0xff]  ;;  %v304_v3 = vld [vmem:[%s2494_s24 + $0xe8] sm:$0xff]  ;;  %v302_v4 = vld [vmem:[%s2494_s24 + $0xd8] sm:$0xff]  ;;  %v411_v6 = vpack.c.bf16 %v295_v63, %v291_v62 }
  0x7f   : > { %1868 = vmatpush3.bf16.msra.mxu1 %v2060_v19  ;;  %1757 = vmatprep.subr.bf16.mxu0 %v2061_v20  ;;  %v306_v5 = vld [vmem:[%s2494_s24 + $0xf8] sm:$0xff]  ;;  %v413_v7 = vpack.c.bf16 %v297_v1, %v293_v0  ;;  %v416_v8 = vpack.c.bf16 %v304_v3, %v300_v2  ;;  %v299_v10 = vld [vmem:[%s2494_s24 + $0xc0] sm:$0xff]  ;;  %v301_v12 = vld [vmem:[%s2494_s24 + $0xd0] sm:$0xff] }
  0x80   : > { %1869 = vmatprep.subr.bf16.mxu1 %v2062_v21  ;;  %v418_v9 = vpack.c.bf16 %v306_v5, %v302_v4  ;;  %v303_v11 = vld [vmem:[%s2494_s24 + $0xe0] sm:$0xff]  ;;  %v305_v13 = vld [vmem:[%s2494_s24 + $0xf0] sm:$0xff]  ;;  %v308_v14 = vld [vmem:[%s2494_s24 + $0x108] sm:$0xff] }
  0x81   : > { %v312_v15 = vld [vmem:[%s2494_s24 + $0x128] sm:$0xff]  ;;  %v310_v16 = vld [vmem:[%s2494_s24 + $0x118] sm:$0xff]  ;;  %v415_v18 = vpack.c.bf16 %v303_v11, %v299_v10  ;;  %v417_v19 = vpack.c.bf16 %v305_v13, %v301_v12  ;;  %v315_v34 = vld [vmem:[%s2494_s24 + $0x140] sm:$0xff] }
  0x82   : > { %1758 = vmatpush3.bf16.msra.mxu0 %v2063_v22  ;;  %v314_v17 = vld [vmem:[%s2494_s24 + $0x138] sm:$0xff]  ;;  %v420_v20 = vpack.c.bf16 %v312_v15, %v308_v14  ;;  %v307_v22 = vld [vmem:[%s2494_s24 + $0x100] sm:$0xff]  ;;  %v317_v36 = vld [vmem:[%s2494_s24 + $0x150] sm:$0xff] }
  0x83   : > { %1870 = vmatpush3.bf16.msra.mxu1 %v2064_v23  ;;  %1759 = vmatprep.subr.bf16.mxu0 %v2065_v24  ;;  %v422_v21 = vpack.c.bf16 %v314_v17, %v310_v16  ;;  %v311_v23 = vld [vmem:[%s2494_s24 + $0x120] sm:$0xff]  ;;  %v309_v24 = vld [vmem:[%s2494_s24 + $0x110] sm:$0xff]  ;;  %v324_v38 = vld [vmem:[%s2494_s24 + $0x188] sm:$0xff] }
  0x84   : > { %1871 = vmatprep.subr.bf16.mxu1 %v2066_v25  ;;  %v313_v25 = vld [vmem:[%s2494_s24 + $0x130] sm:$0xff]  ;;  %v319_v35 = vld [vmem:[%s2494_s24 + $0x160] sm:$0xff]  ;;  %v328_v39 = vld [vmem:[%s2494_s24 + $0x1a8] sm:$0xff] }
  0x85   : > { %v321_v37 = vld [vmem:[%s2494_s24 + $0x170] sm:$0xff]  ;;  %v330_v41 = vld [vmem:[%s2494_s24 + $0x1b8] sm:$0xff]  ;;  %v423_v42 = vpack.c.bf16 %v319_v35, %v315_v34  ;;  %v323_v46 = vld [vmem:[%s2494_s24 + $0x180] sm:$0xff] }
  0x86   : > { %1760 = vmatpush3.bf16.msra.mxu0 %v2067_v26  ;;  %v316_v26 = vld [vmem:[%s2494_s24 + $0x148] sm:$0xff]  ;;  %v425_v43 = vpack.c.bf16 %v321_v37, %v317_v36  ;;  %v327_v47 = vld [vmem:[%s2494_s24 + $0x1a0] sm:$0xff]  ;;  %v334_v52 = vld [vmem:[%s2494_s24 + $0x1d8] sm:$0xff] }
  0x87   : > { %1872 = vmatpush3.bf16.msra.mxu1 %v2068_v27  ;;  %1761 = vmatprep.subr.bf16.mxu0 %v2069_v28  ;;  %v320_v27 = vld [vmem:[%s2494_s24 + $0x168] sm:$0xff]  ;;  %v318_v28 = vld [vmem:[%s2494_s24 + $0x158] sm:$0xff]  ;;  %v427_v54 = vpack.c.bf16 %v327_v47, %v323_v46  ;;  %v361_v34 = vld [vmem:[%s2494_s24 + $0x2b0] sm:$0xff] }
  0x88   : > { %1873 = vmatprep.subr.bf16.mxu1 %v2070_v29  ;;  %v322_v29 = vld [vmem:[%s2494_s24 + $0x178] sm:$0xff]  ;;  %v424_v32 = vpack.c.bf16 %v320_v27, %v316_v26  ;;  %v332_v50 = vld [vmem:[%s2494_s24 + $0x1c8] sm:$0xff]  ;;  %v2613_v46 = vld [vmem:[%s3166_s3] sm:$0x7] }
  0x89   : > { %v426_v33 = vpack.c.bf16 %v322_v29, %v318_v28  ;;  %v336_v51 = vld [vmem:[%s2494_s24 + $0x1e8] sm:$0xff]  ;;  %v338_v53 = vld [vmem:[%s2494_s24 + $0x1f8] sm:$0xff]  ;;  %v363_v47 = vld [vmem:[%s2494_s24 + $0x2c0] sm:$0xff] }
  0x8a   : > { %1762 = vmatpush3.bf16.msra.mxu0 %v2071_v30  ;;  %v419_v30 = vpack.c.bf16 %v311_v23, %v307_v22  ;;  %v432_v56 = vpack.c.bf16 %v336_v51, %v332_v50  ;;  %v434_v57 = vpack.c.bf16 %v338_v53, %v334_v52  ;;  %v340_v62 = vld [vmem:[%s2494_s24 + $0x208] sm:$0xff]  ;;  %v342_v0 = vld [vmem:[%s2494_s24 + $0x218] sm:$0xff]  ;;  %v369_v52 = vld [vmem:[%s2494_s24 + $0x2f0] sm:$0xff] }
  0x8b   : > { %1874 = vmatpush3.bf16.msra.mxu1 %v2072_v31  ;;  %v421_v31 = vpack.c.bf16 %v313_v25, %v309_v24  ;;  %v344_v63 = vld [vmem:[%s2494_s24 + $0x228] sm:$0xff]  ;;  %v346_v1 = vld [vmem:[%s2494_s24 + $0x238] sm:$0xff] }
  0x8c   : > { %v436_v4 = vpack.c.bf16 %v344_v63, %v340_v62  ;;  %v438_v5 = vpack.c.bf16 %v346_v1, %v342_v0  ;;  %v348_v10 = vld [vmem:[%s2494_s24 + $0x248] sm:$0xff]  ;;  %v350_v12 = vld [vmem:[%s2494_s24 + $0x258] sm:$0xff]  ;;  %v375_v62 = vld [vmem:[%s2494_s24 + $0x320] sm:$0xff] }
  0x8d   : > { %761 = vmatmul.mubr.bf16.vlgmr.msra.gmra.mxu0 %v403_v40  ;;  %v326_v40 = vld [vmem:[%s2494_s24 + $0x198] sm:$0xff]  ;;  %v352_v11 = vld [vmem:[%s2494_s24 + $0x268] sm:$0xff]  ;;  %v373_v63 = vld [vmem:[%s2494_s24 + $0x310] sm:$0xff] }
  0x8e   : > { %922 = vmatmul.mubr.bf16.vlgmr.msra.gmra.mxu1 %v405_v44  ;;  %768 = vmatprep.mubr.bf16.mxu0 %v408_v48  ;;  %v428_v44 = vpack.c.bf16 %v328_v39, %v324_v38  ;;  %v430_v45 = vpack.c.bf16 %v330_v41, %v326_v40  ;;  %v325_v48 = vld [vmem:[%s2494_s24 + $0x190] sm:$0xff]  ;;  %v354_v13 = vld [vmem:[%s2494_s24 + $0x278] sm:$0xff]  ;;  %v440_v16 = vpack.c.bf16 %v352_v11, %v348_v10  ;;  %v356_v22 = vld [vmem:[%s2494_s24 + $0x288] sm:$0xff] }
  0x8f   : > { %929 = vmatprep.mubr.bf16.mxu1 %v410_v49  ;;  %v329_v49 = vld [vmem:[%s2494_s24 + $0x1b0] sm:$0xff]  ;;  %v442_v17 = vpack.c.bf16 %v354_v13, %v350_v12  ;;  %v360_v23 = vld [vmem:[%s2494_s24 + $0x2a8] sm:$0xff]  ;;  %v358_v24 = vld [vmem:[%s2494_s24 + $0x298] sm:$0xff] }
  0x90   : > { %v429_v55 = vpack.c.bf16 %v329_v49, %v325_v48  ;;  %v362_v25 = vld [vmem:[%s2494_s24 + $0x2b8] sm:$0xff]  ;;  %v444_v28 = vpack.c.bf16 %v360_v23, %v356_v22  ;;  %v364_v35 = vld [vmem:[%s2494_s24 + $0x2c8] sm:$0xff]  ;;  %v367_v48 = vld [vmem:[%s2494_s24 + $0x2e0] sm:$0xff] }
  0x91   : > { %v446_v29 = vpack.c.bf16 %v362_v25, %v358_v24  ;;  %v368_v36 = vld [vmem:[%s2494_s24 + $0x2e8] sm:$0xff]  ;;  %v366_v37 = vld [vmem:[%s2494_s24 + $0x2d8] sm:$0xff]  ;;  %v365_v49 = vld [vmem:[%s2494_s24 + $0x2d0] sm:$0xff] }
  0x92   : > { %v370_v38 = vld [vmem:[%s2494_s24 + $0x2f8] sm:$0xff]  ;;  %v448_v41 = vpack.c.bf16 %v368_v36, %v364_v35  ;;  %v372_v53 = vld [vmem:[%s2494_s24 + $0x308] sm:$0xff]  ;;  %v377_v0 = vld [vmem:[%s2494_s24 + $0x330] sm:$0xff] }
  0x93   : > { %v380_v1 = vld [vmem:[%s2494_s24 + $0x348] sm:$0xff]  ;;  %v383_v10 = vld [vmem:[%s2494_s24 + $0x360] sm:$0xff]  ;;  %v381_v11 = vld [vmem:[%s2494_s24 + $0x350] sm:$0xff] }
  0x94   : > { %v385_v12 = vld [vmem:[%s2494_s24 + $0x370] sm:$0xff]  ;;  %v388_v13 = vld [vmem:[%s2494_s24 + $0x388] sm:$0xff]  ;;  %v391_v22 = vld [vmem:[%s2494_s24 + $0x3a0] sm:$0xff] }
  0x95   : > { %769 = vmatmul.mubr.bf16.gmra.mxu0 %v407_v58  ;;  %v331_v58 = vld [vmem:[%s2494_s24 + $0x1c0] sm:$0xff]  ;;  %v389_v23 = vld [vmem:[%s2494_s24 + $0x390] sm:$0xff]  ;;  %v396_v25 = vld [vmem:[%s2494_s24 + $0x3c8] sm:$0xff] }
  0x96   : > { %930 = vmatmul.mubr.bf16.gmra.mxu1 %v409_v59  ;;  %776 = vmatprep.mubr.bf16.mxu0 %v412_v60  ;;  %v335_v59 = vld [vmem:[%s2494_s24 + $0x1e0] sm:$0xff]  ;;  %v333_v60 = vld [vmem:[%s2494_s24 + $0x1d0] sm:$0xff] }
  0x97   : > { %937 = vmatprep.mubr.bf16.mxu1 %v414_v61  ;;  %v337_v61 = vld [vmem:[%s2494_s24 + $0x1f0] sm:$0xff]  ;;  %v431_v2 = vpack.c.bf16 %v335_v59, %v331_v58  ;;  %v449_v58 = vpack.c.bf16 %v369_v52, %v365_v49 }
  0x98   : > { %v433_v3 = vpack.c.bf16 %v337_v61, %v333_v60  ;;  %v371_v61 = vld [vmem:[%s2494_s24 + $0x300] sm:$0xff]  ;;  %v393_v24 = vld [vmem:[%s2494_s24 + $0x3b0] sm:$0xff] }
  0x99   : > { %v397_v35 = vld [vmem:[%s2494_s24 + $0x3d0] sm:$0xff] }
  0x9a   : > { %v401_v36 = vld [vmem:[%s2494_s24 + $0x3f0] sm:$0xff] }
  0x9d   : > { %777 = vmatmul.mubr.bf16.gmra.mxu0 %v411_v6  ;;  %v339_v6 = vld [vmem:[%s2494_s24 + $0x200] sm:$0xff] }
  0x9e   : > { %938 = vmatmul.mubr.bf16.gmra.mxu1 %v413_v7  ;;  %784 = vmatprep.mubr.bf16.mxu0 %v416_v8  ;;  %v343_v7 = vld [vmem:[%s2494_s24 + $0x220] sm:$0xff]  ;;  %v341_v8 = vld [vmem:[%s2494_s24 + $0x210] sm:$0xff] }
  0x9f   : > { %945 = vmatprep.mubr.bf16.mxu1 %v418_v9  ;;  %v345_v9 = vld [vmem:[%s2494_s24 + $0x230] sm:$0xff]  ;;  %v435_v14 = vpack.c.bf16 %v343_v7, %v339_v6  ;;  %v453_v6 = vpack.c.bf16 %v377_v0, %v373_v63  ;;  %v1051_v63 = vld [vmem:[%s2504_s13 + $0x8] sm:$0xff] }
  0xa0   : > { %v437_v15 = vpack.c.bf16 %v345_v9, %v341_v8  ;;  %v379_v9 = vld [vmem:[%s2494_s24 + $0x340] sm:$0xff] }
  0xa5   : > { %785 = vmatmul.mubr.bf16.gmra.mxu0 %v415_v18  ;;  %v347_v18 = vld [vmem:[%s2494_s24 + $0x240] sm:$0xff] }
  0xa6   : > { %946 = vmatmul.mubr.bf16.gmra.mxu1 %v417_v19  ;;  %792 = vmatprep.mubr.bf16.mxu0 %v420_v20  ;;  %v351_v19 = vld [vmem:[%s2494_s24 + $0x260] sm:$0xff]  ;;  %v349_v20 = vld [vmem:[%s2494_s24 + $0x250] sm:$0xff] }
  0xa7   : > { %953 = vmatprep.mubr.bf16.mxu1 %v422_v21  ;;  %v353_v21 = vld [vmem:[%s2494_s24 + $0x270] sm:$0xff]  ;;  %v439_v26 = vpack.c.bf16 %v351_v19, %v347_v18  ;;  %v457_v18 = vpack.c.bf16 %v385_v12, %v381_v11 }
  0xa8   : > { %v441_v27 = vpack.c.bf16 %v353_v21, %v349_v20  ;;  %v387_v21 = vld [vmem:[%s2494_s24 + $0x380] sm:$0xff] }
  0xad   : > { %793 = vmatmul.mubr.bf16.gmra.mxu0 %v419_v30  ;;  %v355_v30 = vld [vmem:[%s2494_s24 + $0x280] sm:$0xff] }
  0xae   : > { %954 = vmatmul.mubr.bf16.gmra.mxu1 %v421_v31  ;;  %800 = vmatprep.mubr.bf16.mxu0 %v424_v32  ;;  %v359_v31 = vld [vmem:[%s2494_s24 + $0x2a0] sm:$0xff]  ;;  %v357_v32 = vld [vmem:[%s2494_s24 + $0x290] sm:$0xff] }
  0xaf   : > { %961 = vmatprep.mubr.bf16.mxu1 %v426_v33  ;;  %v532_v33 = vlaneseq  ;;  %v443_v39 = vpack.c.bf16 %v359_v31, %v355_v30  ;;  %v445_v40 = vpack.c.bf16 %v361_v34, %v357_v32  ;;  %v461_v30 = vpack.c.bf16 %v393_v24, %v389_v23  ;;  %v399_v34 = vld [vmem:[%s2494_s24 + $0x3e0] sm:$0xff] }
  0xb5   : > { %801 = vmatmul.mubr.bf16.gmra.mxu0 %v423_v42  ;;  %v2606_v42 = vshrl.u32 %v532_v33, 7  ;;  %v395_v33 = vld [vmem:[%s2494_s24 + $0x3c0] sm:$0xff] }
  0xb6   : > { %962 = vmatmul.mubr.bf16.gmra.mxu1 %v425_v43  ;;  %808 = vmatprep.mubr.bf16.mxu0 %v428_v44  ;;  %v450_v43 = vpack.c.bf16 %v370_v38, %v366_v37  ;;  %v463_v37 = vpack.c.bf16 %v399_v34, %v395_v33  ;;  %v465_v38 = vpack.c.bf16 %v401_v36, %v397_v35 }
  0xb7   : > { %969 = vmatprep.mubr.bf16.mxu1 %v430_v45  ;;  %v1437_v44 = vsub.s32 1, %v2606_v42  ;;  %v1505_v45 = vsub.s32 2, %v2606_v42 }
  0xb9   : > { %v2619_v50 = vrot.slane %v2613_v46, %v1437_v44  ;;  %v2622_v51 = vrot.slane %v2613_v46, %v1505_v45 }
  0xbd   : > { %809 = vmatmul.mubr.bf16.gmra.mxu0 %v427_v54  ;;  %v376_v54 = vld [vmem:[%s2494_s24 + $0x328] sm:$0xff] }
  0xbe   : > { %970 = vmatmul.mubr.bf16.gmra.mxu1 %v429_v55  ;;  %816 = vmatprep.mubr.bf16.mxu0 %v432_v56  ;;  %v374_v55 = vld [vmem:[%s2494_s24 + $0x318] sm:$0xff]  ;;  %v452_v59 = vpack.c.bf16 %v376_v54, %v372_v53 }
  0xbf   : > { %977 = vmatprep.mubr.bf16.mxu1 %v434_v57  ;;  %v378_v56 = vld [vmem:[%s2494_s24 + $0x338] sm:$0xff]  ;;  %v447_v57 = vpack.c.bf16 %v367_v48, %v363_v47 }
  0xc0   : > { %v454_v60 = vpack.c.bf16 %v378_v56, %v374_v55  ;;  %v1050_v55 = vld [vmem:[%s2504_s13] sm:$0xff] }
  0xc5   : > { %817 = vmatmul.mubr.bf16.gmra.mxu0 %v431_v2  ;;  %v384_v2 = vld [vmem:[%s2494_s24 + $0x368] sm:$0xff] }
  0xc6   : > { %978 = vmatmul.mubr.bf16.gmra.mxu1 %v433_v3  ;;  %824 = vmatprep.mubr.bf16.mxu0 %v436_v4  ;;  %v382_v3 = vld [vmem:[%s2494_s24 + $0x358] sm:$0xff]  ;;  %v456_v7 = vpack.c.bf16 %v384_v2, %v380_v1 }
  0xc7   : > { %985 = vmatprep.mubr.bf16.mxu1 %v438_v5  ;;  %v386_v4 = vld [vmem:[%s2494_s24 + $0x378] sm:$0xff]  ;;  %v451_v5 = vpack.c.bf16 %v375_v62, %v371_v61 }
  0xc8   : > { %v458_v8 = vpack.c.bf16 %v386_v4, %v382_v3 }
  0xcd   : > { %825 = vmatmul.mubr.bf16.gmra.mxu0 %v435_v14  ;;  %v392_v14 = vld [vmem:[%s2494_s24 + $0x3a8] sm:$0xff] }
  0xce   : > { %986 = vmatmul.mubr.bf16.gmra.mxu1 %v437_v15  ;;  %832 = vmatprep.mubr.bf16.mxu0 %v440_v16  ;;  %v390_v15 = vld [vmem:[%s2494_s24 + $0x398] sm:$0xff]  ;;  %v460_v19 = vpack.c.bf16 %v392_v14, %v388_v13 }
  0xcf   : > { %993 = vmatprep.mubr.bf16.mxu1 %v442_v17  ;;  %v394_v16 = vld [vmem:[%s2494_s24 + $0x3b8] sm:$0xff]  ;;  %v455_v17 = vpack.c.bf16 %v383_v10, %v379_v9  ;;  %v1052_v9 = vld [vmem:[%s2504_s13 + $0x10] sm:$0xff] }
  0xd0   : > { %v462_v20 = vpack.c.bf16 %v394_v16, %v390_v15 }
  0xd5   : > { %833 = vmatmul.mubr.bf16.gmra.mxu0 %v439_v26  ;;  %v400_v26 = vld [vmem:[%s2494_s24 + $0x3e8] sm:$0xff] }
  0xd6   : > { %994 = vmatmul.mubr.bf16.gmra.mxu1 %v441_v27  ;;  %840 = vmatprep.mubr.bf16.mxu0 %v444_v28  ;;  %v398_v27 = vld [vmem:[%s2494_s24 + $0x3d8] sm:$0xff]  ;;  %v464_v31 = vpack.c.bf16 %v400_v26, %v396_v25 }
  0xd7   : > { %1001 = vmatprep.mubr.bf16.mxu1 %v446_v29  ;;  %v402_v28 = vld [vmem:[%s2494_s24 + $0x3f8] sm:$0xff]  ;;  %v459_v29 = vpack.c.bf16 %v391_v22, %v387_v21 }
  0xd8   : > { %v466_v32 = vpack.c.bf16 %v402_v28, %v398_v27 }
  0xdd   : > { %841 = vmatmul.mubr.bf16.gmra.mxu0 %v443_v39  ;;  %v534_v39 = vsub.s32 0, %v2606_v42 }
  0xde   : > { %1002 = vmatmul.mubr.bf16.gmra.mxu1 %v445_v40  ;;  %848 = vmatprep.mubr.bf16.mxu0 %v448_v41 }
  0xdf   : > { %1009 = vmatprep.mubr.bf16.mxu1 %v450_v43  ;;  %v2659_v43 = vrot.slane %v2613_v46, %v534_v39  ;;  %v1055_v39 = vld [vmem:[%s2504_s13 + $0x28] sm:$0xff] }
  0xe5   : > { %849 = vmatmul.mubr.bf16.gmra.mxu0 %v447_v57 }
  0xe6   : > { %1010 = vmatmul.mubr.bf16.gmra.mxu1 %v449_v58  ;;  %856 = vmatprep.mubr.bf16.mxu0 %v452_v59 }
  0xe7   : > { %1017 = vmatprep.mubr.bf16.mxu1 %v454_v60 }
  0xed   : > { %857 = vmatmul.mubr.bf16.gmra.mxu0 %v451_v5 }
  0xee   : > { %1018 = vmatmul.mubr.bf16.gmra.mxu1 %v453_v6  ;;  %864 = vmatprep.mubr.bf16.mxu0 %v456_v7 }
  0xef   : > { %1025 = vmatprep.mubr.bf16.mxu1 %v458_v8 }
  0xf5   : > { %865 = vmatmul.mubr.bf16.gmra.mxu0 %v455_v17 }
  0xf6   : > { %1026 = vmatmul.mubr.bf16.gmra.mxu1 %v457_v18  ;;  %872 = vmatprep.mubr.bf16.mxu0 %v460_v19  ;;  %v1053_v19 = vld [vmem:[%s2504_s13 + $0x18] sm:$0xff] }
  0xf7   : > { %1033 = vmatprep.mubr.bf16.mxu1 %v462_v20 }
  0xfd   : > { %873 = vmatmul.mubr.bf16.gmra.mxu0 %v459_v29  ;;  %v1054_v29 = vld [vmem:[%s2504_s13 + $0x20] sm:$0xff] }
  0xfe   : > { %1034 = vmatmul.mubr.bf16.gmra.mxu1 %v461_v30  ;;  %880 = vmatprep.mubr.bf16.mxu0 %v464_v31 }
  0xff   : > { %1041 = vmatprep.mubr.bf16.mxu1 %v466_v32 }
 0x105   : > { %881 = vmatmul.mubr.bf16.gmra.mxu0 %v463_v37 }
 0x106   : > { %1042 = vmatmul.mubr.bf16.gmra.mxu1 %v465_v38 }
 0x14d   : > { %v1763_v40 = vpop.f32.mrf.mxu0 }
 0x14e   : > { %v1875_v41 = vpop.f32.mrf.mxu1 }
 0x14f   : > { %v1764_v44 = vpop.f32.mrf.mxu0 }
 0x150   : > { %v1765_v45 = vadd.f32 %v1764_v44, %v1763_v40  ;;  %v1876_v47 = vpop.f32.mrf.mxu1 }
 0x151   : > { %v1766_v48 = vpop.f32.mrf.mxu0  ;;  %v1877_v52 = vadd.f32 %v1876_v47, %v1875_v41 }
 0x152   : > { %v763_v49 = vadd.f32 %v1765_v45, %v2659_v43  ;;  %v1878_v53 = vpop.f32.mrf.mxu1 }
 0x153   : > { %v1767_v54 = vpop.f32.mrf.mxu0 }
 0x154   : > { %v924_v56 = vadd.f32 %v1877_v52, %v763_v49  ;;  %v1768_v57 = vadd.f32 %v1767_v54, %v1766_v48  ;;  %v1879_v58 = vpop.f32.mrf.mxu1  ;;  %v1056_v54 = vld [vmem:[%s2504_s13 + $0x30] sm:$0xff] }
 0x155   : > { %v1769_v42 = vpop.f32.mrf.mxu0  ;;  %v1880_v46 = vadd.f32 %v1879_v58, %v1878_v53 }
 0x156   : > { %v766_v59 = vadd.f32 %v1768_v57, %v2659_v43  ;;  %v1881_v60 = vpop.f32.mrf.mxu1  ;;  %v2664_v61 = vadd.f32 %v1050_v55, %v924_v56 }
 0x157   : > { %v1770_v62 = vpop.f32.mrf.mxu0 }
 0x158   : > { %v927_v0 = vadd.f32 %v1880_v46, %v766_v59  ;;  %v1771_v1 = vadd.f32 %v1770_v62, %v1769_v42  ;;  %v1882_v2 = vpop.f32.mrf.mxu1  ;;  %1114 = vadd.xlane.f32.xlu0 %v2664_v61 }
 0x159   : > { %v1772_v3 = vpop.f32.mrf.mxu0  ;;  %v1883_v5 = vadd.f32 %v1882_v2, %v1881_v60 }
 0x15a   : > { %v771_v4 = vadd.f32 %v1771_v1, %v2659_v43  ;;  %v1884_v6 = vpop.f32.mrf.mxu1  ;;  %v2669_v7 = vadd.f32 %v1051_v63, %v927_v0  ;;  %v1057_v63 = vld [vmem:[%s2504_s13 + $0x38] sm:$0xff] }
 0x15b   : > { %v1773_v8 = vpop.f32.mrf.mxu0 }
 0x15c   : > { %v932_v10 = vadd.f32 %v1883_v5, %v771_v4  ;;  %v1774_v11 = vadd.f32 %v1773_v8, %v1772_v3  ;;  %v1885_v12 = vpop.f32.mrf.mxu1  ;;  %1116 = vadd.xlane.f32.xlu0 %v2669_v7 }
 0x15d   : > { %v1775_v13 = vpop.f32.mrf.mxu0  ;;  %v1886_v15 = vadd.f32 %v1885_v12, %v1884_v6 }
 0x15e   : > { %v774_v14 = vadd.f32 %v1774_v11, %v2659_v43  ;;  %v1887_v16 = vpop.f32.mrf.mxu1  ;;  %v2674_v17 = vadd.f32 %v1052_v9, %v932_v10  ;;  %v1058_v10 = vld [vmem:[%s2504_s13 + $0x40] sm:$0xff] }
 0x15f   : > { %v1776_v18 = vpop.f32.mrf.mxu0 }
 0x160   : > { %v935_v20 = vadd.f32 %v1886_v15, %v774_v14  ;;  %v1777_v21 = vadd.f32 %v1776_v18, %v1775_v13  ;;  %v1888_v22 = vpop.f32.mrf.mxu1  ;;  %1118 = vadd.xlane.f32.xlu1 %v2674_v17 }
 0x161   : > { %v1778_v23 = vpop.f32.mrf.mxu0  ;;  %v1889_v25 = vadd.f32 %v1888_v22, %v1887_v16 }
 0x162   : > { %v779_v24 = vadd.f32 %v1777_v21, %v2659_v43  ;;  %v1890_v26 = vpop.f32.mrf.mxu1  ;;  %v2679_v27 = vadd.f32 %v1053_v19, %v935_v20  ;;  %v1059_v21 = vld [vmem:[%s2504_s13 + $0x48] sm:$0xff] }
 0x163   : > { %v1779_v28 = vpop.f32.mrf.mxu0 }
 0x164   : > { %v940_v30 = vadd.f32 %v1889_v25, %v779_v24  ;;  %v1780_v31 = vadd.f32 %v1779_v28, %v1778_v23  ;;  %v1891_v32 = vpop.f32.mrf.mxu1  ;;  %1120 = vadd.xlane.f32.xlu1 %v2679_v27 }
 0x165   : > { %v1781_v33 = vpop.f32.mrf.mxu0  ;;  %v1892_v35 = vadd.f32 %v1891_v32, %v1890_v26  ;;  %v1060_v32 = vld [vmem:[%s2504_s13 + $0x50] sm:$0xff] }
 0x166   : > { %v782_v34 = vadd.f32 %v1780_v31, %v2659_v43  ;;  %v1893_v36 = vpop.f32.mrf.mxu1  ;;  %v2684_v37 = vadd.f32 %v1054_v29, %v940_v30 }
 0x167   : > { %v1782_v38 = vpop.f32.mrf.mxu0 }
 0x168   : > { %v943_v40 = vadd.f32 %v1892_v35, %v782_v34  ;;  %v1783_v41 = vadd.f32 %v1782_v38, %v1781_v33  ;;  %v1894_v44 = vpop.f32.mrf.mxu1  ;;  %1122 = vadd.xlane.f32.xlu0 %v2684_v37 }
 0x169   : > { %v1784_v45 = vpop.f32.mrf.mxu0  ;;  %v1895_v48 = vadd.f32 %v1894_v44, %v1893_v36 }
 0x16a   : > { %v787_v47 = vadd.f32 %v1783_v41, %v2659_v43  ;;  %v1896_v49 = vpop.f32.mrf.mxu1  ;;  %v2689_v52 = vadd.f32 %v1055_v39, %v943_v40 }
 0x16b   : > { %v1785_v53 = vpop.f32.mrf.mxu0 }
 0x16c   : > { %v948_v55 = vadd.f32 %v1895_v48, %v787_v47  ;;  %v1786_v56 = vadd.f32 %v1785_v53, %v1784_v45  ;;  %v1897_v57 = vpop.f32.mrf.mxu1  ;;  %1124 = vadd.xlane.f32.xlu1 %v2689_v52  ;;  %v1061_v45 = vld [vmem:[%s2504_s13 + $0x58] sm:$0xff] }
 0x16d   : > { %v1787_v58 = vpop.f32.mrf.mxu0  ;;  %v1898_v59 = vadd.f32 %v1897_v57, %v1896_v49 }
 0x16e   : > { %v790_v42 = vadd.f32 %v1786_v56, %v2659_v43  ;;  %v1899_v46 = vpop.f32.mrf.mxu1  ;;  %v2694_v60 = vadd.f32 %v1056_v54, %v948_v55 }
 0x16f   : > { %v1788_v62 = vpop.f32.mrf.mxu0 }
 0x170   : > { %v951_v0 = vadd.f32 %v1898_v59, %v790_v42  ;;  %v1789_v1 = vadd.f32 %v1788_v62, %v1787_v58  ;;  %v1900_v2 = vpop.f32.mrf.mxu1  ;;  %1126 = vadd.xlane.f32.xlu0 %v2694_v60  ;;  %v1062_v42 = vld [vmem:[%s2504_s13 + $0x60] sm:$0xff] }
 0x171   : > { %v1790_v3 = vpop.f32.mrf.mxu0  ;;  %v1901_v5 = vadd.f32 %v1900_v2, %v1899_v46 }
 0x172   : > { %v795_v4 = vadd.f32 %v1789_v1, %v2659_v43  ;;  %v1902_v6 = vpop.f32.mrf.mxu1  ;;  %v2699_v8 = vadd.f32 %v1057_v63, %v951_v0 }
 0x173   : > { %v1791_v9 = vpop.f32.mrf.mxu0 }
 0x174   : > { %v956_v11 = vadd.f32 %v1901_v5, %v795_v4  ;;  %v1792_v12 = vadd.f32 %v1791_v9, %v1790_v3  ;;  %v1903_v13 = vpop.f32.mrf.mxu1  ;;  %1128 = vadd.xlane.f32.xlu1 %v2699_v8  ;;  %v1063_v5 = vld [vmem:[%s2504_s13 + $0x68] sm:$0xff] }
 0x175   : > { %v1793_v14 = vpop.f32.mrf.mxu0  ;;  %v1904_v16 = vadd.f32 %v1903_v13, %v1902_v6 }
 0x176   : > { %v798_v15 = vadd.f32 %v1792_v12, %v2659_v43  ;;  %v1905_v18 = vpop.f32.mrf.mxu1  ;;  %v2704_v19 = vadd.f32 %v1058_v10, %v956_v11 }
 0x177   : > { %v1794_v20 = vpop.f32.mrf.mxu0 }
 0x178   : > { %v959_v22 = vadd.f32 %v1904_v16, %v798_v15  ;;  %v1795_v23 = vadd.f32 %v1794_v20, %v1793_v14  ;;  %v1906_v24 = vpop.f32.mrf.mxu1  ;;  %1130 = vadd.xlane.f32.xlu0 %v2704_v19 }
 0x179   : > { %v1796_v25 = vpop.f32.mrf.mxu0  ;;  %v1907_v28 = vadd.f32 %v1906_v24, %v1905_v18  ;;  %v1064_v18 = vld [vmem:[%s2504_s13 + $0x70] sm:$0xff] }
 0x17a   : > { %v803_v26 = vadd.f32 %v1795_v23, %v2659_v43  ;;  %v1908_v29 = vpop.f32.mrf.mxu1  ;;  %v2709_v30 = vadd.f32 %v1059_v21, %v959_v22 }
 0x17b   : > { %v1797_v31 = vpop.f32.mrf.mxu0 }
 0x17c   : > { %v964_v33 = vadd.f32 %v1907_v28, %v803_v26  ;;  %v1798_v34 = vadd.f32 %v1797_v31, %v1796_v25  ;;  %v1909_v35 = vpop.f32.mrf.mxu1  ;;  %1132 = vadd.xlane.f32.xlu1 %v2709_v30  ;;  %v1065_v31 = vld [vmem:[%s2504_s13 + $0x78] sm:$0xff] }
 0x17d   : > { %v1799_v36 = vpop.f32.mrf.mxu0  ;;  %v1910_v39 = vadd.f32 %v1909_v35, %v1908_v29 }
 0x17e   : > { %v806_v38 = vadd.f32 %v1798_v34, %v2659_v43  ;;  %v1911_v40 = vpop.f32.mrf.mxu1  ;;  %v2714_v41 = vadd.f32 %v1060_v32, %v964_v33 }
 0x17f   : > { %v1800_v44 = vpop.f32.mrf.mxu0 }
 0x180   : > { %v967_v47 = vadd.f32 %v1910_v39, %v806_v38  ;;  %v1801_v48 = vadd.f32 %v1800_v44, %v1799_v36  ;;  %v1912_v49 = vpop.f32.mrf.mxu1  ;;  %1134 = vadd.xlane.f32.xlu0 %v2714_v41 }
 0x181   : > { %v1802_v53 = vpop.f32.mrf.mxu0  ;;  %v1913_v55 = vadd.f32 %v1912_v49, %v1911_v40 }
 0x182   : > { %v811_v54 = vadd.f32 %v1801_v48, %v2659_v43  ;;  %v1914_v56 = vpop.f32.mrf.mxu1  ;;  %v2719_v57 = vadd.f32 %v1061_v45, %v967_v47  ;;  %v1066_v45 = vld [vmem:[%s2504_s13 + $0x80] sm:$0xff] }
 0x183   : > { %v1803_v58 = vpop.f32.mrf.mxu0 }
 0x184   : > { %v972_v59 = vadd.f32 %v1913_v55, %v811_v54  ;;  %v1804_v46 = vadd.f32 %v1803_v58, %v1802_v53  ;;  %v1915_v62 = vpop.f32.mrf.mxu1  ;;  %1136 = vadd.xlane.f32.xlu1 %v2719_v57 }
 0x185   : > { %v1805_v63 = vpop.f32.mrf.mxu0  ;;  %v1916_v1 = vadd.f32 %v1915_v62, %v1914_v56 }
 0x186   : > { %v814_v0 = vadd.f32 %v1804_v46, %v2659_v43  ;;  %v1917_v2 = vpop.f32.mrf.mxu1  ;;  %v2724_v3 = vadd.f32 %v1062_v42, %v972_v59  ;;  %v1067_v59 = vld [vmem:[%s2504_s13 + $0x88] sm:$0xff] }
 0x187   : > { %v1806_v4 = vpop.f32.mrf.mxu0 }
 0x188   : > { %v975_v6 = vadd.f32 %v1916_v1, %v814_v0  ;;  %v1807_v9 = vadd.f32 %v1806_v4, %v1805_v63  ;;  %v1918_v10 = vpop.f32.mrf.mxu1  ;;  %1138 = vadd.xlane.f32.xlu0 %v2724_v3 }
 0x189   : > { %v1808_v11 = vpop.f32.mrf.mxu0  ;;  %v1919_v13 = vadd.f32 %v1918_v10, %v1917_v2 }
 0x18a   : > { %v819_v12 = vadd.f32 %v1807_v9, %v2659_v43  ;;  %v1920_v14 = vpop.f32.mrf.mxu1  ;;  %v2729_v15 = vadd.f32 %v1063_v5, %v975_v6  ;;  %v1068_v9 = vld [vmem:[%s2504_s13 + $0x90] sm:$0xff] }
 0x18b   : > { %v1809_v16 = vpop.f32.mrf.mxu0 }
 0x18c   : > { %v980_v20 = vadd.f32 %v1919_v13, %v819_v12  ;;  %v1810_v21 = vadd.f32 %v1809_v16, %v1808_v11  ;;  %v1921_v22 = vpop.f32.mrf.mxu1  ;;  %1140 = vadd.xlane.f32.xlu1 %v2729_v15 }
 0x18d   : > { %v1811_v23 = vpop.f32.mrf.mxu0  ;;  %v1922_v25 = vadd.f32 %v1921_v22, %v1920_v14  ;;  %v1069_v22 = vld [vmem:[%s2504_s13 + $0x98] sm:$0xff] }
 0x18e   : > { %v822_v24 = vadd.f32 %v1810_v21, %v2659_v43  ;;  %v1923_v26 = vpop.f32.mrf.mxu1  ;;  %v2734_v28 = vadd.f32 %v1064_v18, %v980_v20 }
 0x18f   : > { %v1812_v29 = vpop.f32.mrf.mxu0 }
 0x190   : > { %v983_v32 = vadd.f32 %v1922_v25, %v822_v24  ;;  %v1813_v33 = vadd.f32 %v1812_v29, %v1811_v23  ;;  %v1924_v34 = vpop.f32.mrf.mxu1  ;;  %1142 = vadd.xlane.f32.xlu0 %v2734_v28 }
 0x191   : > { %v1814_v35 = vpop.f32.mrf.mxu0  ;;  %v1925_v38 = vadd.f32 %v1924_v34, %v1923_v26 }
 0x192   : > { %v827_v36 = vadd.f32 %v1813_v33, %v2659_v43  ;;  %v1926_v39 = vpop.f32.mrf.mxu1  ;;  %v2739_v40 = vadd.f32 %v1065_v31, %v983_v32 }
 0x193   : > { %v1815_v44 = vpop.f32.mrf.mxu0 }
 0x194   : > { %v988_v47 = vadd.f32 %v1925_v38, %v827_v36  ;;  %v1816_v48 = vadd.f32 %v1815_v44, %v1814_v35  ;;  %v1927_v49 = vpop.f32.mrf.mxu1  ;;  %1144 = vadd.xlane.f32.xlu1 %v2739_v40  ;;  %v1070_v35 = vld [vmem:[%s2504_s13 + $0xa0] sm:$0xff] }
 0x195   : > { %v1817_v53 = vpop.f32.mrf.mxu0  ;;  %v1928_v55 = vadd.f32 %v1927_v49, %v1926_v39 }
 0x196   : > { %v830_v54 = vadd.f32 %v1816_v48, %v2659_v43  ;;  %v1929_v56 = vpop.f32.mrf.mxu1  ;;  %v2744_v58 = vadd.f32 %v1066_v45, %v988_v47 }
 0x197   : > { %v1818_v42 = vpop.f32.mrf.mxu0 }
 0x198   : > { %v991_v46 = vadd.f32 %v1928_v55, %v830_v54  ;;  %v1819_v62 = vadd.f32 %v1818_v42, %v1817_v53  ;;  %v1930_v63 = vpop.f32.mrf.mxu1  ;;  %1146 = vadd.xlane.f32.xlu0 %v2744_v58  ;;  %v1071_v54 = vld [vmem:[%s2504_s13 + $0xa8] sm:$0xff] }
 0x199   : > { %v1820_v0 = vpop.f32.mrf.mxu0  ;;  %v1931_v2 = vadd.f32 %v1930_v63, %v1929_v56 }
 0x19a   : > { %v835_v1 = vadd.f32 %v1819_v62, %v2659_v43  ;;  %v1932_v4 = vpop.f32.mrf.mxu1  ;;  %v2749_v5 = vadd.f32 %v1067_v59, %v991_v46 }
 0x19b   : > { %v1821_v6 = vpop.f32.mrf.mxu0 }
 0x19c   : > { %v996_v10 = vadd.f32 %v1931_v2, %v835_v1  ;;  %v1822_v11 = vadd.f32 %v1821_v6, %v1820_v0  ;;  %v1933_v12 = vpop.f32.mrf.mxu1  ;;  %1148 = vadd.xlane.f32.xlu1 %v2749_v5  ;;  %v1072_v2 = vld [vmem:[%s2504_s13 + $0xb0] sm:$0xff] }
 0x19d   : > { %v1823_v13 = vpop.f32.mrf.mxu0  ;;  %v1934_v16 = vadd.f32 %v1933_v12, %v1932_v4 }
 0x19e   : > { %v838_v14 = vadd.f32 %v1822_v11, %v2659_v43  ;;  %v1935_v18 = vpop.f32.mrf.mxu1  ;;  %v2754_v20 = vadd.f32 %v1068_v9, %v996_v10 }
 0x19f   : > { %v1824_v21 = vpop.f32.mrf.mxu0 }
 0x1a0   : > { %v999_v23 = vadd.f32 %v1934_v16, %v838_v14  ;;  %v1825_v24 = vadd.f32 %v1824_v21, %v1823_v13  ;;  %v1936_v25 = vpop.f32.mrf.mxu1  ;;  %1150 = vadd.xlane.f32.xlu0 %v2754_v20 }
 0x1a1   : > { %v1826_v26 = vpop.f32.mrf.mxu0  ;;  %v1937_v31 = vadd.f32 %v1936_v25, %v1935_v18  ;;  %v1073_v18 = vld [vmem:[%s2504_s13 + $0xb8] sm:$0xff] }
 0x1a2   : > { %v843_v29 = vadd.f32 %v1825_v24, %v2659_v43  ;;  %v1938_v32 = vpop.f32.mrf.mxu1  ;;  %v2759_v33 = vadd.f32 %v1069_v22, %v999_v23 }
 0x1a3   : > { %v1827_v34 = vpop.f32.mrf.mxu0 }
 0x1a4   : > { %v1004_v36 = vadd.f32 %v1937_v31, %v843_v29  ;;  %v1828_v38 = vadd.f32 %v1827_v34, %v1826_v26  ;;  %v1939_v39 = vpop.f32.mrf.mxu1  ;;  %1152 = vadd.xlane.f32.xlu1 %v2759_v33  ;;  %v1074_v34 = vld [vmem:[%s2504_s13 + $0xc0] sm:$0xff] }
 0x1a5   : > { %v1829_v44 = vpop.f32.mrf.mxu0  ;;  %v1940_v47 = vadd.f32 %v1939_v39, %v1938_v32 }
 0x1a6   : > { %v846_v45 = vadd.f32 %v1828_v38, %v2659_v43  ;;  %v1941_v48 = vpop.f32.mrf.mxu1  ;;  %v2764_v49 = vadd.f32 %v1070_v35, %v1004_v36 }
 0x1a7   : > { %v1830_v53 = vpop.f32.mrf.mxu0 }
 0x1a8   : > { %v1007_v55 = vadd.f32 %v1940_v47, %v846_v45  ;;  %v1831_v56 = vadd.f32 %v1830_v53, %v1829_v44  ;;  %v1942_v42 = vpop.f32.mrf.mxu1  ;;  %1154 = vadd.xlane.f32.xlu0 %v2764_v49 }
 0x1a9   : > { %v1832_v59 = vpop.f32.mrf.mxu0  ;;  %v1943_v62 = vadd.f32 %v1942_v42, %v1941_v48 }
 0x1aa   : > { %v851_v46 = vadd.f32 %v1831_v56, %v2659_v43  ;;  %v1944_v63 = vpop.f32.mrf.mxu1  ;;  %v2769_v0 = vadd.f32 %v1071_v54, %v1007_v55  ;;  %v1075_v54 = vld [vmem:[%s2504_s13 + $0xc8] sm:$0xff] }
 0x1ab   : > { %v1833_v1 = vpop.f32.mrf.mxu0 }
 0x1ac   : > { %v1012_v4 = vadd.f32 %v1943_v62, %v851_v46  ;;  %v1834_v6 = vadd.f32 %v1833_v1, %v1832_v59  ;;  %v1945_v9 = vpop.f32.mrf.mxu1  ;;  %1156 = vadd.xlane.f32.xlu1 %v2769_v0 }
 0x1ad   : > { %v1835_v10 = vpop.f32.mrf.mxu0  ;;  %v1946_v12 = vadd.f32 %v1945_v9, %v1944_v63 }
 0x1ae   : > { %v854_v11 = vadd.f32 %v1834_v6, %v2659_v43  ;;  %v1947_v13 = vpop.f32.mrf.mxu1  ;;  %v2774_v14 = vadd.f32 %v1072_v2, %v1012_v4  ;;  %v1076_v4 = vld [vmem:[%s2504_s13 + $0xd0] sm:$0xff] }
 0x1af   : > { %v1836_v16 = vpop.f32.mrf.mxu0 }
 0x1b0   : > { %v1015_v21 = vadd.f32 %v1946_v12, %v854_v11  ;;  %v1837_v22 = vadd.f32 %v1836_v16, %v1835_v10  ;;  %v1948_v23 = vpop.f32.mrf.mxu1  ;;  %1158 = vadd.xlane.f32.xlu0 %v2774_v14 }
 0x1b1   : > { %v1838_v24 = vpop.f32.mrf.mxu0  ;;  %v1949_v26 = vadd.f32 %v1948_v23, %v1947_v13 }
 0x1b2   : > { %v859_v25 = vadd.f32 %v1837_v22, %v2659_v43  ;;  %v1950_v29 = vpop.f32.mrf.mxu1  ;;  %v2779_v31 = vadd.f32 %v1073_v18, %v1015_v21  ;;  %v1077_v22 = vld [vmem:[%s2504_s13 + $0xd8] sm:$0xff] }
 0x1b3   : > { %v1839_v32 = vpop.f32.mrf.mxu0 }
 0x1b4   : > { %v1020_v35 = vadd.f32 %v1949_v26, %v859_v25  ;;  %v1840_v36 = vadd.f32 %v1839_v32, %v1838_v24  ;;  %v1951_v38 = vpop.f32.mrf.mxu1  ;;  %1160 = vadd.xlane.f32.xlu1 %v2779_v31 }
 0x1b5   : > { %v1841_v39 = vpop.f32.mrf.mxu0  ;;  %v1952_v45 = vadd.f32 %v1951_v38, %v1950_v29  ;;  %v1078_v38 = vld [vmem:[%s2504_s13 + $0xe0] sm:$0xff] }
 0x1b6   : > { %v862_v44 = vadd.f32 %v1840_v36, %v2659_v43  ;;  %v1953_v47 = vpop.f32.mrf.mxu1  ;;  %v2784_v48 = vadd.f32 %v1074_v34, %v1020_v35 }
 0x1b7   : > { %v1842_v53 = vpop.f32.mrf.mxu0 }
 0x1b8   : > { %v1023_v55 = vadd.f32 %v1952_v45, %v862_v44  ;;  %v1843_v56 = vadd.f32 %v1842_v53, %v1841_v39  ;;  %v1954_v42 = vpop.f32.mrf.mxu1  ;;  %1162 = vadd.xlane.f32.xlu0 %v2784_v48 }
 0x1b9   : > { %v1844_v59 = vpop.f32.mrf.mxu0  ;;  %v1955_v62 = vadd.f32 %v1954_v42, %v1953_v47 }
 0x1ba   : > { %v867_v46 = vadd.f32 %v1843_v56, %v2659_v43  ;;  %v1956_v63 = vpop.f32.mrf.mxu1  ;;  %v2789_v1 = vadd.f32 %v1075_v54, %v1023_v55 }
 0x1bb   : > { %v1845_v2 = vpop.f32.mrf.mxu0 }
 0x1bc   : > { %v1028_v6 = vadd.f32 %v1955_v62, %v867_v46  ;;  %v1846_v9 = vadd.f32 %v1845_v2, %v1844_v59  ;;  %v1957_v10 = vpop.f32.mrf.mxu1  ;;  %1164 = vadd.xlane.f32.xlu1 %v2789_v1  ;;  %v1079_v59 = vld [vmem:[%s2504_s13 + $0xe8] sm:$0xff] }
 0x1bd   : > { %v1847_v11 = vpop.f32.mrf.mxu0  ;;  %v1958_v13 = vadd.f32 %v1957_v10, %v1956_v63 }
 0x1be   : > { %v870_v12 = vadd.f32 %v1846_v9, %v2659_v43  ;;  %v1959_v16 = vpop.f32.mrf.mxu1  ;;  %v2794_v18 = vadd.f32 %v1076_v4, %v1028_v6 }
 0x1bf   : > { %v1848_v21 = vpop.f32.mrf.mxu0 }
 0x1c0   : > { %v1031_v23 = vadd.f32 %v1958_v13, %v870_v12  ;;  %v1849_v24 = vadd.f32 %v1848_v21, %v1847_v11  ;;  %v1960_v25 = vpop.f32.mrf.mxu1  ;;  %1166 = vadd.xlane.f32.xlu0 %v2794_v18  ;;  %v1080_v12 = vld [vmem:[%s2504_s13 + $0xf0] sm:$0xff] }
 0x1c1   : > { %v1850_v26 = vpop.f32.mrf.mxu0  ;;  %v1961_v32 = vadd.f32 %v1960_v25, %v1959_v16  ;;  %v1081_v25 = vld [vmem:[%s2504_s13 + $0xf8] sm:$0xff] }
 0x1c2   : > { %v875_v29 = vadd.f32 %v1849_v24, %v2659_v43  ;;  %v1962_v34 = vpop.f32.mrf.mxu1  ;;  %v2799_v35 = vadd.f32 %v1077_v22, %v1031_v23 }
 0x1c3   : > { %v1851_v36 = vpop.f32.mrf.mxu0 }
 0x1c4   : > { %v1036_v39 = vadd.f32 %v1961_v32, %v875_v29  ;;  %v1852_v44 = vadd.f32 %v1851_v36, %v1850_v26  ;;  %v1963_v45 = vpop.f32.mrf.mxu1  ;;  %1168 = vadd.xlane.f32.xlu1 %v2799_v35 }
 0x1c5   : > { %v1853_v47 = vpop.f32.mrf.mxu0  ;;  %v1964_v54 = vadd.f32 %v1963_v45, %v1962_v34 }
 0x1c6   : > { %v878_v53 = vadd.f32 %v1852_v44, %v2659_v43  ;;  %v1965_v55 = vpop.f32.mrf.mxu1  ;;  %v2804_v56 = vadd.f32 %v1078_v38, %v1036_v39 }
 0x1c7   : > { %v1854_v42 = vpop.f32.mrf.mxu0 }
 0x1c8   : > { %v1039_v46 = vadd.f32 %v1964_v54, %v878_v53  ;;  %v1855_v62 = vadd.f32 %v1854_v42, %v1853_v47  ;;  %v1966_v63 = vpop.f32.mrf.mxu1  ;;  %1170 = vadd.xlane.f32.xlu0 %v2804_v56 }
 0x1c9   : > { %v1856_v2 = vpop.f32.mrf.mxu0  ;;  %v1967_v6 = vadd.f32 %v1966_v63, %v1965_v55 }
 0x1ca   : > { %v883_v4 = vadd.f32 %v1855_v62, %v2659_v43  ;;  %v1968_v9 = vpop.f32.mrf.mxu1  ;;  %v2809_v10 = vadd.f32 %v1079_v59, %v1039_v46 }
 0x1cb   : > { %v1857_v11 = vpop.f32.mrf.mxu0 }
 0x1cc   : > { %v1044_v13 = vadd.f32 %v1967_v6, %v883_v4  ;;  %v1858_v16 = vadd.f32 %v1857_v11, %v1856_v2  ;;  %v1969_v21 = vpop.f32.mrf.mxu1  ;;  %1172 = vadd.xlane.f32.xlu1 %v2809_v10 }
 0x1cd   : > { %v1970_v23 = vadd.f32 %v1969_v21, %v1968_v9 }
 0x1ce   : > { %v886_v22 = vadd.f32 %v1858_v16, %v2659_v43  ;;  %v2814_v24 = vadd.f32 %v1080_v12, %v1044_v13 }
 0x1d0   : > { %v1047_v26 = vadd.f32 %v1970_v23, %v886_v22  ;;  %1174 = vadd.xlane.f32.xlu0 %v2814_v24 }
 0x1d2   : > { %v2818_v29 = vadd.f32 %v1081_v25, %v1047_v26 }
 0x1d4   : > { %1176 = vadd.xlane.f32.xlu1 %v2818_v29 }
 0x1e1   : > { %v1115_v32 = vpop.xlane.xlu0 %1114 }
 0x1e2   : > { %v1179_v34 = vmul.f32 0.0078125, %v1115_v32 }
 0x1e4   : > { %v2822_v36 = vsub.f32 %v2664_v61, %v1179_v34 }
 0x1e5   : > { %v1117_v38 = vpop.xlane.xlu0 %1116 }
 0x1e6   : > { %v1180_v39 = vmul.f32 0.0078125, %v1117_v38  ;;  %v1243_v43 = vmul.f32 %v2822_v36, %v2822_v36 }
 0x1e8   : > { %v2827_v44 = vsub.f32 %v2669_v7, %v1180_v39  ;;  %1275 = vadd.xlane.f32.xlu0 %v1243_v43 }
 0x1e9   : > { %v1119_v45 = vpop.xlane.xlu1 %1118 }
 0x1ea   : > { %v1181_v47 = vmul.f32 0.0078125, %v1119_v45  ;;  %v1244_v53 = vmul.f32 %v2827_v44, %v2827_v44 }
 0x1ec   : > { %v2832_v54 = vsub.f32 %v2674_v17, %v1181_v47  ;;  %1277 = vadd.xlane.f32.xlu1 %v1244_v53 }
 0x1ed   : > { %v1121_v61 = vpop.xlane.xlu1 %1120 }
 0x1ee   : > { %v1182_v55 = vmul.f32 0.0078125, %v1121_v61  ;;  %v1245_v42 = vmul.f32 %v2832_v54, %v2832_v54 }
 0x1f0   : > { %v2837_v59 = vsub.f32 %v2679_v27, %v1182_v55  ;;  %1279 = vadd.xlane.f32.xlu0 %v1245_v42 }
 0x1f1   : > { %v1123_v7 = vpop.xlane.xlu0 %1122 }
 0x1f2   : > { %v1183_v46 = vmul.f32 0.0078125, %v1123_v7  ;;  %v1246_v62 = vmul.f32 %v2837_v59, %v2837_v59 }
 0x1f4   : > { %v2842_v63 = vsub.f32 %v2684_v37, %v1183_v46  ;;  %1281 = vadd.xlane.f32.xlu1 %v1246_v62 }
 0x1f5   : > { %v1125_v17 = vpop.xlane.xlu1 %1124 }
 0x1f6   : > { %v1184_v2 = vmul.f32 0.0078125, %v1125_v17  ;;  %v1247_v4 = vmul.f32 %v2842_v63, %v2842_v63 }
 0x1f8   : > { %v2847_v6 = vsub.f32 %v2689_v52, %v1184_v2  ;;  %1283 = vadd.xlane.f32.xlu0 %v1247_v4 }
 0x1f9   : > { %v1127_v27 = vpop.xlane.xlu0 %1126 }
 0x1fa   : > { %v1185_v9 = vmul.f32 0.0078125, %v1127_v27  ;;  %v1248_v11 = vmul.f32 %v2847_v6, %v2847_v6 }
 0x1fc   : > { %v2852_v12 = vsub.f32 %v2694_v60, %v1185_v9  ;;  %1285 = vadd.xlane.f32.xlu1 %v1248_v11 }
 0x1fd   : > { %v1129_v37 = vpop.xlane.xlu1 %1128 }
 0x1fe   : > { %v1186_v13 = vmul.f32 0.0078125, %v1129_v37  ;;  %v1249_v16 = vmul.f32 %v2852_v12, %v2852_v12 }
 0x200   : > { %v2857_v21 = vsub.f32 %v2699_v8, %v1186_v13  ;;  %1287 = vadd.xlane.f32.xlu0 %v1249_v16 }
 0x201   : > { %v1131_v52 = vpop.xlane.xlu0 %1130 }
 0x202   : > { %v1187_v22 = vmul.f32 0.0078125, %v1131_v52  ;;  %v1250_v23 = vmul.f32 %v2857_v21, %v2857_v21 }
 0x204   : > { %v2862_v25 = vsub.f32 %v2704_v19, %v1187_v22  ;;  %1289 = vadd.xlane.f32.xlu1 %v1250_v23 }
 0x205   : > { %v1133_v60 = vpop.xlane.xlu1 %1132 }
 0x206   : > { %v1188_v26 = vmul.f32 0.0078125, %v1133_v60  ;;  %v1251_v32 = vmul.f32 %v2862_v25, %v2862_v25 }
 0x208   : > { %v2867_v34 = vsub.f32 %v2709_v30, %v1188_v26  ;;  %1291 = vadd.xlane.f32.xlu0 %v1251_v32 }
 0x209   : > { %v1135_v8 = vpop.xlane.xlu0 %1134 }
 0x20a   : > { %v1189_v38 = vmul.f32 0.0078125, %v1135_v8  ;;  %v1252_v39 = vmul.f32 %v2867_v34, %v2867_v34 }
 0x20c   : > { %v2872_v43 = vsub.f32 %v2714_v41, %v1189_v38  ;;  %1293 = vadd.xlane.f32.xlu1 %v1252_v39 }
 0x20d   : > { %v1137_v19 = vpop.xlane.xlu1 %1136 }
 0x20e   : > { %v1190_v45 = vmul.f32 0.0078125, %v1137_v19  ;;  %v1253_v47 = vmul.f32 %v2872_v43, %v2872_v43 }
 0x210   : > { %v2877_v53 = vsub.f32 %v2719_v57, %v1190_v45  ;;  %1295 = vadd.xlane.f32.xlu0 %v1253_v47 }
 0x211   : > { %v1139_v30 = vpop.xlane.xlu0 %1138 }
 0x212   : > { %v1191_v61 = vmul.f32 0.0078125, %v1139_v30  ;;  %v1254_v55 = vmul.f32 %v2877_v53, %v2877_v53 }
 0x214   : > { %v2882_v42 = vsub.f32 %v2724_v3, %v1191_v61  ;;  %1297 = vadd.xlane.f32.xlu1 %v1254_v55 }
 0x215   : > { %v1141_v41 = vpop.xlane.xlu1 %1140 }
 0x216   : > { %v1192_v7 = vmul.f32 0.0078125, %v1141_v41  ;;  %v1255_v46 = vmul.f32 %v2882_v42, %v2882_v42 }
 0x218   : > { %v2887_v62 = vsub.f32 %v2729_v15, %v1192_v7  ;;  %1299 = vadd.xlane.f32.xlu0 %v1255_v46 }
 0x219   : > { %v1143_v57 = vpop.xlane.xlu0 %1142 }
 0x21a   : > { %v1193_v17 = vmul.f32 0.0078125, %v1143_v57  ;;  %v1256_v2 = vmul.f32 %v2887_v62, %v2887_v62 }
 0x21c   : > { %v2892_v4 = vsub.f32 %v2734_v28, %v1193_v17  ;;  %1301 = vadd.xlane.f32.xlu1 %v1256_v2 }
 0x21d   : > { %v1145_v3 = vpop.xlane.xlu1 %1144 }
 0x21e   : > { %v1194_v27 = vmul.f32 0.0078125, %v1145_v3  ;;  %v1257_v9 = vmul.f32 %v2892_v4, %v2892_v4 }
 0x220   : > { %v2897_v11 = vsub.f32 %v2739_v40, %v1194_v27  ;;  %1303 = vadd.xlane.f32.xlu0 %v1257_v9 }
 0x221   : > { %v1147_v15 = vpop.xlane.xlu0 %1146 }
 0x222   : > { %v1195_v37 = vmul.f32 0.0078125, %v1147_v15  ;;  %v1258_v13 = vmul.f32 %v2897_v11, %v2897_v11 }
 0x224   : > { %v2902_v16 = vsub.f32 %v2744_v58, %v1195_v37  ;;  %1305 = vadd.xlane.f32.xlu1 %v1258_v13 }
 0x225   : > { %v1149_v28 = vpop.xlane.xlu1 %1148 }
 0x226   : > { %v1196_v52 = vmul.f32 0.0078125, %v1149_v28  ;;  %v1259_v22 = vmul.f32 %v2902_v16, %v2902_v16 }
 0x228   : > { %v2907_v23 = vsub.f32 %v2749_v5, %v1196_v52  ;;  %1307 = vadd.xlane.f32.xlu0 %v1259_v22 }
 0x229   : > { %v1151_v40 = vpop.xlane.xlu0 %1150 }
 0x22a   : > { %v1197_v60 = vmul.f32 0.0078125, %v1151_v40  ;;  %v1260_v26 = vmul.f32 %v2907_v23, %v2907_v23 }
 0x22c   : > { %v2912_v32 = vsub.f32 %v2754_v20, %v1197_v60  ;;  %1309 = vadd.xlane.f32.xlu1 %v1260_v26 }
 0x22d   : > { %v1153_v58 = vpop.xlane.xlu1 %1152 }
 0x22e   : > { %v1198_v8 = vmul.f32 0.0078125, %v1153_v58  ;;  %v1261_v38 = vmul.f32 %v2912_v32, %v2912_v32 }
 0x230   : > { %v2917_v39 = vsub.f32 %v2759_v33, %v1198_v8  ;;  %1311 = vadd.xlane.f32.xlu0 %v1261_v38 }
 0x231   : > { %v1155_v5 = vpop.xlane.xlu0 %1154 }
 0x232   : > { %v1199_v19 = vmul.f32 0.0078125, %v1155_v5  ;;  %v1262_v45 = vmul.f32 %v2917_v39, %v2917_v39 }
 0x234   : > { %v2922_v47 = vsub.f32 %v2764_v49, %v1199_v19  ;;  %1313 = vadd.xlane.f32.xlu1 %v1262_v45 }
 0x235   : > { %v1157_v20 = vpop.xlane.xlu1 %1156 }
 0x236   : > { %v1200_v30 = vmul.f32 0.0078125, %v1157_v20  ;;  %v1263_v61 = vmul.f32 %v2922_v47, %v2922_v47 }
 0x238   : > { %v2927_v55 = vsub.f32 %v2769_v0, %v1200_v30  ;;  %1315 = vadd.xlane.f32.xlu0 %v1263_v61 }
 0x239   : > { %v1159_v33 = vpop.xlane.xlu0 %1158 }
 0x23a   : > { %v1201_v41 = vmul.f32 0.0078125, %v1159_v33  ;;  %v1264_v7 = vmul.f32 %v2927_v55, %v2927_v55 }
 0x23c   : > { %v2932_v46 = vsub.f32 %v2774_v14, %v1201_v41  ;;  %1317 = vadd.xlane.f32.xlu1 %v1264_v7 }
 0x23d   : > { %v1161_v49 = vpop.xlane.xlu1 %1160 }
 0x23e   : > { %v1202_v57 = vmul.f32 0.0078125, %v1161_v49  ;;  %v1265_v17 = vmul.f32 %v2932_v46, %v2932_v46 }
 0x240   : > { %v2937_v2 = vsub.f32 %v2779_v31, %v1202_v57  ;;  %1319 = vadd.xlane.f32.xlu0 %v1265_v17 }
 0x241   : > { %v1163_v0 = vpop.xlane.xlu0 %1162 }
 0x242   : > { %v1203_v3 = vmul.f32 0.0078125, %v1163_v0  ;;  %v1266_v27 = vmul.f32 %v2937_v2, %v2937_v2 }
 0x244   : > { %v2942_v9 = vsub.f32 %v2784_v48, %v1203_v3  ;;  %1321 = vadd.xlane.f32.xlu1 %v1266_v27 }
 0x245   : > { %v1165_v14 = vpop.xlane.xlu1 %1164 }
 0x246   : > { %v1204_v15 = vmul.f32 0.0078125, %v1165_v14  ;;  %v1267_v37 = vmul.f32 %v2942_v9, %v2942_v9 }
 0x248   : > { %v2947_v13 = vsub.f32 %v2789_v1, %v1204_v15  ;;  %1323 = vadd.xlane.f32.xlu0 %v1267_v37 }
 0x249   : > { %v1167_v31 = vpop.xlane.xlu0 %1166 }
 0x24a   : > { %v1205_v28 = vmul.f32 0.0078125, %v1167_v31  ;;  %v1268_v52 = vmul.f32 %v2947_v13, %v2947_v13 }
 0x24c   : > { %v2952_v22 = vsub.f32 %v2794_v18, %v1205_v28  ;;  %1325 = vadd.xlane.f32.xlu1 %v1268_v52 }
 0x24d   : > { %v1169_v48 = vpop.xlane.xlu1 %1168 }
 0x24e   : > { %v1206_v40 = vmul.f32 0.0078125, %v1169_v48  ;;  %v1269_v60 = vmul.f32 %v2952_v22, %v2952_v22 }
 0x250   : > { %v2957_v26 = vsub.f32 %v2799_v35, %v1206_v40  ;;  %1327 = vadd.xlane.f32.xlu0 %v1269_v60 }
 0x251   : > { %v1171_v1 = vpop.xlane.xlu0 %1170 }
 0x252   : > { %v1207_v58 = vmul.f32 0.0078125, %v1171_v1  ;;  %v1270_v8 = vmul.f32 %v2957_v26, %v2957_v26 }
 0x254   : > { %v2962_v38 = vsub.f32 %v2804_v56, %v1207_v58  ;;  %1329 = vadd.xlane.f32.xlu1 %v1270_v8 }
 0x255   : > { %v1173_v18 = vpop.xlane.xlu1 %1172 }
 0x256   : > { %v1208_v5 = vmul.f32 0.0078125, %v1173_v18  ;;  %v1271_v19 = vmul.f32 %v2962_v38, %v2962_v38 }
 0x258   : > { %v2967_v45 = vsub.f32 %v2809_v10, %v1208_v5  ;;  %1331 = vadd.xlane.f32.xlu0 %v1271_v19 }
 0x259   : > { %v1175_v35 = vpop.xlane.xlu0 %1174 }
 0x25a   : > { %v1209_v20 = vmul.f32 0.0078125, %v1175_v35  ;;  %v1272_v30 = vmul.f32 %v2967_v45, %v2967_v45 }
 0x25c   : > { %v2972_v61 = vsub.f32 %v2814_v24, %v1209_v20  ;;  %1333 = vadd.xlane.f32.xlu1 %v1272_v30 }
 0x25d   : > { %v1177_v56 = vpop.xlane.xlu1 %1176 }
 0x25e   : > { %v1210_v33 = vmul.f32 0.0078125, %v1177_v56  ;;  %v1273_v41 = vmul.f32 %v2972_v61, %v2972_v61 }
 0x260   : > { %v2977_v7 = vsub.f32 %v2818_v29, %v1210_v33  ;;  %1335 = vadd.xlane.f32.xlu0 %v1273_v41 }
 0x262   : > { %v1274_v10 = vmul.f32 %v2977_v7, %v2977_v7 }
 0x264   : > { %1337 = vadd.xlane.f32.xlu1 %v1274_v10 }
 0x271   : > { %v1276_v49 = vpop.xlane.xlu0 %1275 }
 0x272   : > { %v1339_v57 = vmul.f32 0.0078125, %v1276_v49 }
 0x274   : > { %v1371_v17 = vadd.f32 1e-12, %v1339_v57 }
 0x275   : > { %v1278_v0 = vpop.xlane.xlu1 %1277 }
 0x276   : > { %2073 = vrsqrt.f32 %v1371_v17  ;;  %v1340_v24 = vmul.f32 0.0078125, %v1278_v0 }
 0x278   : > { %v1372_v3 = vadd.f32 1e-12, %v1340_v24 }
 0x279   : > { %v1280_v27 = vpop.xlane.xlu0 %1279 }
 0x27a   : > { %2075 = vrsqrt.f32 %v1372_v3  ;;  %v1341_v14 = vmul.f32 0.0078125, %v1280_v27 }
 0x27c   : > { %v1373_v15 = vadd.f32 1e-12, %v1341_v14 }
 0x27d   : > { %v1282_v37 = vpop.xlane.xlu1 %1281 }
 0x27e   : > { %2077 = vrsqrt.f32 %v1373_v15  ;;  %v1342_v29 = vmul.f32 0.0078125, %v1282_v37 }
 0x280   : > { %v1374_v31 = vadd.f32 1e-12, %v1342_v29 }
 0x281   : > { %v1284_v28 = vpop.xlane.xlu0 %1283 }
 0x282   : > { %2079 = vrsqrt.f32 %v1374_v31  ;;  %v1343_v52 = vmul.f32 0.0078125, %v1284_v28 }
 0x283   : > { %v2074_v48 = vpop.eup %2073 }
 0x284   : > { %v1439_v40 = vmul.f32 %v2074_v48, %v2619_v50  ;;  %v1375_v60 = vadd.f32 1e-12, %v1343_v52 }
 0x285   : > { %v1286_v1 = vpop.xlane.xlu1 %1285 }
 0x286   : > { %v1471_v58 = vmul.f32 %v1439_v40, %v2822_v36  ;;  %2081 = vrsqrt.f32 %v1375_v60  ;;  %v1344_v8 = vmul.f32 0.0078125, %v1286_v1 }
 0x287   : > { %v2076_v18 = vpop.eup %2075 }
 0x288   : > { %v1507_v5 = vadd.f32 %v2622_v51, %v1471_v58  ;;  %v1440_v19 = vmul.f32 %v2076_v18, %v2619_v50  ;;  %v1376_v35 = vadd.f32 1e-12, %v1344_v8 }
 0x289   : > { %v1288_v20 = vpop.xlane.xlu0 %1287 }
 0x28a   : > { %1539 = vst [vmem:[%s2987_s26] sm:$0xff] %v1507_v5  ;;  %v1472_v30 = vmul.f32 %v1440_v19, %v2827_v44  ;;  %2083 = vrsqrt.f32 %v1376_v35  ;;  %v1345_v36 = vmul.f32 0.0078125, %v1288_v20 }
 0x28b   : > { %v2078_v56 = vpop.eup %2077 }
 0x28c   : > { %v1508_v33 = vadd.f32 %v2622_v51, %v1472_v30  ;;  %v1441_v41 = vmul.f32 %v2078_v56, %v2619_v50  ;;  %v1377_v10 = vadd.f32 1e-12, %v1345_v36 }
 0x28d   : > { %v1290_v49 = vpop.xlane.xlu1 %1289 }
 0x28e   : > { %1540 = vst [vmem:[%s2987_s26 + $0x8] sm:$0xff] %v1508_v33  ;;  %v1473_v57 = vmul.f32 %v1441_v41, %v2832_v54  ;;  %2085 = vrsqrt.f32 %v1377_v10  ;;  %v1346_v17 = vmul.f32 0.0078125, %v1290_v49 }
 0x28f   : > { %v2080_v0 = vpop.eup %2079 }
 0x290   : > { %v1509_v24 = vadd.f32 %v2622_v51, %v1473_v57  ;;  %v1442_v44 = vmul.f32 %v2080_v0, %v2619_v50  ;;  %v1378_v3 = vadd.f32 1e-12, %v1346_v17 }
 0x291   : > { %v1292_v27 = vpop.xlane.xlu0 %1291 }
 0x292   : > { %1541 = vst [vmem:[%s2987_s26 + $0x10] sm:$0xff] %v1509_v24  ;;  %v1474_v14 = vmul.f32 %v1442_v44, %v2837_v59  ;;  %2087 = vrsqrt.f32 %v1378_v3  ;;  %v1347_v15 = vmul.f32 0.0078125, %v1292_v27 }
 0x293   : > { %v2082_v37 = vpop.eup %2081 }
 0x294   : > { %v1510_v29 = vadd.f32 %v2622_v51, %v1474_v14  ;;  %v1443_v54 = vmul.f32 %v2082_v37, %v2619_v50  ;;  %v1379_v31 = vadd.f32 1e-12, %v1347_v15 }
 0x295   : > { %v1294_v28 = vpop.xlane.xlu1 %1293 }
 0x296   : > { %1542 = vst [vmem:[%s2987_s26 + $0x18] sm:$0xff] %v1510_v29  ;;  %v1475_v52 = vmul.f32 %v1443_v54, %v2842_v63  ;;  %2089 = vrsqrt.f32 %v1379_v31  ;;  %v1348_v48 = vmul.f32 0.0078125, %v1294_v28 }
 0x297   : > { %v2084_v40 = vpop.eup %2083 }
 0x298   : > { %v1511_v60 = vadd.f32 %v2622_v51, %v1475_v52  ;;  %v1444_v59 = vmul.f32 %v2084_v40, %v2619_v50  ;;  %v1380_v1 = vadd.f32 1e-12, %v1348_v48 }
 0x299   : > { %v1296_v58 = vpop.xlane.xlu0 %1295 }
 0x29a   : > { %1543 = vst [vmem:[%s2987_s26 + $0x20] sm:$0xff] %v1511_v60  ;;  %v1476_v8 = vmul.f32 %v1444_v59, %v2847_v6  ;;  %2091 = vrsqrt.f32 %v1380_v1  ;;  %v1349_v18 = vmul.f32 0.0078125, %v1296_v58 }
 0x29b   : > { %v2086_v5 = vpop.eup %2085 }
 0x29c   : > { %v1512_v19 = vadd.f32 %v2622_v51, %v1476_v8  ;;  %v1445_v63 = vmul.f32 %v2086_v5, %v2619_v50  ;;  %v1381_v35 = vadd.f32 1e-12, %v1349_v18 }
 0x29d   : > { %v1298_v20 = vpop.xlane.xlu1 %1297 }
 0x29e   : > { %1544 = vst [vmem:[%s2987_s26 + $0x28] sm:$0xff] %v1512_v19  ;;  %v1477_v30 = vmul.f32 %v1445_v63, %v2852_v12  ;;  %2093 = vrsqrt.f32 %v1381_v35  ;;  %v1350_v36 = vmul.f32 0.0078125, %v1298_v20 }
 0x29f   : > { %v2088_v56 = vpop.eup %2087 }
 0x2a0   : > { %v1513_v33 = vadd.f32 %v2622_v51, %v1477_v30  ;;  %v1446_v6 = vmul.f32 %v2088_v56, %v2619_v50  ;;  %v1382_v41 = vadd.f32 1e-12, %v1350_v36 }
 0x2a1   : > { %v1300_v10 = vpop.xlane.xlu0 %1299 }
 0x2a2   : > { %1545 = vst [vmem:[%s2987_s26 + $0x30] sm:$0xff] %v1513_v33  ;;  %v1478_v49 = vmul.f32 %v1446_v6, %v2857_v21  ;;  %2095 = vrsqrt.f32 %v1382_v41  ;;  %v1351_v57 = vmul.f32 0.0078125, %v1300_v10 }
 0x2a3   : > { %v2090_v17 = vpop.eup %2089 }
 0x2a4   : > { %v1514_v0 = vadd.f32 %v2622_v51, %v1478_v49  ;;  %v1447_v12 = vmul.f32 %v2090_v17, %v2619_v50  ;;  %v1383_v24 = vadd.f32 1e-12, %v1351_v57 }
 0x2a5   : > { %v1302_v44 = vpop.xlane.xlu1 %1301 }
 0x2a6   : > { %1546 = vst [vmem:[%s2987_s26 + $0x38] sm:$0xff] %v1514_v0  ;;  %v1479_v3 = vmul.f32 %v1447_v12, %v2862_v25  ;;  %2097 = vrsqrt.f32 %v1383_v24  ;;  %v1352_v27 = vmul.f32 0.0078125, %v1302_v44 }
 0x2a7   : > { %v2092_v14 = vpop.eup %2091 }
 0x2a8   : > { %v1515_v15 = vadd.f32 %v2622_v51, %v1479_v3  ;;  %v1448_v21 = vmul.f32 %v2092_v14, %v2619_v50  ;;  %v1384_v37 = vadd.f32 1e-12, %v1352_v27 }
 0x2a9   : > { %v1304_v29 = vpop.xlane.xlu0 %1303 }
 0x2aa   : > { %1547 = vst [vmem:[%s2987_s26 + $0x40] sm:$0xff] %v1515_v15  ;;  %v1480_v54 = vmul.f32 %v1448_v21, %v2867_v34  ;;  %2099 = vrsqrt.f32 %v1384_v37  ;;  %v1353_v31 = vmul.f32 0.0078125, %v1304_v29 }
 0x2ab   : > { %v2094_v28 = vpop.eup %2093 }
 0x2ac   : > { %v1516_v52 = vadd.f32 %v2622_v51, %v1480_v54  ;;  %v1449_v25 = vmul.f32 %v2094_v28, %v2619_v50  ;;  %v1385_v48 = vadd.f32 1e-12, %v1353_v31 }
 0x2ad   : > { %v1306_v40 = vpop.xlane.xlu1 %1305 }
 0x2ae   : > { %1548 = vst [vmem:[%s2987_s26 + $0x48] sm:$0xff] %v1516_v52  ;;  %v1481_v60 = vmul.f32 %v1449_v25, %v2872_v43  ;;  %2101 = vrsqrt.f32 %v1385_v48  ;;  %v1354_v59 = vmul.f32 0.0078125, %v1306_v40 }
 0x2af   : > { %v2096_v1 = vpop.eup %2095 }
 0x2b0   : > { %v1517_v58 = vadd.f32 %v2622_v51, %v1481_v60  ;;  %v1450_v34 = vmul.f32 %v2096_v1, %v2619_v50  ;;  %v1386_v8 = vadd.f32 1e-12, %v1354_v59 }
 0x2b1   : > { %v1308_v18 = vpop.xlane.xlu0 %1307 }
 0x2b2   : > { %1549 = vst [vmem:[%s2987_s26 + $0x50] sm:$0xff] %v1517_v58  ;;  %v1482_v5 = vmul.f32 %v1450_v34, %v2877_v53  ;;  %2103 = vrsqrt.f32 %v1386_v8  ;;  %v1355_v19 = vmul.f32 0.0078125, %v1308_v18 }
 0x2b3   : > { %v2098_v63 = vpop.eup %2097 }
 0x2b4   : > { %v1518_v35 = vadd.f32 %v2622_v51, %v1482_v5  ;;  %v1451_v43 = vmul.f32 %v2098_v63, %v2619_v50  ;;  %v1387_v20 = vadd.f32 1e-12, %v1355_v19 }
 0x2b5   : > { %v1310_v30 = vpop.xlane.xlu1 %1309 }
 0x2b6   : > { %1550 = vst [vmem:[%s2987_s26 + $0x58] sm:$0xff] %v1518_v35  ;;  %v1483_v36 = vmul.f32 %v1451_v43, %v2882_v42  ;;  %2105 = vrsqrt.f32 %v1387_v20  ;;  %v1356_v56 = vmul.f32 0.0078125, %v1310_v30 }
 0x2b7   : > { %v2100_v33 = vpop.eup %2099 }
 0x2b8   : > { %v1519_v6 = vadd.f32 %v2622_v51, %v1483_v36  ;;  %v1452_v53 = vmul.f32 %v2100_v33, %v2619_v50  ;;  %v1388_v41 = vadd.f32 1e-12, %v1356_v56 }
 0x2b9   : > { %v1312_v10 = vpop.xlane.xlu0 %1311 }
 0x2ba   : > { %1551 = vst [vmem:[%s2987_s26 + $0x60] sm:$0xff] %v1519_v6  ;;  %v1484_v49 = vmul.f32 %v1452_v53, %v2887_v62  ;;  %2107 = vrsqrt.f32 %v1388_v41  ;;  %v1357_v57 = vmul.f32 0.0078125, %v1312_v10 }
 0x2bb   : > { %v2102_v17 = vpop.eup %2101 }
 0x2bc   : > { %v1520_v0 = vadd.f32 %v2622_v51, %v1484_v49  ;;  %v1453_v42 = vmul.f32 %v2102_v17, %v2619_v50  ;;  %v1389_v12 = vadd.f32 1e-12, %v1357_v57 }
 0x2bd   : > { %v1314_v24 = vpop.xlane.xlu1 %1313 }
 0x2be   : > { %1552 = vst [vmem:[%s2987_s26 + $0x68] sm:$0xff] %v1520_v0  ;;  %v1485_v44 = vmul.f32 %v1453_v42, %v2892_v4  ;;  %2109 = vrsqrt.f32 %v1389_v12  ;;  %v1358_v3 = vmul.f32 0.0078125, %v1314_v24 }
 0x2bf   : > { %v2104_v27 = vpop.eup %2103 }
 0x2c0   : > { %v1521_v14 = vadd.f32 %v2622_v51, %v1485_v44  ;;  %v1454_v62 = vmul.f32 %v2104_v27, %v2619_v50  ;;  %v1390_v15 = vadd.f32 1e-12, %v1358_v3 }
 0x2c1   : > { %v1316_v21 = vpop.xlane.xlu0 %1315 }
 0x2c2   : > { %1553 = vst [vmem:[%s2987_s26 + $0x70] sm:$0xff] %v1521_v14  ;;  %v1486_v37 = vmul.f32 %v1454_v62, %v2897_v11  ;;  %2111 = vrsqrt.f32 %v1390_v15  ;;  %v1359_v29 = vmul.f32 0.0078125, %v1316_v21 }
 0x2c3   : > { %v2106_v54 = vpop.eup %2105 }
 0x2c4   : > { %v1522_v31 = vadd.f32 %v2622_v51, %v1486_v37  ;;  %v1455_v4 = vmul.f32 %v2106_v54, %v2619_v50  ;;  %v1391_v28 = vadd.f32 1e-12, %v1359_v29 }
 0x2c5   : > { %v1318_v52 = vpop.xlane.xlu1 %1317 }
 0x2c6   : > { %1554 = vst [vmem:[%s2987_s26 + $0x78] sm:$0xff] %v1522_v31  ;;  %v1487_v25 = vmul.f32 %v1455_v4, %v2902_v16  ;;  %2113 = vrsqrt.f32 %v1391_v28  ;;  %v1360_v48 = vmul.f32 0.0078125, %v1318_v52 }
 0x2c7   : > { %v2108_v40 = vpop.eup %2107 }
 0x2c8   : > { %v1523_v60 = vadd.f32 %v2622_v51, %v1487_v25  ;;  %v1456_v11 = vmul.f32 %v2108_v40, %v2619_v50  ;;  %v1392_v59 = vadd.f32 1e-12, %v1360_v48 }
 0x2c9   : > { %v1320_v1 = vpop.xlane.xlu0 %1319 }
 0x2ca   : > { %1555 = vst [vmem:[%s2987_s26 + $0x80] sm:$0xff] %v1523_v60  ;;  %v1488_v58 = vmul.f32 %v1456_v11, %v2907_v23  ;;  %2115 = vrsqrt.f32 %v1392_v59  ;;  %v1361_v34 = vmul.f32 0.0078125, %v1320_v1 }
 0x2cb   : > { %v2110_v8 = vpop.eup %2109 }
 0x2cc   : > { %v1524_v18 = vadd.f32 %v2622_v51, %v1488_v58  ;;  %v1457_v16 = vmul.f32 %v2110_v8, %v2619_v50  ;;  %v1393_v5 = vadd.f32 1e-12, %v1361_v34 }
 0x2cd   : > { %v1322_v19 = vpop.xlane.xlu1 %1321 }
 0x2ce   : > { %1556 = vst [vmem:[%s2987_s26 + $0x88] sm:$0xff] %v1524_v18  ;;  %v1489_v63 = vmul.f32 %v1457_v16, %v2912_v32  ;;  %2117 = vrsqrt.f32 %v1393_v5  ;;  %v1362_v35 = vmul.f32 0.0078125, %v1322_v19 }
 0x2cf   : > { %v2112_v43 = vpop.eup %2111 }
 0x2d0   : > { %v1525_v20 = vadd.f32 %v2622_v51, %v1489_v63  ;;  %v1458_v23 = vmul.f32 %v2112_v43, %v2619_v50  ;;  %v1394_v30 = vadd.f32 1e-12, %v1362_v35 }
 0x2d1   : > { %v1324_v36 = vpop.xlane.xlu0 %1323 }
 0x2d2   : > { %1557 = vst [vmem:[%s2987_s26 + $0x90] sm:$0xff] %v1525_v20  ;;  %v1490_v56 = vmul.f32 %v1458_v23, %v2917_v39  ;;  %2119 = vrsqrt.f32 %v1394_v30  ;;  %v1363_v33 = vmul.f32 0.0078125, %v1324_v36 }
 0x2d3   : > { %v2114_v6 = vpop.eup %2113 }
 0x2d4   : > { %v1526_v53 = vadd.f32 %v2622_v51, %v1490_v56  ;;  %v1459_v32 = vmul.f32 %v2114_v6, %v2619_v50  ;;  %v1395_v41 = vadd.f32 1e-12, %v1363_v33 }
 0x2d5   : > { %v1326_v10 = vpop.xlane.xlu1 %1325 }
 0x2d6   : > { %1558 = vst [vmem:[%s2987_s26 + $0x98] sm:$0xff] %v1526_v53  ;;  %v1491_v49 = vmul.f32 %v1459_v32, %v2922_v47  ;;  %2121 = vrsqrt.f32 %v1395_v41  ;;  %v1364_v57 = vmul.f32 0.0078125, %v1326_v10 }
 0x2d7   : > { %v2116_v17 = vpop.eup %2115 }
 0x2d8   : > { %v1527_v0 = vadd.f32 %v2622_v51, %v1491_v49  ;;  %v1460_v39 = vmul.f32 %v2116_v17, %v2619_v50  ;;  %v1396_v42 = vadd.f32 1e-12, %v1364_v57 }
 0x2d9   : > { %v1328_v12 = vpop.xlane.xlu0 %1327 }
 0x2da   : > { %1559 = vst [vmem:[%s2987_s26 + $0xa0] sm:$0xff] %v1527_v0  ;;  %v1492_v24 = vmul.f32 %v1460_v39, %v2927_v55  ;;  %2123 = vrsqrt.f32 %v1396_v42  ;;  %v1365_v44 = vmul.f32 0.0078125, %v1328_v12 }
 0x2db   : > { %v2118_v3 = vpop.eup %2117 }
 0x2dc   : > { %v1528_v27 = vadd.f32 %v2622_v51, %v1492_v24  ;;  %v1461_v47 = vmul.f32 %v2118_v3, %v2619_v50  ;;  %v1397_v14 = vadd.f32 1e-12, %v1365_v44 }
 0x2dd   : > { %v1330_v62 = vpop.xlane.xlu1 %1329 }
 0x2de   : > { %1560 = vst [vmem:[%s2987_s26 + $0xa8] sm:$0xff] %v1528_v27  ;;  %v1493_v15 = vmul.f32 %v1461_v47, %v2932_v46  ;;  %2125 = vrsqrt.f32 %v1397_v14  ;;  %v1366_v21 = vmul.f32 0.0078125, %v1330_v62 }
 0x2df   : > { %v2120_v37 = vpop.eup %2119 }
 0x2e0   : > { %v1529_v29 = vadd.f32 %v2622_v51, %v1493_v15  ;;  %v1462_v55 = vmul.f32 %v2120_v37, %v2619_v50  ;;  %v1398_v54 = vadd.f32 1e-12, %v1366_v21 }
 0x2e1   : > { %v1332_v31 = vpop.xlane.xlu0 %1331 }
 0x2e2   : > { %1561 = vst [vmem:[%s2987_s26 + $0xb0] sm:$0xff] %v1529_v29  ;;  %v1494_v4 = vmul.f32 %v1462_v55, %v2937_v2  ;;  %2127 = vrsqrt.f32 %v1398_v54  ;;  %v1367_v28 = vmul.f32 0.0078125, %v1332_v31 }
 0x2e3   : > { %v2122_v52 = vpop.eup %2121 }
 0x2e4   : > { %v1530_v25 = vadd.f32 %v2622_v51, %v1494_v4  ;;  %v1463_v46 = vmul.f32 %v2122_v52, %v2619_v50  ;;  %v1399_v48 = vadd.f32 1e-12, %v1367_v28 }
 0x2e5   : > { %v1334_v40 = vpop.xlane.xlu1 %1333 }
 0x2e6   : > { %1562 = vst [vmem:[%s2987_s26 + $0xb8] sm:$0xff] %v1530_v25  ;;  %v1495_v60 = vmul.f32 %v1463_v46, %v2942_v9  ;;  %2129 = vrsqrt.f32 %v1399_v48  ;;  %v1368_v11 = vmul.f32 0.0078125, %v1334_v40 }
 0x2e7   : > { %v2124_v59 = vpop.eup %2123 }
 0x2e8   : > { %v1531_v1 = vadd.f32 %v2622_v51, %v1495_v60  ;;  %v1464_v2 = vmul.f32 %v2124_v59, %v2619_v50  ;;  %v1400_v58 = vadd.f32 1e-12, %v1368_v11 }
 0x2e9   : > { %v1336_v34 = vpop.xlane.xlu0 %1335 }
 0x2ea   : > { %1563 = vst [vmem:[%s2987_s26 + $0xc0] sm:$0xff] %v1531_v1  ;;  %v1496_v8 = vmul.f32 %v1464_v2, %v2947_v13  ;;  %2131 = vrsqrt.f32 %v1400_v58  ;;  %v1369_v18 = vmul.f32 0.0078125, %v1336_v34 }
 0x2eb   : > { %v2126_v16 = vpop.eup %2125 }
 0x2ec   : > { %v1532_v5 = vadd.f32 %v2622_v51, %v1496_v8  ;;  %v1465_v9 = vmul.f32 %v2126_v16, %v2619_v50  ;;  %v1401_v19 = vadd.f32 1e-12, %v1369_v18 }
 0x2ed   : > { %v1338_v63 = vpop.xlane.xlu1 %1337 }
 0x2ee   : > { %1564 = vst [vmem:[%s2987_s26 + $0xc8] sm:$0xff] %v1532_v5  ;;  %v1497_v35 = vmul.f32 %v1465_v9, %v2952_v22  ;;  %2133 = vrsqrt.f32 %v1401_v19  ;;  %v1370_v43 = vmul.f32 0.0078125, %v1338_v63 }
 0x2ef   : > { %v2128_v20 = vpop.eup %2127 }
 0x2f0   : > { %v1533_v13 = vadd.f32 %v2622_v51, %v1497_v35  ;;  %v1466_v23 = vmul.f32 %v2128_v20, %v2619_v50  ;;  %v1402_v30 = vadd.f32 1e-12, %v1370_v43 }
 0x2f2   : > { %1565 = vst [vmem:[%s2987_s26 + $0xd0] sm:$0xff] %v1533_v13  ;;  %v1498_v36 = vmul.f32 %v1466_v23, %v2957_v26  ;;  %2135 = vrsqrt.f32 %v1402_v30 }
 0x2f3   : > { %v2130_v56 = vpop.eup %2129 }
 0x2f4   : > { %v1534_v33 = vadd.f32 %v2622_v51, %v1498_v36  ;;  %v1467_v6 = vmul.f32 %v2130_v56, %v2619_v50 }
 0x2f6   : > { %1566 = vst [vmem:[%s2987_s26 + $0xd8] sm:$0xff] %v1534_v33  ;;  %v1499_v22 = vmul.f32 %v1467_v6, %v2962_v38 }
 0x2f7   : > { %v2132_v53 = vpop.eup %2131 }
 0x2f8   : > { %v1535_v32 = vadd.f32 %v2622_v51, %v1499_v22  ;;  %v1468_v41 = vmul.f32 %v2132_v53, %v2619_v50 }
 0x2fa   : > { %1567 = vst [vmem:[%s2987_s26 + $0xe0] sm:$0xff] %v1535_v32  ;;  %v1500_v26 = vmul.f32 %v1468_v41, %v2967_v45 }
 0x2fb   : > { %v2134_v10 = vpop.eup %2133 }
 0x2fc   : > { %v1536_v49 = vadd.f32 %v2622_v51, %v1500_v26  ;;  %v1469_v57 = vmul.f32 %v2134_v10, %v2619_v50 }
 0x2fe   : > { %1568 = vst [vmem:[%s2987_s26 + $0xe8] sm:$0xff] %v1536_v49  ;;  %v1501_v38 = vmul.f32 %v1469_v57, %v2972_v61 }
 0x2ff   : > { %v2136_v17 = vpop.eup %2135 }
 0x300   : > { %v1537_v0 = vadd.f32 %v2622_v51, %v1501_v38  ;;  %v1470_v39 = vmul.f32 %v2136_v17, %v2619_v50 }
 0x302   : > { %1569 = vst [vmem:[%s2987_s26 + $0xf0] sm:$0xff] %v1537_v0  ;;  %v1502_v45 = vmul.f32 %v1470_v39, %v2977_v7 }
 0x304   : > { %v1538_v61 = vadd.f32 %v2622_v51, %v1502_v45 }
 0x306   : > { %1570 = vst [vmem:[%s2987_s26 + $0xf8] sm:$0xff] %v1538_v61 }
 0x307   : > { %2232 = shalt.err (!%p2229_p10)
}
 0x308   : > { %s2233_s11 = scalar_lea.hbm %s3116_s7, 4096  ;;  %s2237_s23 = scalar_lea.hbm %s3167_s4, 8192 }
 0x309   : > { %p2234_p1 = scmp.ne.s32.totalorder %s3116_s7, %s2233_s11  ;;  %p2238_p7 = scmp.lt.s32.totalorder %s3116_s7, %s3167_s4 }
 0x30a   : > { %p2239_p8 = scmp.lt.s32.totalorder %s2237_s23, %s2233_s11 }
 0x30b   : > { %p2235_p4 = pnand %p2234_p1, %p3185_p12 }
 0x30c   : > { %p2240_p11 = por %p2239_p8, %p2238_p7 }
 0x30d   : > { %p2236_p3 = pneg %p2235_p4 }
 0x30f   : > { %p2241_p6 = pnand %p2240_p11, %p2236_p3 }
 0x311   : > { %2244 = shalt.err (!%p2241_p6)
}
 0x312   : > { %s2303_s21 = smov 128   ;;  %s2304_s25 = smov 8  }
 0x313   : > { %1979 = dma.vmem_to_hbm [thread:$0]  (%p3185_p12), %s3118_s30, 4096, %s3116_s7, %s1572_s8, %s2303_s21, %s2303_s21, %s2304_s25  }
 0x314 PF: > { %s1600_s26 = sand.u32 1, %s2279_s15   ;;  %p3186_p2 = scmp.ne.s32.totalorder %s3174_s22, 0 }
 0x315   : > { %p3187_p13 = scmp.ge.s32.totalorder %s2291_s18, 2  ;;  %s1601_s29 = scalar_lea.sflag [#allocation4], %s1600_s26 }
 0x317   : > { %p1993_p0 = pnand %p3187_p13, %p3186_p2 }
 0x319   : > { %p1994_p5 = pneg %p1993_p0 }
 0x31b   : > { %2274 = dma.done.wait (%p1994_p5), %s1601_s29, 4096  }
 0x31c   : > { %2276 = vsyncadd (%p1994_p5), %s1601_s29, 4294963200  ;;  %p20_p9 = scmp.ge.s32.totalorder %s2384_s27, 4   ;;  %s3188_s15 = smov %s2283_s16 }
 0x31d   : > { %s3189_s16 = smov %s2287_s17  ;;  %s3190_s17 = smov %s2401_s9 }
 0x31e   : > { %s3191_s18 = smov %s2384_s27  ;;  %22 = sbr.rel (!%p20_p9) target bundleno = 10 (0xa), region = 98 }
 0x323   :  { %1606 = vsyncpa [#allocation3], 1 }
 0x324   :  { %1608 = vsyncpa [#allocation3 + $0x1], 1 }
 0x325   :  { %1609 = vsyncpa [#allocation6], 1 }
 0x326   :  { %1611 = vsyncpa [#allocation6 + $0x1], 1 }
 0x327   :  { %1612 = vsyncpa [#allocation4], 1 }
 0x328   :  { %1614 = vsyncpa [#allocation4 + $0x1], 1 }

// kernel: tpu_custom_call.1
= control target key start
LH: loop header
LB: loop body
LE: loop exit
PB: predicated region body
PF: predicated region fallthrough
CT: control target
= control target key end

     0   :  { %s3163_s0 = inlined_call_operand.hbm [shape: f32[512,512], index: 0, kind: input, shape index: {}]   ;;  %s3164_s1 = inlined_call_operand.hbm [shape: f32[512,128], index: 1, kind: input, shape index: {}]   ;;  %s3165_s2 = inlined_call_operand.hbm [shape: bf16[512,128], index: 2, kind: input, shape index: {}]   ;;  %s3166_s3 = inlined_call_operand.vmem [shape: f32[3,128], index: 3, kind: input, shape index: {}]   ;;  %s3167_s4 = inlined_call_operand.hbm [shape: f32[512,128], index: 4, kind: output, shape index: {}]  }
   0x1   :  { %3171 = sst [smem:[#allocation13_spill]] %s3163_s0 }
   0x2   :  { %3172 = sst [smem:[#allocation14_spill]] %s3165_s2 }
   0x3   :  { %9 = vsyncpa [#allocation3], 0 }
   0x4   :  { %11 = vsyncpa [#allocation3 + $0x1], 0 }
   0x5   :  { %12 = vsyncpa [#allocation6], 0 }
   0x6   :  { %14 = vsyncpa [#allocation6 + $0x1], 0 }
   0x7   :  { %15 = vsyncpa [#allocation4], 0 }
   0x8   :  { %17 = vsyncpa [#allocation4 + $0x1], 0  ;;  %s2330_s15 = smov 0   ;;  %s2332_s16 = smov 0  }
   0x9   :  { %s2334_s17 = smov 0   ;;  %s2336_s18 = smov 0  }
   0xa LB: > { %s2351_s19 = sadd.s32 4294967295, %s2291_s18   ;;  %s1690_s20 = sadd.s32 4294967294, %s2291_s18   ;;  %s2291_s18 = sphi %s2336_s18, %s3191_s18   ;;  %s2287_s17 = sphi %s2334_s17, %s3190_s17   ;;  %s2283_s16 = sphi %s2332_s16, %s3189_s16   ;;  %s2279_s15 = sphi %s2330_s15, %s3188_s15  }
   0xb   : > { %p43_p0 = scmp.ne.s32.totalorder %s2283_s16, %s2279_s15  ;;  %p3168_p1 = scmp.eq.s32.totalorder %s2351_s19, 0 }
   0xc   : > { %p141_p3 = scmp.eq.s32.totalorder %s1690_s20, 1  ;;  %p1691_p5 = scmp.ge.s32.totalorder %s2291_s18, 1 }
   0xd   : > { %p2360_p4 = por %p3168_p1, %p43_p0  ;;  %p148_p7 = scmp.lt.s32.totalorder %s2291_s18, 3 }
   0xe   : > { %p2365_p6 = por %p141_p3, %p43_p0  ;;  %s2293_s24 = smov [#allocation7]  }
   0xf   : > { %s3173_s21 = scalar_select %p2360_p4, 1, 0 }
  0x10   : > { %s3174_s22 = scalar_select %p2365_p6, 1, 0 }
  0x11   : > { %p2370_p8 = pnand %p1691_p5, %p148_p7  ;;  %s160_s25 = sshll.u32 %s2293_s24, 4  ;;  %s161_s25 = int_to_ptr.vmem [resolvable:$true] %s160_s25 }
  0x12   : > { %s2384_s27 = sadd.s32 1, %s2291_s18   ;;  %s30_s28 = sadd.s32 1, %s2287_s17 }
  0x13   : > { %p1981_p9 = pneg %p2370_p8  ;;  %s27_s29 = ssub.s32 %s2291_s18, %s2384_s27 }
  0x14   : > { %s2148_s30 = scalar_lea.vmem %s161_s25, 4096  ;;  %p2156_p5 = scmp.lt.s32.totalorder %s161_s25, %s161_s25 }
  0x15   : > { %p2379_p11 = pnand %p1981_p9, %p3168_p1  ;;  %p2149_p13 = scmp.ne.s32.totalorder %s161_s25, %s2148_s30 }
  0x16   : > { %p2157_p7 = scmp.lt.s32.totalorder %s2148_s30, %s2148_s30 }
  0x17   : > { %p2139_p12 = pneg %p2379_p11 }
  0x18   : > { %p2158_p10 = por %p2157_p7, %p2156_p5 }
  0x19   : > { %p2151_p0 = pnand %p2149_p13, %p2139_p12 }
  0x1b   : > { %p2152_p3 = pneg %p2151_p0 }
  0x1d   : > { %p2159_p2 = pnand %p2158_p10, %p2152_p3 }
  0x1f   : > { %2162 = shalt.err (!%p2159_p2)
}
  0x20   : > { %s2294_s5 = smov 64   ;;  %s2295_s6 = smov 4  }
  0x21   : > { %s3177_s2 = sld [smem:[#allocation14_spill]]  ;;  %p28_p9 = scmp.eq.s32.totalorder %s27_s29, 0 }
  0x22   : > { %p37_p12 = scmp.ne.s32.totalorder %s2287_s17, %s2283_s16  ;;  %p38_p10 = scmp.eq.s32.totalorder %s2291_s18, 0 }
  0x23   : > { %p1997_p2 = scmp.lt.s32.totalorder %s2291_s18, 2  ;;  %p3178_p0 = scmp.eq.s32.totalorder %s2351_s19, 1 }
  0x24   : > { %s2401_s9 = scalar_select %p28_p9, %s2287_s17, %s30_s28  }
  0x25   : > { %p39_p13 = por %p38_p10, %p37_p12  ;;  %p2405_p3 = por %p3178_p0, %p37_p12 }
  0x26   : > { %s2410_s11 = sand.u32 1, %s2287_s17   ;;  %s1744_s12 = sshll.u32 %s2291_s18, 14 }
  0x27   : > { %1984 = dma.hbm_to_vmem [thread:$0]  (!%p2379_p11), %s3177_s2, 4096, %s161_s25, [#allocation6], %s2294_s5, %s2294_s5, %s2295_s6  }
  0x28   : > { %s3179_s10 = scalar_select %p2405_p3, 1, 0 }
  0x29   : > { %s1694_s13 = sshll.u32 %s2410_s11, 10  ;;  %s3180_s0 = sld [smem:[#allocation13_spill]] }
  0x2a   : > { %s181_s25 = scalar_lea.vmem [#allocation2], %s1694_s13  ;;  %p2419_p11 = pnand %p1997_p2, %p39_p13 }
  0x2b   : > { %s189_s26 = sshll.u32 %s181_s25, 4  ;;  %s178_s29 = scalar_lea.sflag [#allocation3], %s2410_s11  ;;  %s2423_s26 = int_to_ptr.vmem [resolvable:$true] %s189_s26 }
  0x2c   : > { %p2165_p7 = pneg %p2419_p11 }
  0x2f   : > { %s2417_s24 = scalar_lea.hbm %s3180_s0, %s1744_s12  ;;  %s2168_s7 = scalar_lea.hbm %s3180_s0, 32768 }
  0x30   : > { %s2163_s30 = scalar_lea.hbm %s2417_s24, 16384  ;;  %p2169_p10 = scmp.lt.s32.totalorder %s2417_s24, %s3180_s0 }
  0x31   : > { %p2164_p5 = scmp.ne.s32.totalorder %s2417_s24, %s2163_s30  ;;  %p2170_p2 = scmp.lt.s32.totalorder %s2168_s7, %s2163_s30 }
  0x33   : > { %p2166_p9 = pnand %p2165_p7, %p2164_p5  ;;  %p2171_p13 = por %p2170_p2, %p2169_p10 }
  0x35   : > { %p2167_p12 = pneg %p2166_p9 }
  0x37   : > { %p2172_p0 = pnand %p2171_p13, %p2167_p12 }
  0x39   : > { %2175 = shalt.err (!%p2172_p0)
}
  0x3a   : > { %s2176_s13 = scalar_lea.vmem %s2423_s26, 16384  ;;  %s2296_s14 = smov [#allocation2]  }
  0x3b   : > { %p2177_p1 = scmp.ne.s32.totalorder %s2423_s26, %s2176_s13  ;;  %s2181_s20 = sshll.u32 %s2296_s14, 4  ;;  %s2182_s20 = int_to_ptr.vmem [resolvable:$false] %s2181_s20 }
  0x3c   : > { %s2183_s25 = scalar_lea.vmem %s2182_s20, 32768  ;;  %p2184_p6 = scmp.lt.s32.totalorder %s2423_s26, %s2182_s20 }
  0x3d   : > { %p2179_p5 = pnand %p2177_p1, %p2165_p7  ;;  %p2185_p3 = scmp.lt.s32.totalorder %s2183_s25, %s2176_s13 }
  0x3f   : > { %p2180_p9 = pneg %p2179_p5  ;;  %p2186_p4 = por %p2185_p3, %p2184_p6 }
  0x41   : > { %p2187_p10 = pnand %p2186_p4, %p2180_p9 }
  0x43   : > { %2190 = shalt.err (!%p2187_p10)
}
  0x44   : > { %s2297_s30 = smov 512   ;;  %s2298_s5 = smov 32  }
  0x45   : > { %1988 = dma.hbm_to_vmem [thread:$0]  (!%p2419_p11), %s2417_s24, 16384, %s2423_s26, %s178_s29, %s2297_s30, %s2297_s30, %s2298_s5  }
  0x46   : > { %s199_s6 = sand.u32 1, %s2291_s18   ;;  %s1698_s7 = sshll.u32 %s2410_s11, 8 }
  0x47   : > { %s1745_s8 = sshll.u32 %s2291_s18, 12  ;;  %s203_s12 = scalar_lea.vmem [#allocation5], %s1698_s7 }
  0x48   : > { %s210_s13 = sshll.u32 %s203_s12, 4  ;;  %s2458_s25 = scalar_lea.hbm %s3164_s1, %s1745_s8  ;;  %s2460_s13 = int_to_ptr.vmem [resolvable:$true] %s210_s13 }
  0x49   : > { %s2462_s0 = scalar_lea.sflag [#allocation6], %s199_s6  ;;  %s2191_s2 = scalar_lea.hbm %s2458_s25, 4096 }
  0x4a   : > { %p2192_p1 = scmp.ne.s32.totalorder %s2458_s25, %s2191_s2  ;;  %s2196_s26 = scalar_lea.hbm %s3164_s1, 8192 }
  0x4b   : > { %p2197_p3 = scmp.lt.s32.totalorder %s2458_s25, %s3164_s1  ;;  %p2198_p12 = scmp.lt.s32.totalorder %s2196_s26, %s2191_s2 }
  0x4c   : > { %p2194_p4 = pnand %p2192_p1, %p2165_p7 }
  0x4d   : > { %p2199_p2 = por %p2198_p12, %p2197_p3 }
  0x4e   : > { %p2195_p6 = pneg %p2194_p4 }
  0x50   : > { %p2200_p13 = pnand %p2199_p2, %p2195_p6 }
  0x52   : > { %2203 = shalt.err (!%p2200_p13)
}
  0x53   : > { %s2204_s5 = scalar_lea.vmem %s2460_s13, 4096  ;;  %s2299_s6 = smov [#allocation5]  }
  0x54   : > { %p2205_p0 = scmp.ne.s32.totalorder %s2460_s13, %s2204_s5  ;;  %s2209_s7 = sshll.u32 %s2299_s6, 4  ;;  %s2210_s7 = int_to_ptr.vmem [resolvable:$false] %s2209_s7 }
  0x55   : > { %s2211_s8 = scalar_lea.vmem %s2210_s7, 8192  ;;  %p2212_p10 = scmp.lt.s32.totalorder %s2460_s13, %s2210_s7 }
  0x56   : > { %p2207_p5 = pnand %p2205_p0, %p2165_p7  ;;  %p2213_p1 = scmp.lt.s32.totalorder %s2211_s8, %s2204_s5 }
  0x58   : > { %p2208_p9 = pneg %p2207_p5  ;;  %p2214_p4 = por %p2213_p1, %p2212_p10 }
  0x5a   : > { %p2215_p3 = pnand %p2214_p4, %p2208_p9 }
  0x5c   : > { %2218 = shalt.err (!%p2215_p3)
}
  0x5d   : > { %s2300_s2 = smov 128   ;;  %s2301_s12 = smov 8  }
  0x5e   : > { %1991 = dma.hbm_to_vmem [thread:$0]  (!%p2419_p11), %s2458_s25, 4096, %s2460_s13, %s2462_s0, %s2300_s2, %s2300_s2, %s2301_s12  }
  0x5f   : > { %222 = sbr.rel (%p2370_p8) target bundleno = 788 (0x314), region = 36  ;;  %s2490_s14 = sand.u32 (!%p2370_p8), 1, %s2283_s16  }
  0x60   : > { %s1702_s20 = sshll.u32 (!%p2370_p8), %s2490_s14, 10  ;;  %s225_s11 = scalar_lea.sflag (!%p2370_p8), [#allocation3], %s2490_s14 }
  0x61   : > { %s2494_s24 = scalar_lea.vmem (!%p2370_p8), [#allocation2], %s1702_s20  ;;  %p3182_p7 = scmp.ne.s32.totalorder (!%p2370_p8), %s3173_s21, 0 }
  0x64   : > { %2262 = dma.done.wait (%p3182_p7), %s225_s11, 16384  }
  0x65   : > { %2264 = vsyncadd (%p3182_p7), %s225_s11, 4294950912  ;;  %s233_s0 = sand.u32 1, %s2351_s19   ;;  %s1703_s23 = sshll.u32 %s2490_s14, 8 }
  0x66   : > { %s234_s28 = scalar_lea.sflag [#allocation6], %s233_s0  ;;  %s2504_s13 = scalar_lea.vmem [#allocation5], %s1703_s23 }
  0x67   : > { %2266 = dma.done.wait (%p3182_p7), %s234_s28, 4096  }
  0x68   : > { %2268 = vsyncadd (%p3182_p7), %s234_s28, 4294963200  ;;  %p3183_p8 = scmp.eq.s32.totalorder %s2351_s19, 0 }
  0x6a   : > { %2270 = dma.done.wait (%p3183_p8), [#allocation6], 4096   ;;  %p3184_p11 = pmov %p3183_p8 }
  0x6b   : > { %v2041_v0 = vld [vmem:[#allocation7 + $0x78] sm:$0xff]   ;;  %v2045_v4 = vld [vmem:[#allocation7 + $0x70] sm:$0xff]   ;;  %v2049_v8 = vld [vmem:[#allocation7 + $0x68] sm:$0xff]   ;;  %s2987_s26 = scalar_lea.vmem [#allocation8], %s1703_s23  ;;  %s1746_s29 = sshll.u32 %s2351_s19, 12 }
  0x6c   : > { %2272 = vsyncadd (%p3184_p11), [#allocation6], 4294963200  ;;  %v2042_v1 = vld [vmem:[#allocation7 + $0xf8] sm:$0xff]   ;;  %1747 = vmatprep.subr.bf16.mxu0 %v2041_v0  ;;  %v2046_v5 = vld [vmem:[#allocation7 + $0xf0] sm:$0xff]   ;;  %s1585_s30 = sshll.u32 %s2987_s26, 4  ;;  %s3116_s7 = scalar_lea.hbm %s3167_s4, %s1746_s29  ;;  %s3118_s30 = int_to_ptr.vmem [resolvable:$true] %s1585_s30 }
  0x6d   : > { %v2043_v2 = vld [vmem:[#allocation7 + $0x38] sm:$0xff]   ;;  %1859 = vmatprep.subr.bf16.mxu1 %v2042_v1  ;;  %v2047_v6 = vld [vmem:[#allocation7 + $0x30] sm:$0xff]   ;;  %v2050_v9 = vld [vmem:[#allocation7 + $0xe8] sm:$0xff]   ;;  %s1572_s8 = scalar_lea.sflag [#allocation4], %s2490_s14  ;;  %s2219_s2 = scalar_lea.vmem %s3118_s30, 4096 }
  0x6e   : > { %v2044_v3 = vld [vmem:[#allocation7 + $0xb8] sm:$0xff]   ;;  %1748 = vmatpush3.bf16.msra.mxu0 %v2043_v2  ;;  %v2048_v7 = vld [vmem:[#allocation7 + $0xb0] sm:$0xff]   ;;  %v2051_v10 = vld [vmem:[#allocation7 + $0x28] sm:$0xff]   ;;  %p2220_p6 = scmp.ne.s32.totalorder %s3118_s30, %s2219_s2  ;;  %p3185_p12 = scmp.ne.s32.totalorder %s3179_s10, 0 }
  0x6f   : > { %1860 = vmatpush3.bf16.msra.mxu1 %v2044_v3  ;;  %1749 = vmatprep.subr.bf16.mxu0 %v2045_v4  ;;  %v2052_v11 = vld [vmem:[#allocation7 + $0xa8] sm:$0xff]   ;;  %v2053_v12 = vld [vmem:[#allocation7 + $0x60] sm:$0xff]   ;;  %v2057_v16 = vld [vmem:[#allocation7 + $0x58] sm:$0xff]   ;;  %s2302_s19 = smov [#allocation8]  }
  0x70   : > { %1861 = vmatprep.subr.bf16.mxu1 %v2046_v5  ;;  %v2054_v13 = vld [vmem:[#allocation7 + $0xe0] sm:$0xff]   ;;  %v2058_v17 = vld [vmem:[#allocation7 + $0xd8] sm:$0xff]   ;;  %v2061_v20 = vld [vmem:[#allocation7 + $0x50] sm:$0xff]   ;;  %p2221_p2 = pnand %p2220_p6, %p3185_p12  ;;  %s2223_s12 = sshll.u32 %s2302_s19, 4  ;;  %s2224_s12 = int_to_ptr.vmem [resolvable:$false] %s2223_s12 }
  0x71   : > { %v2055_v14 = vld [vmem:[#allocation7 + $0x20] sm:$0xff]   ;;  %v2059_v18 = vld [vmem:[#allocation7 + $0x18] sm:$0xff]   ;;  %v2062_v21 = vld [vmem:[#allocation7 + $0xd0] sm:$0xff]   ;;  %s2225_s20 = scalar_lea.vmem %s2224_s12, 8192  ;;  %p2226_p0 = scmp.lt.s32.totalorder %s3118_s30, %s2224_s12 }
  0x72   : > { %1750 = vmatpush3.bf16.msra.mxu0 %v2047_v6  ;;  %v2056_v15 = vld [vmem:[#allocation7 + $0xa0] sm:$0xff]   ;;  %v2060_v19 = vld [vmem:[#allocation7 + $0x98] sm:$0xff]   ;;  %v2063_v22 = vld [vmem:[#allocation7 + $0x10] sm:$0xff]   ;;  %p2222_p13 = pneg %p2221_p2  ;;  %p2227_p5 = scmp.lt.s32.totalorder %s2225_s20, %s2219_s2 }
  0x73   : > { %1862 = vmatpush3.bf16.msra.mxu1 %v2048_v7  ;;  %1751 = vmatprep.subr.bf16.mxu0 %v2049_v8  ;;  %v2064_v23 = vld [vmem:[#allocation7 + $0x90] sm:$0xff]   ;;  %v2065_v24 = vld [vmem:[#allocation7 + $0x48] sm:$0xff]   ;;  %v2069_v28 = vld [vmem:[#allocation7 + $0x40] sm:$0xff]  }
  0x74   : > { %1863 = vmatprep.subr.bf16.mxu1 %v2050_v9  ;;  %v2066_v25 = vld [vmem:[#allocation7 + $0xc8] sm:$0xff]   ;;  %v2070_v29 = vld [vmem:[#allocation7 + $0xc0] sm:$0xff]   ;;  %v278_v34 = vld [vmem:[%s2494_s24 + $0x18] sm:$0xff]  ;;  %p2228_p9 = por %p2227_p5, %p2226_p0 }
  0x75   : > { %v2067_v26 = vld [vmem:[#allocation7 + $0x8] sm:$0xff]   ;;  %v2071_v30 = vld [vmem:[#allocation7] sm:$0xff]   ;;  %v282_v36 = vld [vmem:[%s2494_s24 + $0x38] sm:$0xff] }
  0x76   : > { %1752 = vmatpush3.bf16.msra.mxu0 %v2051_v10  ;;  %v2068_v27 = vld [vmem:[#allocation7 + $0x88] sm:$0xff]   ;;  %v2072_v31 = vld [vmem:[#allocation7 + $0x80] sm:$0xff]   ;;  %v406_v39 = vpack.c.bf16 %v282_v36, %v278_v34  ;;  %v277_v41 = vld [vmem:[%s2494_s24 + $0x10] sm:$0xff]  ;;  %p2229_p10 = pnand %p2228_p9, %p2222_p13 }
  0x77   : > { %1864 = vmatpush3.bf16.msra.mxu1 %v2052_v11  ;;  %1753 = vmatprep.subr.bf16.mxu0 %v2053_v12  ;;  %v276_v32 = vld [vmem:[%s2494_s24 + $0x8] sm:$0xff]  ;;  %v275_v37 = vld [vmem:[%s2494_s24] sm:$0xff]  ;;  %v281_v42 = vld [vmem:[%s2494_s24 + $0x30] sm:$0xff] }
  0x78   : > { %1865 = vmatprep.subr.bf16.mxu1 %v2054_v13  ;;  %v280_v33 = vld [vmem:[%s2494_s24 + $0x28] sm:$0xff]  ;;  %v279_v38 = vld [vmem:[%s2494_s24 + $0x20] sm:$0xff]  ;;  %v405_v44 = vpack.c.bf16 %v281_v42, %v277_v41  ;;  %v286_v46 = vld [vmem:[%s2494_s24 + $0x58] sm:$0xff]  ;;  %921 = vmatprep.mubr.bf16.mxu1 %v406_v39 }
  0x79   : > { %v404_v35 = vpack.c.bf16 %v280_v33, %v276_v32  ;;  %v403_v40 = vpack.c.bf16 %v279_v38, %v275_v37  ;;  %v284_v43 = vld [vmem:[%s2494_s24 + $0x48] sm:$0xff]  ;;  %v290_v47 = vld [vmem:[%s2494_s24 + $0x78] sm:$0xff]  ;;  %v283_v50 = vld [vmem:[%s2494_s24 + $0x40] sm:$0xff] }
  0x7a   : > { %1754 = vmatpush3.bf16.msra.mxu0 %v2055_v14  ;;  %v288_v45 = vld [vmem:[%s2494_s24 + $0x68] sm:$0xff]  ;;  %v410_v49 = vpack.c.bf16 %v290_v47, %v286_v46  ;;  %v287_v51 = vld [vmem:[%s2494_s24 + $0x60] sm:$0xff]  ;;  %v285_v52 = vld [vmem:[%s2494_s24 + $0x50] sm:$0xff] }
  0x7b   : > { %1866 = vmatpush3.bf16.msra.mxu1 %v2056_v15  ;;  %1755 = vmatprep.subr.bf16.mxu0 %v2057_v16  ;;  %v408_v48 = vpack.c.bf16 %v288_v45, %v284_v43  ;;  %v289_v53 = vld [vmem:[%s2494_s24 + $0x70] sm:$0xff]  ;;  %v292_v54 = vld [vmem:[%s2494_s24 + $0x88] sm:$0xff]  ;;  %v294_v56 = vld [vmem:[%s2494_s24 + $0x98] sm:$0xff]  ;;  %v407_v58 = vpack.c.bf16 %v287_v51, %v283_v50 }
  0x7c   : > { %1867 = vmatprep.subr.bf16.mxu1 %v2058_v17  ;;  %760 = vmatprep.mubr.bf16.mxu0 %v404_v35  ;;  %v296_v55 = vld [vmem:[%s2494_s24 + $0xa8] sm:$0xff]  ;;  %v298_v57 = vld [vmem:[%s2494_s24 + $0xb8] sm:$0xff]  ;;  %v409_v59 = vpack.c.bf16 %v289_v53, %v285_v52  ;;  %v291_v62 = vld [vmem:[%s2494_s24 + $0x80] sm:$0xff] }
  0x7d   : > { %v412_v60 = vpack.c.bf16 %v296_v55, %v292_v54  ;;  %v414_v61 = vpack.c.bf16 %v298_v57, %v294_v56  ;;  %v295_v63 = vld [vmem:[%s2494_s24 + $0xa0] sm:$0xff]  ;;  %v293_v0 = vld [vmem:[%s2494_s24 + $0x90] sm:$0xff]  ;;  %v300_v2 = vld [vmem:[%s2494_s24 + $0xc8] sm:$0xff] }
  0x7e   : > { %1756 = vmatpush3.bf16.msra.mxu0 %v2059_v18  ;;  %v297_v1 = vld [vmem:[%s2494_s24 + $0xb0] sm:$0xff]  ;;  %v304_v3 = vld [vmem:[%s2494_s24 + $0xe8] sm:$0xff]  ;;  %v302_v4 = vld [vmem:[%s2494_s24 + $0xd8] sm:$0xff]  ;;  %v411_v6 = vpack.c.bf16 %v295_v63, %v291_v62 }
  0x7f   : > { %1868 = vmatpush3.bf16.msra.mxu1 %v2060_v19  ;;  %1757 = vmatprep.subr.bf16.mxu0 %v2061_v20  ;;  %v306_v5 = vld [vmem:[%s2494_s24 + $0xf8] sm:$0xff]  ;;  %v413_v7 = vpack.c.bf16 %v297_v1, %v293_v0  ;;  %v416_v8 = vpack.c.bf16 %v304_v3, %v300_v2  ;;  %v299_v10 = vld [vmem:[%s2494_s24 + $0xc0] sm:$0xff]  ;;  %v301_v12 = vld [vmem:[%s2494_s24 + $0xd0] sm:$0xff] }
  0x80   : > { %1869 = vmatprep.subr.bf16.mxu1 %v2062_v21  ;;  %v418_v9 = vpack.c.bf16 %v306_v5, %v302_v4  ;;  %v303_v11 = vld [vmem:[%s2494_s24 + $0xe0] sm:$0xff]  ;;  %v305_v13 = vld [vmem:[%s2494_s24 + $0xf0] sm:$0xff]  ;;  %v308_v14 = vld [vmem:[%s2494_s24 + $0x108] sm:$0xff] }
  0x81   : > { %v312_v15 = vld [vmem:[%s2494_s24 + $0x128] sm:$0xff]  ;;  %v310_v16 = vld [vmem:[%s2494_s24 + $0x118] sm:$0xff]  ;;  %v415_v18 = vpack.c.bf16 %v303_v11, %v299_v10  ;;  %v417_v19 = vpack.c.bf16 %v305_v13, %v301_v12  ;;  %v315_v34 = vld [vmem:[%s2494_s24 + $0x140] sm:$0xff] }
  0x82   : > { %1758 = vmatpush3.bf16.msra.mxu0 %v2063_v22  ;;  %v314_v17 = vld [vmem:[%s2494_s24 + $0x138] sm:$0xff]  ;;  %v420_v20 = vpack.c.bf16 %v312_v15, %v308_v14  ;;  %v307_v22 = vld [vmem:[%s2494_s24 + $0x100] sm:$0xff]  ;;  %v317_v36 = vld [vmem:[%s2494_s24 + $0x150] sm:$0xff] }
  0x83   : > { %1870 = vmatpush3.bf16.msra.mxu1 %v2064_v23  ;;  %1759 = vmatprep.subr.bf16.mxu0 %v2065_v24  ;;  %v422_v21 = vpack.c.bf16 %v314_v17, %v310_v16  ;;  %v311_v23 = vld [vmem:[%s2494_s24 + $0x120] sm:$0xff]  ;;  %v309_v24 = vld [vmem:[%s2494_s24 + $0x110] sm:$0xff]  ;;  %v324_v38 = vld [vmem:[%s2494_s24 + $0x188] sm:$0xff] }
  0x84   : > { %1871 = vmatprep.subr.bf16.mxu1 %v2066_v25  ;;  %v313_v25 = vld [vmem:[%s2494_s24 + $0x130] sm:$0xff]  ;;  %v319_v35 = vld [vmem:[%s2494_s24 + $0x160] sm:$0xff]  ;;  %v328_v39 = vld [vmem:[%s2494_s24 + $0x1a8] sm:$0xff] }
  0x85   : > { %v321_v37 = vld [vmem:[%s2494_s24 + $0x170] sm:$0xff]  ;;  %v330_v41 = vld [vmem:[%s2494_s24 + $0x1b8] sm:$0xff]  ;;  %v423_v42 = vpack.c.bf16 %v319_v35, %v315_v34  ;;  %v323_v46 = vld [vmem:[%s2494_s24 + $0x180] sm:$0xff] }
  0x86   : > { %1760 = vmatpush3.bf16.msra.mxu0 %v2067_v26  ;;  %v316_v26 = vld [vmem:[%s2494_s24 + $0x148] sm:$0xff]  ;;  %v425_v43 = vpack.c.bf16 %v321_v37, %v317_v36  ;;  %v327_v47 = vld [vmem:[%s2494_s24 + $0x1a0] sm:$0xff]  ;;  %v334_v52 = vld [vmem:[%s2494_s24 + $0x1d8] sm:$0xff] }
  0x87   : > { %1872 = vmatpush3.bf16.msra.mxu1 %v2068_v27  ;;  %1761 = vmatprep.subr.bf16.mxu0 %v2069_v28  ;;  %v320_v27 = vld [vmem:[%s2494_s24 + $0x168] sm:$0xff]  ;;  %v318_v28 = vld [vmem:[%s2494_s24 + $0x158] sm:$0xff]  ;;  %v427_v54 = vpack.c.bf16 %v327_v47, %v323_v46  ;;  %v361_v34 = vld [vmem:[%s2494_s24 + $0x2b0] sm:$0xff] }
  0x88   : > { %1873 = vmatprep.subr.bf16.mxu1 %v2070_v29  ;;  %v322_v29 = vld [vmem:[%s2494_s24 + $0x178] sm:$0xff]  ;;  %v424_v32 = vpack.c.bf16 %v320_v27, %v316_v26  ;;  %v332_v50 = vld [vmem:[%s2494_s24 + $0x1c8] sm:$0xff]  ;;  %v2613_v46 = vld [vmem:[%s3166_s3] sm:$0x7] }
  0x89   : > { %v426_v33 = vpack.c.bf16 %v322_v29, %v318_v28  ;;  %v336_v51 = vld [vmem:[%s2494_s24 + $0x1e8] sm:$0xff]  ;;  %v338_v53 = vld [vmem:[%s2494_s24 + $0x1f8] sm:$0xff]  ;;  %v363_v47 = vld [vmem:[%s2494_s24 + $0x2c0] sm:$0xff] }
  0x8a   : > { %1762 = vmatpush3.bf16.msra.mxu0 %v2071_v30  ;;  %v419_v30 = vpack.c.bf16 %v311_v23, %v307_v22  ;;  %v432_v56 = vpack.c.bf16 %v336_v51, %v332_v50  ;;  %v434_v57 = vpack.c.bf16 %v338_v53, %v334_v52  ;;  %v340_v62 = vld [vmem:[%s2494_s24 + $0x208] sm:$0xff]  ;;  %v342_v0 = vld [vmem:[%s2494_s24 + $0x218] sm:$0xff]  ;;  %v369_v52 = vld [vmem:[%s2494_s24 + $0x2f0] sm:$0xff] }
  0x8b   : > { %1874 = vmatpush3.bf16.msra.mxu1 %v2072_v31  ;;  %v421_v31 = vpack.c.bf16 %v313_v25, %v309_v24  ;;  %v344_v63 = vld [vmem:[%s2494_s24 + $0x228] sm:$0xff]  ;;  %v346_v1 = vld [vmem:[%s2494_s24 + $0x238] sm:$0xff] }
  0x8c   : > { %v436_v4 = vpack.c.bf16 %v344_v63, %v340_v62  ;;  %v438_v5 = vpack.c.bf16 %v346_v1, %v342_v0  ;;  %v348_v10 = vld [vmem:[%s2494_s24 + $0x248] sm:$0xff]  ;;  %v350_v12 = vld [vmem:[%s2494_s24 + $0x258] sm:$0xff]  ;;  %v375_v62 = vld [vmem:[%s2494_s24 + $0x320] sm:$0xff] }
  0x8d   : > { %761 = vmatmul.mubr.bf16.vlgmr.msra.gmra.mxu0 %v403_v40  ;;  %v326_v40 = vld [vmem:[%s2494_s24 + $0x198] sm:$0xff]  ;;  %v352_v11 = vld [vmem:[%s2494_s24 + $0x268] sm:$0xff]  ;;  %v373_v63 = vld [vmem:[%s2494_s24 + $0x310] sm:$0xff] }
  0x8e   : > { %922 = vmatmul.mubr.bf16.vlgmr.msra.gmra.mxu1 %v405_v44  ;;  %768 = vmatprep.mubr.bf16.mxu0 %v408_v48  ;;  %v428_v44 = vpack.c.bf16 %v328_v39, %v324_v38  ;;  %v430_v45 = vpack.c.bf16 %v330_v41, %v326_v40  ;;  %v325_v48 = vld [vmem:[%s2494_s24 + $0x190] sm:$0xff]  ;;  %v354_v13 = vld [vmem:[%s2494_s24 + $0x278] sm:$0xff]  ;;  %v440_v16 = vpack.c.bf16 %v352_v11, %v348_v10  ;;  %v356_v22 = vld [vmem:[%s2494_s24 + $0x288] sm:$0xff] }
  0x8f   : > { %929 = vmatprep.mubr.bf16.mxu1 %v410_v49  ;;  %v329_v49 = vld [vmem:[%s2494_s24 + $0x1b0] sm:$0xff]  ;;  %v442_v17 = vpack.c.bf16 %v354_v13, %v350_v12  ;;  %v360_v23 = vld [vmem:[%s2494_s24 + $0x2a8] sm:$0xff]  ;;  %v358_v24 = vld [vmem:[%s2494_s24 + $0x298] sm:$0xff] }
  0x90   : > { %v429_v55 = vpack.c.bf16 %v329_v49, %v325_v48  ;;  %v362_v25 = vld [vmem:[%s2494_s24 + $0x2b8] sm:$0xff]  ;;  %v444_v28 = vpack.c.bf16 %v360_v23, %v356_v22  ;;  %v364_v35 = vld [vmem:[%s2494_s24 + $0x2c8] sm:$0xff]  ;;  %v367_v48 = vld [vmem:[%s2494_s24 + $0x2e0] sm:$0xff] }
  0x91   : > { %v446_v29 = vpack.c.bf16 %v362_v25, %v358_v24  ;;  %v368_v36 = vld [vmem:[%s2494_s24 + $0x2e8] sm:$0xff]  ;;  %v366_v37 = vld [vmem:[%s2494_s24 + $0x2d8] sm:$0xff]  ;;  %v365_v49 = vld [vmem:[%s2494_s24 + $0x2d0] sm:$0xff] }
  0x92   : > { %v370_v38 = vld [vmem:[%s2494_s24 + $0x2f8] sm:$0xff]  ;;  %v448_v41 = vpack.c.bf16 %v368_v36, %v364_v35  ;;  %v372_v53 = vld [vmem:[%s2494_s24 + $0x308] sm:$0xff]  ;;  %v377_v0 = vld [vmem:[%s2494_s24 + $0x330] sm:$0xff] }
  0x93   : > { %v380_v1 = vld [vmem:[%s2494_s24 + $0x348] sm:$0xff]  ;;  %v383_v10 = vld [vmem:[%s2494_s24 + $0x360] sm:$0xff]  ;;  %v381_v11 = vld [vmem:[%s2494_s24 + $0x350] sm:$0xff] }
  0x94   : > { %v385_v12 = vld [vmem:[%s2494_s24 + $0x370] sm:$0xff]  ;;  %v388_v13 = vld [vmem:[%s2494_s24 + $0x388] sm:$0xff]  ;;  %v391_v22 = vld [vmem:[%s2494_s24 + $0x3a0] sm:$0xff] }
  0x95   : > { %769 = vmatmul.mubr.bf16.gmra.mxu0 %v407_v58  ;;  %v331_v58 = vld [vmem:[%s2494_s24 + $0x1c0] sm:$0xff]  ;;  %v389_v23 = vld [vmem:[%s2494_s24 + $0x390] sm:$0xff]  ;;  %v396_v25 = vld [vmem:[%s2494_s24 + $0x3c8] sm:$0xff] }
  0x96   : > { %930 = vmatmul.mubr.bf16.gmra.mxu1 %v409_v59  ;;  %776 = vmatprep.mubr.bf16.mxu0 %v412_v60  ;;  %v335_v59 = vld [vmem:[%s2494_s24 + $0x1e0] sm:$0xff]  ;;  %v333_v60 = vld [vmem:[%s2494_s24 + $0x1d0] sm:$0xff] }
  0x97   : > { %937 = vmatprep.mubr.bf16.mxu1 %v414_v61  ;;  %v337_v61 = vld [vmem:[%s2494_s24 + $0x1f0] sm:$0xff]  ;;  %v431_v2 = vpack.c.bf16 %v335_v59, %v331_v58  ;;  %v449_v58 = vpack.c.bf16 %v369_v52, %v365_v49 }
  0x98   : > { %v433_v3 = vpack.c.bf16 %v337_v61, %v333_v60  ;;  %v371_v61 = vld [vmem:[%s2494_s24 + $0x300] sm:$0xff]  ;;  %v393_v24 = vld [vmem:[%s2494_s24 + $0x3b0] sm:$0xff] }
  0x99   : > { %v397_v35 = vld [vmem:[%s2494_s24 + $0x3d0] sm:$0xff] }
  0x9a   : > { %v401_v36 = vld [vmem:[%s2494_s24 + $0x3f0] sm:$0xff] }
  0x9d   : > { %777 = vmatmul.mubr.bf16.gmra.mxu0 %v411_v6  ;;  %v339_v6 = vld [vmem:[%s2494_s24 + $0x200] sm:$0xff] }
  0x9e   : > { %938 = vmatmul.mubr.bf16.gmra.mxu1 %v413_v7  ;;  %784 = vmatprep.mubr.bf16.mxu0 %v416_v8  ;;  %v343_v7 = vld [vmem:[%s2494_s24 + $0x220] sm:$0xff]  ;;  %v341_v8 = vld [vmem:[%s2494_s24 + $0x210] sm:$0xff] }
  0x9f   : > { %945 = vmatprep.mubr.bf16.mxu1 %v418_v9  ;;  %v345_v9 = vld [vmem:[%s2494_s24 + $0x230] sm:$0xff]  ;;  %v435_v14 = vpack.c.bf16 %v343_v7, %v339_v6  ;;  %v453_v6 = vpack.c.bf16 %v377_v0, %v373_v63  ;;  %v1051_v63 = vld [vmem:[%s2504_s13 + $0x8] sm:$0xff] }
  0xa0   : > { %v437_v15 = vpack.c.bf16 %v345_v9, %v341_v8  ;;  %v379_v9 = vld [vmem:[%s2494_s24 + $0x340] sm:$0xff] }
  0xa5   : > { %785 = vmatmul.mubr.bf16.gmra.mxu0 %v415_v18  ;;  %v347_v18 = vld [vmem:[%s2494_s24 + $0x240] sm:$0xff] }
  0xa6   : > { %946 = vmatmul.mubr.bf16.gmra.mxu1 %v417_v19  ;;  %792 = vmatprep.mubr.bf16.mxu0 %v420_v20  ;;  %v351_v19 = vld [vmem:[%s2494_s24 + $0x260] sm:$0xff]  ;;  %v349_v20 = vld [vmem:[%s2494_s24 + $0x250] sm:$0xff] }
  0xa7   : > { %953 = vmatprep.mubr.bf16.mxu1 %v422_v21  ;;  %v353_v21 = vld [vmem:[%s2494_s24 + $0x270] sm:$0xff]  ;;  %v439_v26 = vpack.c.bf16 %v351_v19, %v347_v18  ;;  %v457_v18 = vpack.c.bf16 %v385_v12, %v381_v11 }
  0xa8   : > { %v441_v27 = vpack.c.bf16 %v353_v21, %v349_v20  ;;  %v387_v21 = vld [vmem:[%s2494_s24 + $0x380] sm:$0xff] }
  0xad   : > { %793 = vmatmul.mubr.bf16.gmra.mxu0 %v419_v30  ;;  %v355_v30 = vld [vmem:[%s2494_s24 + $0x280] sm:$0xff] }
  0xae   : > { %954 = vmatmul.mubr.bf16.gmra.mxu1 %v421_v31  ;;  %800 = vmatprep.mubr.bf16.mxu0 %v424_v32  ;;  %v359_v31 = vld [vmem:[%s2494_s24 + $0x2a0] sm:$0xff]  ;;  %v357_v32 = vld [vmem:[%s2494_s24 + $0x290] sm:$0xff] }
  0xaf   : > { %961 = vmatprep.mubr.bf16.mxu1 %v426_v33  ;;  %v532_v33 = vlaneseq  ;;  %v443_v39 = vpack.c.bf16 %v359_v31, %v355_v30  ;;  %v445_v40 = vpack.c.bf16 %v361_v34, %v357_v32  ;;  %v461_v30 = vpack.c.bf16 %v393_v24, %v389_v23  ;;  %v399_v34 = vld [vmem:[%s2494_s24 + $0x3e0] sm:$0xff] }
  0xb5   : > { %801 = vmatmul.mubr.bf16.gmra.mxu0 %v423_v42  ;;  %v2606_v42 = vshrl.u32 %v532_v33, 7  ;;  %v395_v33 = vld [vmem:[%s2494_s24 + $0x3c0] sm:$0xff] }
  0xb6   : > { %962 = vmatmul.mubr.bf16.gmra.mxu1 %v425_v43  ;;  %808 = vmatprep.mubr.bf16.mxu0 %v428_v44  ;;  %v450_v43 = vpack.c.bf16 %v370_v38, %v366_v37  ;;  %v463_v37 = vpack.c.bf16 %v399_v34, %v395_v33  ;;  %v465_v38 = vpack.c.bf16 %v401_v36, %v397_v35 }
  0xb7   : > { %969 = vmatprep.mubr.bf16.mxu1 %v430_v45  ;;  %v1437_v44 = vsub.s32 1, %v2606_v42  ;;  %v1505_v45 = vsub.s32 2, %v2606_v42 }
  0xb9   : > { %v2619_v50 = vrot.slane %v2613_v46, %v1437_v44  ;;  %v2622_v51 = vrot.slane %v2613_v46, %v1505_v45 }
  0xbd   : > { %809 = vmatmul.mubr.bf16.gmra.mxu0 %v427_v54  ;;  %v376_v54 = vld [vmem:[%s2494_s24 + $0x328] sm:$0xff] }
  0xbe   : > { %970 = vmatmul.mubr.bf16.gmra.mxu1 %v429_v55  ;;  %816 = vmatprep.mubr.bf16.mxu0 %v432_v56  ;;  %v374_v55 = vld [vmem:[%s2494_s24 + $0x318] sm:$0xff]  ;;  %v452_v59 = vpack.c.bf16 %v376_v54, %v372_v53 }
  0xbf   : > { %977 = vmatprep.mubr.bf16.mxu1 %v434_v57  ;;  %v378_v56 = vld [vmem:[%s2494_s24 + $0x338] sm:$0xff]  ;;  %v447_v57 = vpack.c.bf16 %v367_v48, %v363_v47 }
  0xc0   : > { %v454_v60 = vpack.c.bf16 %v378_v56, %v374_v55  ;;  %v1050_v55 = vld [vmem:[%s2504_s13] sm:$0xff] }
  0xc5   : > { %817 = vmatmul.mubr.bf16.gmra.mxu0 %v431_v2  ;;  %v384_v2 = vld [vmem:[%s2494_s24 + $0x368] sm:$0xff] }
  0xc6   : > { %978 = vmatmul.mubr.bf16.gmra.mxu1 %v433_v3  ;;  %824 = vmatprep.mubr.bf16.mxu0 %v436_v4  ;;  %v382_v3 = vld [vmem:[%s2494_s24 + $0x358] sm:$0xff]  ;;  %v456_v7 = vpack.c.bf16 %v384_v2, %v380_v1 }
  0xc7   : > { %985 = vmatprep.mubr.bf16.mxu1 %v438_v5  ;;  %v386_v4 = vld [vmem:[%s2494_s24 + $0x378] sm:$0xff]  ;;  %v451_v5 = vpack.c.bf16 %v375_v62, %v371_v61 }
  0xc8   : > { %v458_v8 = vpack.c.bf16 %v386_v4, %v382_v3 }
  0xcd   : > { %825 = vmatmul.mubr.bf16.gmra.mxu0 %v435_v14  ;;  %v392_v14 = vld [vmem:[%s2494_s24 + $0x3a8] sm:$0xff] }
  0xce   : > { %986 = vmatmul.mubr.bf16.gmra.mxu1 %v437_v15  ;;  %832 = vmatprep.mubr.bf16.mxu0 %v440_v16  ;;  %v390_v15 = vld [vmem:[%s2494_s24 + $0x398] sm:$0xff]  ;;  %v460_v19 = vpack.c.bf16 %v392_v14, %v388_v13 }
  0xcf   : > { %993 = vmatprep.mubr.bf16.mxu1 %v442_v17  ;;  %v394_v16 = vld [vmem:[%s2494_s24 + $0x3b8] sm:$0xff]  ;;  %v455_v17 = vpack.c.bf16 %v383_v10, %v379_v9  ;;  %v1052_v9 = vld [vmem:[%s2504_s13 + $0x10] sm:$0xff] }
  0xd0   : > { %v462_v20 = vpack.c.bf16 %v394_v16, %v390_v15 }
  0xd5   : > { %833 = vmatmul.mubr.bf16.gmra.mxu0 %v439_v26  ;;  %v400_v26 = vld [vmem:[%s2494_s24 + $0x3e8] sm:$0xff] }
  0xd6   : > { %994 = vmatmul.mubr.bf16.gmra.mxu1 %v441_v27  ;;  %840 = vmatprep.mubr.bf16.mxu0 %v444_v28  ;;  %v398_v27 = vld [vmem:[%s2494_s24 + $0x3d8] sm:$0xff]  ;;  %v464_v31 = vpack.c.bf16 %v400_v26, %v396_v25 }
  0xd7   : > { %1001 = vmatprep.mubr.bf16.mxu1 %v446_v29  ;;  %v402_v28 = vld [vmem:[%s2494_s24 + $0x3f8] sm:$0xff]  ;;  %v459_v29 = vpack.c.bf16 %v391_v22, %v387_v21 }
  0xd8   : > { %v466_v32 = vpack.c.bf16 %v402_v28, %v398_v27 }
  0xdd   : > { %841 = vmatmul.mubr.bf16.gmra.mxu0 %v443_v39  ;;  %v534_v39 = vsub.s32 0, %v2606_v42 }
  0xde   : > { %1002 = vmatmul.mubr.bf16.gmra.mxu1 %v445_v40  ;;  %848 = vmatprep.mubr.bf16.mxu0 %v448_v41 }
  0xdf   : > { %1009 = vmatprep.mubr.bf16.mxu1 %v450_v43  ;;  %v2659_v43 = vrot.slane %v2613_v46, %v534_v39  ;;  %v1055_v39 = vld [vmem:[%s2504_s13 + $0x28] sm:$0xff] }
  0xe5   : > { %849 = vmatmul.mubr.bf16.gmra.mxu0 %v447_v57 }
  0xe6   : > { %1010 = vmatmul.mubr.bf16.gmra.mxu1 %v449_v58  ;;  %856 = vmatprep.mubr.bf16.mxu0 %v452_v59 }
  0xe7   : > { %1017 = vmatprep.mubr.bf16.mxu1 %v454_v60 }
  0xed   : > { %857 = vmatmul.mubr.bf16.gmra.mxu0 %v451_v5 }
  0xee   : > { %1018 = vmatmul.mubr.bf16.gmra.mxu1 %v453_v6  ;;  %864 = vmatprep.mubr.bf16.mxu0 %v456_v7 }
  0xef   : > { %1025 = vmatprep.mubr.bf16.mxu1 %v458_v8 }
  0xf5   : > { %865 = vmatmul.mubr.bf16.gmra.mxu0 %v455_v17 }
  0xf6   : > { %1026 = vmatmul.mubr.bf16.gmra.mxu1 %v457_v18  ;;  %872 = vmatprep.mubr.bf16.mxu0 %v460_v19  ;;  %v1053_v19 = vld [vmem:[%s2504_s13 + $0x18] sm:$0xff] }
  0xf7   : > { %1033 = vmatprep.mubr.bf16.mxu1 %v462_v20 }
  0xfd   : > { %873 = vmatmul.mubr.bf16.gmra.mxu0 %v459_v29  ;;  %v1054_v29 = vld [vmem:[%s2504_s13 + $0x20] sm:$0xff] }
  0xfe   : > { %1034 = vmatmul.mubr.bf16.gmra.mxu1 %v461_v30  ;;  %880 = vmatprep.mubr.bf16.mxu0 %v464_v31 }
  0xff   : > { %1041 = vmatprep.mubr.bf16.mxu1 %v466_v32 }
 0x105   : > { %881 = vmatmul.mubr.bf16.gmra.mxu0 %v463_v37 }
 0x106   : > { %1042 = vmatmul.mubr.bf16.gmra.mxu1 %v465_v38 }
 0x14d   : > { %v1763_v40 = vpop.f32.mrf.mxu0 }
 0x14e   : > { %v1875_v41 = vpop.f32.mrf.mxu1 }
 0x14f   : > { %v1764_v44 = vpop.f32.mrf.mxu0 }
 0x150   : > { %v1765_v45 = vadd.f32 %v1764_v44, %v1763_v40  ;;  %v1876_v47 = vpop.f32.mrf.mxu1 }
 0x151   : > { %v1766_v48 = vpop.f32.mrf.mxu0  ;;  %v1877_v52 = vadd.f32 %v1876_v47, %v1875_v41 }
 0x152   : > { %v763_v49 = vadd.f32 %v1765_v45, %v2659_v43  ;;  %v1878_v53 = vpop.f32.mrf.mxu1 }
 0x153   : > { %v1767_v54 = vpop.f32.mrf.mxu0 }
 0x154   : > { %v924_v56 = vadd.f32 %v1877_v52, %v763_v49  ;;  %v1768_v57 = vadd.f32 %v1767_v54, %v1766_v48  ;;  %v1879_v58 = vpop.f32.mrf.mxu1  ;;  %v1056_v54 = vld [vmem:[%s2504_s13 + $0x30] sm:$0xff] }
 0x155   : > { %v1769_v42 = vpop.f32.mrf.mxu0  ;;  %v1880_v46 = vadd.f32 %v1879_v58, %v1878_v53 }
 0x156   : > { %v766_v59 = vadd.f32 %v1768_v57, %v2659_v43  ;;  %v1881_v60 = vpop.f32.mrf.mxu1  ;;  %v2664_v61 = vadd.f32 %v1050_v55, %v924_v56 }
 0x157   : > { %v1770_v62 = vpop.f32.mrf.mxu0 }
 0x158   : > { %v927_v0 = vadd.f32 %v1880_v46, %v766_v59  ;;  %v1771_v1 = vadd.f32 %v1770_v62, %v1769_v42  ;;  %v1882_v2 = vpop.f32.mrf.mxu1  ;;  %1114 = vadd.xlane.f32.xlu0 %v2664_v61 }
 0x159   : > { %v1772_v3 = vpop.f32.mrf.mxu0  ;;  %v1883_v5 = vadd.f32 %v1882_v2, %v1881_v60 }
 0x15a   : > { %v771_v4 = vadd.f32 %v1771_v1, %v2659_v43  ;;  %v1884_v6 = vpop.f32.mrf.mxu1  ;;  %v2669_v7 = vadd.f32 %v1051_v63, %v927_v0  ;;  %v1057_v63 = vld [vmem:[%s2504_s13 + $0x38] sm:$0xff] }
 0x15b   : > { %v1773_v8 = vpop.f32.mrf.mxu0 }
 0x15c   : > { %v932_v10 = vadd.f32 %v1883_v5, %v771_v4  ;;  %v1774_v11 = vadd.f32 %v1773_v8, %v1772_v3  ;;  %v1885_v12 = vpop.f32.mrf.mxu1  ;;  %1116 = vadd.xlane.f32.xlu0 %v2669_v7 }
 0x15d   : > { %v1775_v13 = vpop.f32.mrf.mxu0  ;;  %v1886_v15 = vadd.f32 %v1885_v12, %v1884_v6 }
 0x15e   : > { %v774_v14 = vadd.f32 %v1774_v11, %v2659_v43  ;;  %v1887_v16 = vpop.f32.mrf.mxu1  ;;  %v2674_v17 = vadd.f32 %v1052_v9, %v932_v10  ;;  %v1058_v10 = vld [vmem:[%s2504_s13 + $0x40] sm:$0xff] }
 0x15f   : > { %v1776_v18 = vpop.f32.mrf.mxu0 }
 0x160   : > { %v935_v20 = vadd.f32 %v1886_v15, %v774_v14  ;;  %v1777_v21 = vadd.f32 %v1776_v18, %v1775_v13  ;;  %v1888_v22 = vpop.f32.mrf.mxu1  ;;  %1118 = vadd.xlane.f32.xlu1 %v2674_v17 }
 0x161   : > { %v1778_v23 = vpop.f32.mrf.mxu0  ;;  %v1889_v25 = vadd.f32 %v1888_v22, %v1887_v16 }
 0x162   : > { %v779_v24 = vadd.f32 %v1777_v21, %v2659_v43  ;;  %v1890_v26 = vpop.f32.mrf.mxu1  ;;  %v2679_v27 = vadd.f32 %v1053_v19, %v935_v20  ;;  %v1059_v21 = vld [vmem:[%s2504_s13 + $0x48] sm:$0xff] }
 0x163   : > { %v1779_v28 = vpop.f32.mrf.mxu0 }
 0x164   : > { %v940_v30 = vadd.f32 %v1889_v25, %v779_v24  ;;  %v1780_v31 = vadd.f32 %v1779_v28, %v1778_v23  ;;  %v1891_v32 = vpop.f32.mrf.mxu1  ;;  %1120 = vadd.xlane.f32.xlu1 %v2679_v27 }
 0x165   : > { %v1781_v33 = vpop.f32.mrf.mxu0  ;;  %v1892_v35 = vadd.f32 %v1891_v32, %v1890_v26  ;;  %v1060_v32 = vld [vmem:[%s2504_s13 + $0x50] sm:$0xff] }
 0x166   : > { %v782_v34 = vadd.f32 %v1780_v31, %v2659_v43  ;;  %v1893_v36 = vpop.f32.mrf.mxu1  ;;  %v2684_v37 = vadd.f32 %v1054_v29, %v940_v30 }
 0x167   : > { %v1782_v38 = vpop.f32.mrf.mxu0 }
 0x168   : > { %v943_v40 = vadd.f32 %v1892_v35, %v782_v34  ;;  %v1783_v41 = vadd.f32 %v1782_v38, %v1781_v33  ;;  %v1894_v44 = vpop.f32.mrf.mxu1  ;;  %1122 = vadd.xlane.f32.xlu0 %v2684_v37 }
 0x169   : > { %v1784_v45 = vpop.f32.mrf.mxu0  ;;  %v1895_v48 = vadd.f32 %v1894_v44, %v1893_v36 }
 0x16a   : > { %v787_v47 = vadd.f32 %v1783_v41, %v2659_v43  ;;  %v1896_v49 = vpop.f32.mrf.mxu1  ;;  %v2689_v52 = vadd.f32 %v1055_v39, %v943_v40 }
 0x16b   : > { %v1785_v53 = vpop.f32.mrf.mxu0 }
 0x16c   : > { %v948_v55 = vadd.f32 %v1895_v48, %v787_v47  ;;  %v1786_v56 = vadd.f32 %v1785_v53, %v1784_v45  ;;  %v1897_v57 = vpop.f32.mrf.mxu1  ;;  %1124 = vadd.xlane.f32.xlu1 %v2689_v52  ;;  %v1061_v45 = vld [vmem:[%s2504_s13 + $0x58] sm:$0xff] }
 0x16d   : > { %v1787_v58 = vpop.f32.mrf.mxu0  ;;  %v1898_v59 = vadd.f32 %v1897_v57, %v1896_v49 }
 0x16e   : > { %v790_v42 = vadd.f32 %v1786_v56, %v2659_v43  ;;  %v1899_v46 = vpop.f32.mrf.mxu1  ;;  %v2694_v60 = vadd.f32 %v1056_v54, %v948_v55 }
 0x16f   : > { %v1788_v62 = vpop.f32.mrf.mxu0 }
 0x170   : > { %v951_v0 = vadd.f32 %v1898_v59, %v790_v42  ;;  %v1789_v1 = vadd.f32 %v1788_v62, %v1787_v58  ;;  %v1900_v2 = vpop.f32.mrf.mxu1  ;;  %1126 = vadd.xlane.f32.xlu0 %v2694_v60  ;;  %v1062_v42 = vld [vmem:[%s2504_s13 + $0x60] sm:$0xff] }
 0x171   : > { %v1790_v3 = vpop.f32.mrf.mxu0  ;;  %v1901_v5 = vadd.f32 %v1900_v2, %v1899_v46 }
 0x172   : > { %v795_v4 = vadd.f32 %v1789_v1, %v2659_v43  ;;  %v1902_v6 = vpop.f32.mrf.mxu1  ;;  %v2699_v8 = vadd.f32 %v1057_v63, %v951_v0 }
 0x173   : > { %v1791_v9 = vpop.f32.mrf.mxu0 }
 0x174   : > { %v956_v11 = vadd.f32 %v1901_v5, %v795_v4  ;;  %v1792_v12 = vadd.f32 %v1791_v9, %v1790_v3  ;;  %v1903_v13 = vpop.f32.mrf.mxu1  ;;  %1128 = vadd.xlane.f32.xlu1 %v2699_v8  ;;  %v1063_v5 = vld [vmem:[%s2504_s13 + $0x68] sm:$0xff] }
 0x175   : > { %v1793_v14 = vpop.f32.mrf.mxu0  ;;  %v1904_v16 = vadd.f32 %v1903_v13, %v1902_v6 }
 0x176   : > { %v798_v15 = vadd.f32 %v1792_v12, %v2659_v43  ;;  %v1905_v18 = vpop.f32.mrf.mxu1  ;;  %v2704_v19 = vadd.f32 %v1058_v10, %v956_v11 }
 0x177   : > { %v1794_v20 = vpop.f32.mrf.mxu0 }
 0x178   : > { %v959_v22 = vadd.f32 %v1904_v16, %v798_v15  ;;  %v1795_v23 = vadd.f32 %v1794_v20, %v1793_v14  ;;  %v1906_v24 = vpop.f32.mrf.mxu1  ;;  %1130 = vadd.xlane.f32.xlu0 %v2704_v19 }
 0x179   : > { %v1796_v25 = vpop.f32.mrf.mxu0  ;;  %v1907_v28 = vadd.f32 %v1906_v24, %v1905_v18  ;;  %v1064_v18 = vld [vmem:[%s2504_s13 + $0x70] sm:$0xff] }
 0x17a   : > { %v803_v26 = vadd.f32 %v1795_v23, %v2659_v43  ;;  %v1908_v29 = vpop.f32.mrf.mxu1  ;;  %v2709_v30 = vadd.f32 %v1059_v21, %v959_v22 }
 0x17b   : > { %v1797_v31 = vpop.f32.mrf.mxu0 }
 0x17c   : > { %v964_v33 = vadd.f32 %v1907_v28, %v803_v26  ;;  %v1798_v34 = vadd.f32 %v1797_v31, %v1796_v25  ;;  %v1909_v35 = vpop.f32.mrf.mxu1  ;;  %1132 = vadd.xlane.f32.xlu1 %v2709_v30  ;;  %v1065_v31 = vld [vmem:[%s2504_s13 + $0x78] sm:$0xff] }
 0x17d   : > { %v1799_v36 = vpop.f32.mrf.mxu0  ;;  %v1910_v39 = vadd.f32 %v1909_v35, %v1908_v29 }
 0x17e   : > { %v806_v38 = vadd.f32 %v1798_v34, %v2659_v43  ;;  %v1911_v40 = vpop.f32.mrf.mxu1  ;;  %v2714_v41 = vadd.f32 %v1060_v32, %v964_v33 }
 0x17f   : > { %v1800_v44 = vpop.f32.mrf.mxu0 }
 0x180   : > { %v967_v47 = vadd.f32 %v1910_v39, %v806_v38  ;;  %v1801_v48 = vadd.f32 %v1800_v44, %v1799_v36  ;;  %v1912_v49 = vpop.f32.mrf.mxu1  ;;  %1134 = vadd.xlane.f32.xlu0 %v2714_v41 }
 0x181   : > { %v1802_v53 = vpop.f32.mrf.mxu0  ;;  %v1913_v55 = vadd.f32 %v1912_v49, %v1911_v40 }
 0x182   : > { %v811_v54 = vadd.f32 %v1801_v48, %v2659_v43  ;;  %v1914_v56 = vpop.f32.mrf.mxu1  ;;  %v2719_v57 = vadd.f32 %v1061_v45, %v967_v47  ;;  %v1066_v45 = vld [vmem:[%s2504_s13 + $0x80] sm:$0xff] }
 0x183   : > { %v1803_v58 = vpop.f32.mrf.mxu0 }
 0x184   : > { %v972_v59 = vadd.f32 %v1913_v55, %v811_v54  ;;  %v1804_v46 = vadd.f32 %v1803_v58, %v1802_v53  ;;  %v1915_v62 = vpop.f32.mrf.mxu1  ;;  %1136 = vadd.xlane.f32.xlu1 %v2719_v57 }
 0x185   : > { %v1805_v63 = vpop.f32.mrf.mxu0  ;;  %v1916_v1 = vadd.f32 %v1915_v62, %v1914_v56 }
 0x186   : > { %v814_v0 = vadd.f32 %v1804_v46, %v2659_v43  ;;  %v1917_v2 = vpop.f32.mrf.mxu1  ;;  %v2724_v3 = vadd.f32 %v1062_v42, %v972_v59  ;;  %v1067_v59 = vld [vmem:[%s2504_s13 + $0x88] sm:$0xff] }
 0x187   : > { %v1806_v4 = vpop.f32.mrf.mxu0 }
 0x188   : > { %v975_v6 = vadd.f32 %v1916_v1, %v814_v0  ;;  %v1807_v9 = vadd.f32 %v1806_v4, %v1805_v63  ;;  %v1918_v10 = vpop.f32.mrf.mxu1  ;;  %1138 = vadd.xlane.f32.xlu0 %v2724_v3 }
 0x189   : > { %v1808_v11 = vpop.f32.mrf.mxu0  ;;  %v1919_v13 = vadd.f32 %v1918_v10, %v1917_v2 }
 0x18a   : > { %v819_v12 = vadd.f32 %v1807_v9, %v2659_v43  ;;  %v1920_v14 = vpop.f32.mrf.mxu1  ;;  %v2729_v15 = vadd.f32 %v1063_v5, %v975_v6  ;;  %v1068_v9 = vld [vmem:[%s2504_s13 + $0x90] sm:$0xff] }
 0x18b   : > { %v1809_v16 = vpop.f32.mrf.mxu0 }
 0x18c   : > { %v980_v20 = vadd.f32 %v1919_v13, %v819_v12  ;;  %v1810_v21 = vadd.f32 %v1809_v16, %v1808_v11  ;;  %v1921_v22 = vpop.f32.mrf.mxu1  ;;  %1140 = vadd.xlane.f32.xlu1 %v2729_v15 }
 0x18d   : > { %v1811_v23 = vpop.f32.mrf.mxu0  ;;  %v1922_v25 = vadd.f32 %v1921_v22, %v1920_v14  ;;  %v1069_v22 = vld [vmem:[%s2504_s13 + $0x98] sm:$0xff] }
 0x18e   : > { %v822_v24 = vadd.f32 %v1810_v21, %v2659_v43  ;;  %v1923_v26 = vpop.f32.mrf.mxu1  ;;  %v2734_v28 = vadd.f32 %v1064_v18, %v980_v20 }
 0x18f   : > { %v1812_v29 = vpop.f32.mrf.mxu0 }
 0x190   : > { %v983_v32 = vadd.f32 %v1922_v25, %v822_v24  ;;  %v1813_v33 = vadd.f32 %v1812_v29, %v1811_v23  ;;  %v1924_v34 = vpop.f32.mrf.mxu1  ;;  %1142 = vadd.xlane.f32.xlu0 %v2734_v28 }
 0x191   : > { %v1814_v35 = vpop.f32.mrf.mxu0  ;;  %v1925_v38 = vadd.f32 %v1924_v34, %v1923_v26 }
 0x192   : > { %v827_v36 = vadd.f32 %v1813_v33, %v2659_v43  ;;  %v1926_v39 = vpop.f32.mrf.mxu1  ;;  %v2739_v40 = vadd.f32 %v1065_v31, %v983_v32 }
 0x193   : > { %v1815_v44 = vpop.f32.mrf.mxu0 }
 0x194   : > { %v988_v47 = vadd.f32 %v1925_v38, %v827_v36  ;;  %v1816_v48 = vadd.f32 %v1815_v44, %v1814_v35  ;;  %v1927_v49 = vpop.f32.mrf.mxu1  ;;  %1144 = vadd.xlane.f32.xlu1 %v2739_v40  ;;  %v1070_v35 = vld [vmem:[%s2504_s13 + $0xa0] sm:$0xff] }
 0x195   : > { %v1817_v53 = vpop.f32.mrf.mxu0  ;;  %v1928_v55 = vadd.f32 %v1927_v49, %v1926_v39 }
 0x196   : > { %v830_v54 = vadd.f32 %v1816_v48, %v2659_v43  ;;  %v1929_v56 = vpop.f32.mrf.mxu1  ;;  %v2744_v58 = vadd.f32 %v1066_v45, %v988_v47 }
 0x197   : > { %v1818_v42 = vpop.f32.mrf.mxu0 }
 0x198   : > { %v991_v46 = vadd.f32 %v1928_v55, %v830_v54  ;;  %v1819_v62 = vadd.f32 %v1818_v42, %v1817_v53  ;;  %v1930_v63 = vpop.f32.mrf.mxu1  ;;  %1146 = vadd.xlane.f32.xlu0 %v2744_v58  ;;  %v1071_v54 = vld [vmem:[%s2504_s13 + $0xa8] sm:$0xff] }
 0x199   : > { %v1820_v0 = vpop.f32.mrf.mxu0  ;;  %v1931_v2 = vadd.f32 %v1930_v63, %v1929_v56 }
 0x19a   : > { %v835_v1 = vadd.f32 %v1819_v62, %v2659_v43  ;;  %v1932_v4 = vpop.f32.mrf.mxu1  ;;  %v2749_v5 = vadd.f32 %v1067_v59, %v991_v46 }
 0x19b   : > { %v1821_v6 = vpop.f32.mrf.mxu0 }
 0x19c   : > { %v996_v10 = vadd.f32 %v1931_v2, %v835_v1  ;;  %v1822_v11 = vadd.f32 %v1821_v6, %v1820_v0  ;;  %v1933_v12 = vpop.f32.mrf.mxu1  ;;  %1148 = vadd.xlane.f32.xlu1 %v2749_v5  ;;  %v1072_v2 = vld [vmem:[%s2504_s13 + $0xb0] sm:$0xff] }
 0x19d   : > { %v1823_v13 = vpop.f32.mrf.mxu0  ;;  %v1934_v16 = vadd.f32 %v1933_v12, %v1932_v4 }
 0x19e   : > { %v838_v14 = vadd.f32 %v1822_v11, %v2659_v43  ;;  %v1935_v18 = vpop.f32.mrf.mxu1  ;;  %v2754_v20 = vadd.f32 %v1068_v9, %v996_v10 }
 0x19f   : > { %v1824_v21 = vpop.f32.mrf.mxu0 }
 0x1a0   : > { %v999_v23 = vadd.f32 %v1934_v16, %v838_v14  ;;  %v1825_v24 = vadd.f32 %v1824_v21, %v1823_v13  ;;  %v1936_v25 = vpop.f32.mrf.mxu1  ;;  %1150 = vadd.xlane.f32.xlu0 %v2754_v20 }
 0x1a1   : > { %v1826_v26 = vpop.f32.mrf.mxu0  ;;  %v1937_v31 = vadd.f32 %v1936_v25, %v1935_v18  ;;  %v1073_v18 = vld [vmem:[%s2504_s13 + $0xb8] sm:$0xff] }
 0x1a2   : > { %v843_v29 = vadd.f32 %v1825_v24, %v2659_v43  ;;  %v1938_v32 = vpop.f32.mrf.mxu1  ;;  %v2759_v33 = vadd.f32 %v1069_v22, %v999_v23 }
 0x1a3   : > { %v1827_v34 = vpop.f32.mrf.mxu0 }
 0x1a4   : > { %v1004_v36 = vadd.f32 %v1937_v31, %v843_v29  ;;  %v1828_v38 = vadd.f32 %v1827_v34, %v1826_v26  ;;  %v1939_v39 = vpop.f32.mrf.mxu1  ;;  %1152 = vadd.xlane.f32.xlu1 %v2759_v33  ;;  %v1074_v34 = vld [vmem:[%s2504_s13 + $0xc0] sm:$0xff] }
 0x1a5   : > { %v1829_v44 = vpop.f32.mrf.mxu0  ;;  %v1940_v47 = vadd.f32 %v1939_v39, %v1938_v32 }
 0x1a6   : > { %v846_v45 = vadd.f32 %v1828_v38, %v2659_v43  ;;  %v1941_v48 = vpop.f32.mrf.mxu1  ;;  %v2764_v49 = vadd.f32 %v1070_v35, %v1004_v36 }
 0x1a7   : > { %v1830_v53 = vpop.f32.mrf.mxu0 }
 0x1a8   : > { %v1007_v55 = vadd.f32 %v1940_v47, %v846_v45  ;;  %v1831_v56 = vadd.f32 %v1830_v53, %v1829_v44  ;;  %v1942_v42 = vpop.f32.mrf.mxu1  ;;  %1154 = vadd.xlane.f32.xlu0 %v2764_v49 }
 0x1a9   : > { %v1832_v59 = vpop.f32.mrf.mxu0  ;;  %v1943_v62 = vadd.f32 %v1942_v42, %v1941_v48 }
 0x1aa   : > { %v851_v46 = vadd.f32 %v1831_v56, %v2659_v43  ;;  %v1944_v63 = vpop.f32.mrf.mxu1  ;;  %v2769_v0 = vadd.f32 %v1071_v54, %v1007_v55  ;;  %v1075_v54 = vld [vmem:[%s2504_s13 + $0xc8] sm:$0xff] }
 0x1ab   : > { %v1833_v1 = vpop.f32.mrf.mxu0 }
 0x1ac   : > { %v1012_v4 = vadd.f32 %v1943_v62, %v851_v46  ;;  %v1834_v6 = vadd.f32 %v1833_v1, %v1832_v59  ;;  %v1945_v9 = vpop.f32.mrf.mxu1  ;;  %1156 = vadd.xlane.f32.xlu1 %v2769_v0 }
 0x1ad   : > { %v1835_v10 = vpop.f32.mrf.mxu0  ;;  %v1946_v12 = vadd.f32 %v1945_v9, %v1944_v63 }
 0x1ae   : > { %v854_v11 = vadd.f32 %v1834_v6, %v2659_v43  ;;  %v1947_v13 = vpop.f32.mrf.mxu1  ;;  %v2774_v14 = vadd.f32 %v1072_v2, %v1012_v4  ;;  %v1076_v4 = vld [vmem:[%s2504_s13 + $0xd0] sm:$0xff] }
 0x1af   : > { %v1836_v16 = vpop.f32.mrf.mxu0 }
 0x1b0   : > { %v1015_v21 = vadd.f32 %v1946_v12, %v854_v11  ;;  %v1837_v22 = vadd.f32 %v1836_v16, %v1835_v10  ;;  %v1948_v23 = vpop.f32.mrf.mxu1  ;;  %1158 = vadd.xlane.f32.xlu0 %v2774_v14 }
 0x1b1   : > { %v1838_v24 = vpop.f32.mrf.mxu0  ;;  %v1949_v26 = vadd.f32 %v1948_v23, %v1947_v13 }
 0x1b2   : > { %v859_v25 = vadd.f32 %v1837_v22, %v2659_v43  ;;  %v1950_v29 = vpop.f32.mrf.mxu1  ;;  %v2779_v31 = vadd.f32 %v1073_v18, %v1015_v21  ;;  %v1077_v22 = vld [vmem:[%s2504_s13 + $0xd8] sm:$0xff] }
 0x1b3   : > { %v1839_v32 = vpop.f32.mrf.mxu0 }
 0x1b4   : > { %v1020_v35 = vadd.f32 %v1949_v26, %v859_v25  ;;  %v1840_v36 = vadd.f32 %v1839_v32, %v1838_v24  ;;  %v1951_v38 = vpop.f32.mrf.mxu1  ;;  %1160 = vadd.xlane.f32.xlu1 %v2779_v31 }
 0x1b5   : > { %v1841_v39 = vpop.f32.mrf.mxu0  ;;  %v1952_v45 = vadd.f32 %v1951_v38, %v1950_v29  ;;  %v1078_v38 = vld [vmem:[%s2504_s13 + $0xe0] sm:$0xff] }
 0x1b6   : > { %v862_v44 = vadd.f32 %v1840_v36, %v2659_v43  ;;  %v1953_v47 = vpop.f32.mrf.mxu1  ;;  %v2784_v48 = vadd.f32 %v1074_v34, %v1020_v35 }
 0x1b7   : > { %v1842_v53 = vpop.f32.mrf.mxu0 }
 0x1b8   : > { %v1023_v55 = vadd.f32 %v1952_v45, %v862_v44  ;;  %v1843_v56 = vadd.f32 %v1842_v53, %v1841_v39  ;;  %v1954_v42 = vpop.f32.mrf.mxu1  ;;  %1162 = vadd.xlane.f32.xlu0 %v2784_v48 }
 0x1b9   : > { %v1844_v59 = vpop.f32.mrf.mxu0  ;;  %v1955_v62 = vadd.f32 %v1954_v42, %v1953_v47 }
 0x1ba   : > { %v867_v46 = vadd.f32 %v1843_v56, %v2659_v43  ;;  %v1956_v63 = vpop.f32.mrf.mxu1  ;;  %v2789_v1 = vadd.f32 %v1075_v54, %v1023_v55 }
 0x1bb   : > { %v1845_v2 = vpop.f32.mrf.mxu0 }
 0x1bc   : > { %v1028_v6 = vadd.f32 %v1955_v62, %v867_v46  ;;  %v1846_v9 = vadd.f32 %v1845_v2, %v1844_v59  ;;  %v1957_v10 = vpop.f32.mrf.mxu1  ;;  %1164 = vadd.xlane.f32.xlu1 %v2789_v1  ;;  %v1079_v59 = vld [vmem:[%s2504_s13 + $0xe8] sm:$0xff] }
 0x1bd   : > { %v1847_v11 = vpop.f32.mrf.mxu0  ;;  %v1958_v13 = vadd.f32 %v1957_v10, %v1956_v63 }
 0x1be   : > { %v870_v12 = vadd.f32 %v1846_v9, %v2659_v43  ;;  %v1959_v16 = vpop.f32.mrf.mxu1  ;;  %v2794_v18 = vadd.f32 %v1076_v4, %v1028_v6 }
 0x1bf   : > { %v1848_v21 = vpop.f32.mrf.mxu0 }
 0x1c0   : > { %v1031_v23 = vadd.f32 %v1958_v13, %v870_v12  ;;  %v1849_v24 = vadd.f32 %v1848_v21, %v1847_v11  ;;  %v1960_v25 = vpop.f32.mrf.mxu1  ;;  %1166 = vadd.xlane.f32.xlu0 %v2794_v18  ;;  %v1080_v12 = vld [vmem:[%s2504_s13 + $0xf0] sm:$0xff] }
 0x1c1   : > { %v1850_v26 = vpop.f32.mrf.mxu0  ;;  %v1961_v32 = vadd.f32 %v1960_v25, %v1959_v16  ;;  %v1081_v25 = vld [vmem:[%s2504_s13 + $0xf8] sm:$0xff] }
 0x1c2   : > { %v875_v29 = vadd.f32 %v1849_v24, %v2659_v43  ;;  %v1962_v34 = vpop.f32.mrf.mxu1  ;;  %v2799_v35 = vadd.f32 %v1077_v22, %v1031_v23 }
 0x1c3   : > { %v1851_v36 = vpop.f32.mrf.mxu0 }
 0x1c4   : > { %v1036_v39 = vadd.f32 %v1961_v32, %v875_v29  ;;  %v1852_v44 = vadd.f32 %v1851_v36, %v1850_v26  ;;  %v1963_v45 = vpop.f32.mrf.mxu1  ;;  %1168 = vadd.xlane.f32.xlu1 %v2799_v35 }
 0x1c5   : > { %v1853_v47 = vpop.f32.mrf.mxu0  ;;  %v1964_v54 = vadd.f32 %v1963_v45, %v1962_v34 }
 0x1c6   : > { %v878_v53 = vadd.f32 %v1852_v44, %v2659_v43  ;;  %v1965_v55 = vpop.f32.mrf.mxu1  ;;  %v2804_v56 = vadd.f32 %v1078_v38, %v1036_v39 }
 0x1c7   : > { %v1854_v42 = vpop.f32.mrf.mxu0 }
 0x1c8   : > { %v1039_v46 = vadd.f32 %v1964_v54, %v878_v53  ;;  %v1855_v62 = vadd.f32 %v1854_v42, %v1853_v47  ;;  %v1966_v63 = vpop.f32.mrf.mxu1  ;;  %1170 = vadd.xlane.f32.xlu0 %v2804_v56 }
 0x1c9   : > { %v1856_v2 = vpop.f32.mrf.mxu0  ;;  %v1967_v6 = vadd.f32 %v1966_v63, %v1965_v55 }
 0x1ca   : > { %v883_v4 = vadd.f32 %v1855_v62, %v2659_v43  ;;  %v1968_v9 = vpop.f32.mrf.mxu1  ;;  %v2809_v10 = vadd.f32 %v1079_v59, %v1039_v46 }
 0x1cb   : > { %v1857_v11 = vpop.f32.mrf.mxu0 }
 0x1cc   : > { %v1044_v13 = vadd.f32 %v1967_v6, %v883_v4  ;;  %v1858_v16 = vadd.f32 %v1857_v11, %v1856_v2  ;;  %v1969_v21 = vpop.f32.mrf.mxu1  ;;  %1172 = vadd.xlane.f32.xlu1 %v2809_v10 }
 0x1cd   : > { %v1970_v23 = vadd.f32 %v1969_v21, %v1968_v9 }
 0x1ce   : > { %v886_v22 = vadd.f32 %v1858_v16, %v2659_v43  ;;  %v2814_v24 = vadd.f32 %v1080_v12, %v1044_v13 }
 0x1d0   : > { %v1047_v26 = vadd.f32 %v1970_v23, %v886_v22  ;;  %1174 = vadd.xlane.f32.xlu0 %v2814_v24 }
 0x1d2   : > { %v2818_v29 = vadd.f32 %v1081_v25, %v1047_v26 }
 0x1d4   : > { %1176 = vadd.xlane.f32.xlu1 %v2818_v29 }
 0x1e1   : > { %v1115_v32 = vpop.xlane.xlu0 %1114 }
 0x1e2   : > { %v1179_v34 = vmul.f32 0.0078125, %v1115_v32 }
 0x1e4   : > { %v2822_v36 = vsub.f32 %v2664_v61, %v1179_v34 }
 0x1e5   : > { %v1117_v38 = vpop.xlane.xlu0 %1116 }
 0x1e6   : > { %v1180_v39 = vmul.f32 0.0078125, %v1117_v38  ;;  %v1243_v43 = vmul.f32 %v2822_v36, %v2822_v36 }
 0x1e8   : > { %v2827_v44 = vsub.f32 %v2669_v7, %v1180_v39  ;;  %1275 = vadd.xlane.f32.xlu0 %v1243_v43 }
 0x1e9   : > { %v1119_v45 = vpop.xlane.xlu1 %1118 }
 0x1ea   : > { %v1181_v47 = vmul.f32 0.0078125, %v1119_v45  ;;  %v1244_v53 = vmul.f32 %v2827_v44, %v2827_v44 }
 0x1ec   : > { %v2832_v54 = vsub.f32 %v2674_v17, %v1181_v47  ;;  %1277 = vadd.xlane.f32.xlu1 %v1244_v53 }
 0x1ed   : > { %v1121_v61 = vpop.xlane.xlu1 %1120 }
 0x1ee   : > { %v1182_v55 = vmul.f32 0.0078125, %v1121_v61  ;;  %v1245_v42 = vmul.f32 %v2832_v54, %v2832_v54 }
 0x1f0   : > { %v2837_v59 = vsub.f32 %v2679_v27, %v1182_v55  ;;  %1279 = vadd.xlane.f32.xlu0 %v1245_v42 }
 0x1f1   : > { %v1123_v7 = vpop.xlane.xlu0 %1122 }
 0x1f2   : > { %v1183_v46 = vmul.f32 0.0078125, %v1123_v7  ;;  %v1246_v62 = vmul.f32 %v2837_v59, %v2837_v59 }
 0x1f4   : > { %v2842_v63 = vsub.f32 %v2684_v37, %v1183_v46  ;;  %1281 = vadd.xlane.f32.xlu1 %v1246_v62 }
 0x1f5   : > { %v1125_v17 = vpop.xlane.xlu1 %1124 }
 0x1f6   : > { %v1184_v2 = vmul.f32 0.0078125, %v1125_v17  ;;  %v1247_v4 = vmul.f32 %v2842_v63, %v2842_v63 }
 0x1f8   : > { %v2847_v6 = vsub.f32 %v2689_v52, %v1184_v2  ;;  %1283 = vadd.xlane.f32.xlu0 %v1247_v4 }
 0x1f9   : > { %v1127_v27 = vpop.xlane.xlu0 %1126 }
 0x1fa   : > { %v1185_v9 = vmul.f32 0.0078125, %v1127_v27  ;;  %v1248_v11 = vmul.f32 %v2847_v6, %v2847_v6 }
 0x1fc   : > { %v2852_v12 = vsub.f32 %v2694_v60, %v1185_v9  ;;  %1285 = vadd.xlane.f32.xlu1 %v1248_v11 }
 0x1fd   : > { %v1129_v37 = vpop.xlane.xlu1 %1128 }
 0x1fe   : > { %v1186_v13 = vmul.f32 0.0078125, %v1129_v37  ;;  %v1249_v16 = vmul.f32 %v2852_v12, %v2852_v12 }
 0x200   : > { %v2857_v21 = vsub.f32 %v2699_v8, %v1186_v13  ;;  %1287 = vadd.xlane.f32.xlu0 %v1249_v16 }
 0x201   : > { %v1131_v52 = vpop.xlane.xlu0 %1130 }
 0x202   : > { %v1187_v22 = vmul.f32 0.0078125, %v1131_v52  ;;  %v1250_v23 = vmul.f32 %v2857_v21, %v2857_v21 }
 0x204   : > { %v2862_v25 = vsub.f32 %v2704_v19, %v1187_v22  ;;  %1289 = vadd.xlane.f32.xlu1 %v1250_v23 }
 0x205   : > { %v1133_v60 = vpop.xlane.xlu1 %1132 }
 0x206   : > { %v1188_v26 = vmul.f32 0.0078125, %v1133_v60  ;;  %v1251_v32 = vmul.f32 %v2862_v25, %v2862_v25 }
 0x208   : > { %v2867_v34 = vsub.f32 %v2709_v30, %v1188_v26  ;;  %1291 = vadd.xlane.f32.xlu0 %v1251_v32 }
 0x209   : > { %v1135_v8 = vpop.xlane.xlu0 %1134 }
 0x20a   : > { %v1189_v38 = vmul.f32 0.0078125, %v1135_v8  ;;  %v1252_v39 = vmul.f32 %v2867_v34, %v2867_v34 }
 0x20c   : > { %v2872_v43 = vsub.f32 %v2714_v41, %v1189_v38  ;;  %1293 = vadd.xlane.f32.xlu1 %v1252_v39 }
 0x20d   : > { %v1137_v19 = vpop.xlane.xlu1 %1136 }
 0x20e   : > { %v1190_v45 = vmul.f32 0.0078125, %v1137_v19  ;;  %v1253_v47 = vmul.f32 %v2872_v43, %v2872_v43 }
 0x210   : > { %v2877_v53 = vsub.f32 %v2719_v57, %v1190_v45  ;;  %1295 = vadd.xlane.f32.xlu0 %v1253_v47 }
 0x211   : > { %v1139_v30 = vpop.xlane.xlu0 %1138 }
 0x212   : > { %v1191_v61 = vmul.f32 0.0078125, %v1139_v30  ;;  %v1254_v55 = vmul.f32 %v2877_v53, %v2877_v53 }
 0x214   : > { %v2882_v42 = vsub.f32 %v2724_v3, %v1191_v61  ;;  %1297 = vadd.xlane.f32.xlu1 %v1254_v55 }
 0x215   : > { %v1141_v41 = vpop.xlane.xlu1 %1140 }
 0x216   : > { %v1192_v7 = vmul.f32 0.0078125, %v1141_v41  ;;  %v1255_v46 = vmul.f32 %v2882_v42, %v2882_v42 }
 0x218   : > { %v2887_v62 = vsub.f32 %v2729_v15, %v1192_v7  ;;  %1299 = vadd.xlane.f32.xlu0 %v1255_v46 }
 0x219   : > { %v1143_v57 = vpop.xlane.xlu0 %1142 }
 0x21a   : > { %v1193_v17 = vmul.f32 0.0078125, %v1143_v57  ;;  %v1256_v2 = vmul.f32 %v2887_v62, %v2887_v62 }
 0x21c   : > { %v2892_v4 = vsub.f32 %v2734_v28, %v1193_v17  ;;  %1301 = vadd.xlane.f32.xlu1 %v1256_v2 }
 0x21d   : > { %v1145_v3 = vpop.xlane.xlu1 %1144 }
 0x21e   : > { %v1194_v27 = vmul.f32 0.0078125, %v1145_v3  ;;  %v1257_v9 = vmul.f32 %v2892_v4, %v2892_v4 }
 0x220   : > { %v2897_v11 = vsub.f32 %v2739_v40, %v1194_v27  ;;  %1303 = vadd.xlane.f32.xlu0 %v1257_v9 }
 0x221   : > { %v1147_v15 = vpop.xlane.xlu0 %1146 }
 0x222   : > { %v1195_v37 = vmul.f32 0.0078125, %v1147_v15  ;;  %v1258_v13 = vmul.f32 %v2897_v11, %v2897_v11 }
 0x224   : > { %v2902_v16 = vsub.f32 %v2744_v58, %v1195_v37  ;;  %1305 = vadd.xlane.f32.xlu1 %v1258_v13 }
 0x225   : > { %v1149_v28 = vpop.xlane.xlu1 %1148 }
 0x226   : > { %v1196_v52 = vmul.f32 0.0078125, %v1149_v28  ;;  %v1259_v22 = vmul.f32 %v2902_v16, %v2902_v16 }
 0x228   : > { %v2907_v23 = vsub.f32 %v2749_v5, %v1196_v52  ;;  %1307 = vadd.xlane.f32.xlu0 %v1259_v22 }
 0x229   : > { %v1151_v40 = vpop.xlane.xlu0 %1150 }
 0x22a   : > { %v1197_v60 = vmul.f32 0.0078125, %v1151_v40  ;;  %v1260_v26 = vmul.f32 %v2907_v23, %v2907_v23 }
 0x22c   : > { %v2912_v32 = vsub.f32 %v2754_v20, %v1197_v60  ;;  %1309 = vadd.xlane.f32.xlu1 %v1260_v26 }
 0x22d   : > { %v1153_v58 = vpop.xlane.xlu1 %1152 }
 0x22e   : > { %v1198_v8 = vmul.f32 0.0078125, %v1153_v58  ;;  %v1261_v38 = vmul.f32 %v2912_v32, %v2912_v32 }
 0x230   : > { %v2917_v39 = vsub.f32 %v2759_v33, %v1198_v8  ;;  %1311 = vadd.xlane.f32.xlu0 %v1261_v38 }
 0x231   : > { %v1155_v5 = vpop.xlane.xlu0 %1154 }
 0x232   : > { %v1199_v19 = vmul.f32 0.0078125, %v1155_v5  ;;  %v1262_v45 = vmul.f32 %v2917_v39, %v2917_v39 }
 0x234   : > { %v2922_v47 = vsub.f32 %v2764_v49, %v1199_v19  ;;  %1313 = vadd.xlane.f32.xlu1 %v1262_v45 }
 0x235   : > { %v1157_v20 = vpop.xlane.xlu1 %1156 }
 0x236   : > { %v1200_v30 = vmul.f32 0.0078125, %v1157_v20  ;;  %v1263_v61 = vmul.f32 %v2922_v47, %v2922_v47 }
 0x238   : > { %v2927_v55 = vsub.f32 %v2769_v0, %v1200_v30  ;;  %1315 = vadd.xlane.f32.xlu0 %v1263_v61 }
 0x239   : > { %v1159_v33 = vpop.xlane.xlu0 %1158 }
 0x23a   : > { %v1201_v41 = vmul.f32 0.0078125, %v1159_v33  ;;  %v1264_v7 = vmul.f32 %v2927_v55, %v2927_v55 }
 0x23c   : > { %v2932_v46 = vsub.f32 %v2774_v14, %v1201_v41  ;;  %1317 = vadd.xlane.f32.xlu1 %v1264_v7 }
 0x23d   : > { %v1161_v49 = vpop.xlane.xlu1 %1160 }
 0x23e   : > { %v1202_v57 = vmul.f32 0.0078125, %v1161_v49  ;;  %v1265_v17 = vmul.f32 %v2932_v46, %v2932_v46 }
 0x240   : > { %v2937_v2 = vsub.f32 %v2779_v31, %v1202_v57  ;;  %1319 = vadd.xlane.f32.xlu0 %v1265_v17 }
 0x241   : > { %v1163_v0 = vpop.xlane.xlu0 %1162 }
 0x242   : > { %v1203_v3 = vmul.f32 0.0078125, %v1163_v0  ;;  %v1266_v27 = vmul.f32 %v2937_v2, %v2937_v2 }
 0x244   : > { %v2942_v9 = vsub.f32 %v2784_v48, %v1203_v3  ;;  %1321 = vadd.xlane.f32.xlu1 %v1266_v27 }
 0x245   : > { %v1165_v14 = vpop.xlane.xlu1 %1164 }
 0x246   : > { %v1204_v15 = vmul.f32 0.0078125, %v1165_v14  ;;  %v1267_v37 = vmul.f32 %v2942_v9, %v2942_v9 }
 0x248   : > { %v2947_v13 = vsub.f32 %v2789_v1, %v1204_v15  ;;  %1323 = vadd.xlane.f32.xlu0 %v1267_v37 }
 0x249   : > { %v1167_v31 = vpop.xlane.xlu0 %1166 }
 0x24a   : > { %v1205_v28 = vmul.f32 0.0078125, %v1167_v31  ;;  %v1268_v52 = vmul.f32 %v2947_v13, %v2947_v13 }
 0x24c   : > { %v2952_v22 = vsub.f32 %v2794_v18, %v1205_v28  ;;  %1325 = vadd.xlane.f32.xlu1 %v1268_v52 }
 0x24d   : > { %v1169_v48 = vpop.xlane.xlu1 %1168 }
 0x24e   : > { %v1206_v40 = vmul.f32 0.0078125, %v1169_v48  ;;  %v1269_v60 = vmul.f32 %v2952_v22, %v2952_v22 }
 0x250   : > { %v2957_v26 = vsub.f32 %v2799_v35, %v1206_v40  ;;  %1327 = vadd.xlane.f32.xlu0 %v1269_v60 }
 0x251   : > { %v1171_v1 = vpop.xlane.xlu0 %1170 }
 0x252   : > { %v1207_v58 = vmul.f32 0.0078125, %v1171_v1  ;;  %v1270_v8 = vmul.f32 %v2957_v26, %v2957_v26 }
 0x254   : > { %v2962_v38 = vsub.f32 %v2804_v56, %v1207_v58  ;;  %1329 = vadd.xlane.f32.xlu1 %v1270_v8 }
 0x255   : > { %v1173_v18 = vpop.xlane.xlu1 %1172 }
 0x256   : > { %v1208_v5 = vmul.f32 0.0078125, %v1173_v18  ;;  %v1271_v19 = vmul.f32 %v2962_v38, %v2962_v38 }
 0x258   : > { %v2967_v45 = vsub.f32 %v2809_v10, %v1208_v5  ;;  %1331 = vadd.xlane.f32.xlu0 %v1271_v19 }
 0x259   : > { %v1175_v35 = vpop.xlane.xlu0 %1174 }
 0x25a   : > { %v1209_v20 = vmul.f32 0.0078125, %v1175_v35  ;;  %v1272_v30 = vmul.f32 %v2967_v45, %v2967_v45 }
 0x25c   : > { %v2972_v61 = vsub.f32 %v2814_v24, %v1209_v20  ;;  %1333 = vadd.xlane.f32.xlu1 %v1272_v30 }
 0x25d   : > { %v1177_v56 = vpop.xlane.xlu1 %1176 }
 0x25e   : > { %v1210_v33 = vmul.f32 0.0078125, %v1177_v56  ;;  %v1273_v41 = vmul.f32 %v2972_v61, %v2972_v61 }
 0x260   : > { %v2977_v7 = vsub.f32 %v2818_v29, %v1210_v33  ;;  %1335 = vadd.xlane.f32.xlu0 %v1273_v41 }
 0x262   : > { %v1274_v10 = vmul.f32 %v2977_v7, %v2977_v7 }
 0x264   : > { %1337 = vadd.xlane.f32.xlu1 %v1274_v10 }
 0x271   : > { %v1276_v49 = vpop.xlane.xlu0 %1275 }
 0x272   : > { %v1339_v57 = vmul.f32 0.0078125, %v1276_v49 }
 0x274   : > { %v1371_v17 = vadd.f32 1e-12, %v1339_v57 }
 0x275   : > { %v1278_v0 = vpop.xlane.xlu1 %1277 }
 0x276   : > { %2073 = vrsqrt.f32 %v1371_v17  ;;  %v1340_v24 = vmul.f32 0.0078125, %v1278_v0 }
 0x278   : > { %v1372_v3 = vadd.f32 1e-12, %v1340_v24 }
 0x279   : > { %v1280_v27 = vpop.xlane.xlu0 %1279 }
 0x27a   : > { %2075 = vrsqrt.f32 %v1372_v3  ;;  %v1341_v14 = vmul.f32 0.0078125, %v1280_v27 }
 0x27c   : > { %v1373_v15 = vadd.f32 1e-12, %v1341_v14 }
 0x27d   : > { %v1282_v37 = vpop.xlane.xlu1 %1281 }
 0x27e   : > { %2077 = vrsqrt.f32 %v1373_v15  ;;  %v1342_v29 = vmul.f32 0.0078125, %v1282_v37 }
 0x280   : > { %v1374_v31 = vadd.f32 1e-12, %v1342_v29 }
 0x281   : > { %v1284_v28 = vpop.xlane.xlu0 %1283 }
 0x282   : > { %2079 = vrsqrt.f32 %v1374_v31  ;;  %v1343_v52 = vmul.f32 0.0078125, %v1284_v28 }
 0x283   : > { %v2074_v48 = vpop.eup %2073 }
 0x284   : > { %v1439_v40 = vmul.f32 %v2074_v48, %v2619_v50  ;;  %v1375_v60 = vadd.f32 1e-12, %v1343_v52 }
 0x285   : > { %v1286_v1 = vpop.xlane.xlu1 %1285 }
 0x286   : > { %v1471_v58 = vmul.f32 %v1439_v40, %v2822_v36  ;;  %2081 = vrsqrt.f32 %v1375_v60  ;;  %v1344_v8 = vmul.f32 0.0078125, %v1286_v1 }
 0x287   : > { %v2076_v18 = vpop.eup %2075 }
 0x288   : > { %v1507_v5 = vadd.f32 %v2622_v51, %v1471_v58  ;;  %v1440_v19 = vmul.f32 %v2076_v18, %v2619_v50  ;;  %v1376_v35 = vadd.f32 1e-12, %v1344_v8 }
 0x289   : > { %v1288_v20 = vpop.xlane.xlu0 %1287 }
 0x28a   : > { %1539 = vst [vmem:[%s2987_s26] sm:$0xff] %v1507_v5  ;;  %v1472_v30 = vmul.f32 %v1440_v19, %v2827_v44  ;;  %2083 = vrsqrt.f32 %v1376_v35  ;;  %v1345_v36 = vmul.f32 0.0078125, %v1288_v20 }
 0x28b   : > { %v2078_v56 = vpop.eup %2077 }
 0x28c   : > { %v1508_v33 = vadd.f32 %v2622_v51, %v1472_v30  ;;  %v1441_v41 = vmul.f32 %v2078_v56, %v2619_v50  ;;  %v1377_v10 = vadd.f32 1e-12, %v1345_v36 }
 0x28d   : > { %v1290_v49 = vpop.xlane.xlu1 %1289 }
 0x28e   : > { %1540 = vst [vmem:[%s2987_s26 + $0x8] sm:$0xff] %v1508_v33  ;;  %v1473_v57 = vmul.f32 %v1441_v41, %v2832_v54  ;;  %2085 = vrsqrt.f32 %v1377_v10  ;;  %v1346_v17 = vmul.f32 0.0078125, %v1290_v49 }
 0x28f   : > { %v2080_v0 = vpop.eup %2079 }
 0x290   : > { %v1509_v24 = vadd.f32 %v2622_v51, %v1473_v57  ;;  %v1442_v44 = vmul.f32 %v2080_v0, %v2619_v50  ;;  %v1378_v3 = vadd.f32 1e-12, %v1346_v17 }
 0x291   : > { %v1292_v27 = vpop.xlane.xlu0 %1291 }
 0x292   : > { %1541 = vst [vmem:[%s2987_s26 + $0x10] sm:$0xff] %v1509_v24  ;;  %v1474_v14 = vmul.f32 %v1442_v44, %v2837_v59  ;;  %2087 = vrsqrt.f32 %v1378_v3  ;;  %v1347_v15 = vmul.f32 0.0078125, %v1292_v27 }
 0x293   : > { %v2082_v37 = vpop.eup %2081 }
 0x294   : > { %v1510_v29 = vadd.f32 %v2622_v51, %v1474_v14  ;;  %v1443_v54 = vmul.f32 %v2082_v37, %v2619_v50  ;;  %v1379_v31 = vadd.f32 1e-12, %v1347_v15 }
 0x295   : > { %v1294_v28 = vpop.xlane.xlu1 %1293 }
 0x296   : > { %1542 = vst [vmem:[%s2987_s26 + $0x18] sm:$0xff] %v1510_v29  ;;  %v1475_v52 = vmul.f32 %v1443_v54, %v2842_v63  ;;  %2089 = vrsqrt.f32 %v1379_v31  ;;  %v1348_v48 = vmul.f32 0.0078125, %v1294_v28 }
 0x297   : > { %v2084_v40 = vpop.eup %2083 }
 0x298   : > { %v1511_v60 = vadd.f32 %v2622_v51, %v1475_v52  ;;  %v1444_v59 = vmul.f32 %v2084_v40, %v2619_v50  ;;  %v1380_v1 = vadd.f32 1e-12, %v1348_v48 }
 0x299   : > { %v1296_v58 = vpop.xlane.xlu0 %1295 }
 0x29a   : > { %1543 = vst [vmem:[%s2987_s26 + $0x20] sm:$0xff] %v1511_v60  ;;  %v1476_v8 = vmul.f32 %v1444_v59, %v2847_v6  ;;  %2091 = vrsqrt.f32 %v1380_v1  ;;  %v1349_v18 = vmul.f32 0.0078125, %v1296_v58 }
 0x29b   : > { %v2086_v5 = vpop.eup %2085 }
 0x29c   : > { %v1512_v19 = vadd.f32 %v2622_v51, %v1476_v8  ;;  %v1445_v63 = vmul.f32 %v2086_v5, %v2619_v50  ;;  %v1381_v35 = vadd.f32 1e-12, %v1349_v18 }
 0x29d   : > { %v1298_v20 = vpop.xlane.xlu1 %1297 }
 0x29e   : > { %1544 = vst [vmem:[%s2987_s26 + $0x28] sm:$0xff] %v1512_v19  ;;  %v1477_v30 = vmul.f32 %v1445_v63, %v2852_v12  ;;  %2093 = vrsqrt.f32 %v1381_v35  ;;  %v1350_v36 = vmul.f32 0.0078125, %v1298_v20 }
 0x29f   : > { %v2088_v56 = vpop.eup %2087 }
 0x2a0   : > { %v1513_v33 = vadd.f32 %v2622_v51, %v1477_v30  ;;  %v1446_v6 = vmul.f32 %v2088_v56, %v2619_v50  ;;  %v1382_v41 = vadd.f32 1e-12, %v1350_v36 }
 0x2a1   : > { %v1300_v10 = vpop.xlane.xlu0 %1299 }
 0x2a2   : > { %1545 = vst [vmem:[%s2987_s26 + $0x30] sm:$0xff] %v1513_v33  ;;  %v1478_v49 = vmul.f32 %v1446_v6, %v2857_v21  ;;  %2095 = vrsqrt.f32 %v1382_v41  ;;  %v1351_v57 = vmul.f32 0.0078125, %v1300_v10 }
 0x2a3   : > { %v2090_v17 = vpop.eup %2089 }
 0x2a4   : > { %v1514_v0 = vadd.f32 %v2622_v51, %v1478_v49  ;;  %v1447_v12 = vmul.f32 %v2090_v17, %v2619_v50  ;;  %v1383_v24 = vadd.f32 1e-12, %v1351_v57 }
 0x2a5   : > { %v1302_v44 = vpop.xlane.xlu1 %1301 }
 0x2a6   : > { %1546 = vst [vmem:[%s2987_s26 + $0x38] sm:$0xff] %v1514_v0  ;;  %v1479_v3 = vmul.f32 %v1447_v12, %v2862_v25  ;;  %2097 = vrsqrt.f32 %v1383_v24  ;;  %v1352_v27 = vmul.f32 0.0078125, %v1302_v44 }
 0x2a7   : > { %v2092_v14 = vpop.eup %2091 }
 0x2a8   : > { %v1515_v15 = vadd.f32 %v2622_v51, %v1479_v3  ;;  %v1448_v21 = vmul.f32 %v2092_v14, %v2619_v50  ;;  %v1384_v37 = vadd.f32 1e-12, %v1352_v27 }
 0x2a9   : > { %v1304_v29 = vpop.xlane.xlu0 %1303 }
 0x2aa   : > { %1547 = vst [vmem:[%s2987_s26 + $0x40] sm:$0xff] %v1515_v15  ;;  %v1480_v54 = vmul.f32 %v1448_v21, %v2867_v34  ;;  %2099 = vrsqrt.f32 %v1384_v37  ;;  %v1353_v31 = vmul.f32 0.0078125, %v1304_v29 }
 0x2ab   : > { %v2094_v28 = vpop.eup %2093 }
 0x2ac   : > { %v1516_v52 = vadd.f32 %v2622_v51, %v1480_v54  ;;  %v1449_v25 = vmul.f32 %v2094_v28, %v2619_v50  ;;  %v1385_v48 = vadd.f32 1e-12, %v1353_v31 }
 0x2ad   : > { %v1306_v40 = vpop.xlane.xlu1 %1305 }
 0x2ae   : > { %1548 = vst [vmem:[%s2987_s26 + $0x48] sm:$0xff] %v1516_v52  ;;  %v1481_v60 = vmul.f32 %v1449_v25, %v2872_v43  ;;  %2101 = vrsqrt.f32 %v1385_v48  ;;  %v1354_v59 = vmul.f32 0.0078125, %v1306_v40 }
 0x2af   : > { %v2096_v1 = vpop.eup %2095 }
 0x2b0   : > { %v1517_v58 = vadd.f32 %v2622_v51, %v1481_v60  ;;  %v1450_v34 = vmul.f32 %v2096_v1, %v2619_v50  ;;  %v1386_v8 = vadd.f32 1e-12, %v1354_v59 }
 0x2b1   : > { %v1308_v18 = vpop.xlane.xlu0 %1307 }
 0x2b2   : > { %1549 = vst [vmem:[%s2987_s26 + $0x50] sm:$0xff] %v1517_v58  ;;  %v1482_v5 = vmul.f32 %v1450_v34, %v2877_v53  ;;  %2103 = vrsqrt.f32 %v1386_v8  ;;  %v1355_v19 = vmul.f32 0.0078125, %v1308_v18 }
 0x2b3   : > { %v2098_v63 = vpop.eup %2097 }
 0x2b4   : > { %v1518_v35 = vadd.f32 %v2622_v51, %v1482_v5  ;;  %v1451_v43 = vmul.f32 %v2098_v63, %v2619_v50  ;;  %v1387_v20 = vadd.f32 1e-12, %v1355_v19 }
 0x2b5   : > { %v1310_v30 = vpop.xlane.xlu1 %1309 }
 0x2b6   : > { %1550 = vst [vmem:[%s2987_s26 + $0x58] sm:$0xff] %v1518_v35  ;;  %v1483_v36 = vmul.f32 %v1451_v43, %v2882_v42  ;;  %2105 = vrsqrt.f32 %v1387_v20  ;;  %v1356_v56 = vmul.f32 0.0078125, %v1310_v30 }
 0x2b7   : > { %v2100_v33 = vpop.eup %2099 }
 0x2b8   : > { %v1519_v6 = vadd.f32 %v2622_v51, %v1483_v36  ;;  %v1452_v53 = vmul.f32 %v2100_v33, %v2619_v50  ;;  %v1388_v41 = vadd.f32 1e-12, %v1356_v56 }
 0x2b9   : > { %v1312_v10 = vpop.xlane.xlu0 %1311 }
 0x2ba   : > { %1551 = vst [vmem:[%s2987_s26 + $0x60] sm:$0xff] %v1519_v6  ;;  %v1484_v49 = vmul.f32 %v1452_v53, %v2887_v62  ;;  %2107 = vrsqrt.f32 %v1388_v41  ;;  %v1357_v57 = vmul.f32 0.0078125, %v1312_v10 }
 0x2bb   : > { %v2102_v17 = vpop.eup %2101 }
 0x2bc   : > { %v1520_v0 = vadd.f32 %v2622_v51, %v1484_v49  ;;  %v1453_v42 = vmul.f32 %v2102_v17, %v2619_v50  ;;  %v1389_v12 = vadd.f32 1e-12, %v1357_v57 }
 0x2bd   : > { %v1314_v24 = vpop.xlane.xlu1 %1313 }
 0x2be   : > { %1552 = vst [vmem:[%s2987_s26 + $0x68] sm:$0xff] %v1520_v0  ;;  %v1485_v44 = vmul.f32 %v1453_v42, %v2892_v4  ;;  %2109 = vrsqrt.f32 %v1389_v12  ;;  %v1358_v3 = vmul.f32 0.0078125, %v1314_v24 }
 0x2bf   : > { %v2104_v27 = vpop.eup %2103 }
 0x2c0   : > { %v1521_v14 = vadd.f32 %v2622_v51, %v1485_v44  ;;  %v1454_v62 = vmul.f32 %v2104_v27, %v2619_v50  ;;  %v1390_v15 = vadd.f32 1e-12, %v1358_v3 }
 0x2c1   : > { %v1316_v21 = vpop.xlane.xlu0 %1315 }
 0x2c2   : > { %1553 = vst [vmem:[%s2987_s26 + $0x70] sm:$0xff] %v1521_v14  ;;  %v1486_v37 = vmul.f32 %v1454_v62, %v2897_v11  ;;  %2111 = vrsqrt.f32 %v1390_v15  ;;  %v1359_v29 = vmul.f32 0.0078125, %v1316_v21 }
 0x2c3   : > { %v2106_v54 = vpop.eup %2105 }
 0x2c4   : > { %v1522_v31 = vadd.f32 %v2622_v51, %v1486_v37  ;;  %v1455_v4 = vmul.f32 %v2106_v54, %v2619_v50  ;;  %v1391_v28 = vadd.f32 1e-12, %v1359_v29 }
 0x2c5   : > { %v1318_v52 = vpop.xlane.xlu1 %1317 }
 0x2c6   : > { %1554 = vst [vmem:[%s2987_s26 + $0x78] sm:$0xff] %v1522_v31  ;;  %v1487_v25 = vmul.f32 %v1455_v4, %v2902_v16  ;;  %2113 = vrsqrt.f32 %v1391_v28  ;;  %v1360_v48 = vmul.f32 0.0078125, %v1318_v52 }
 0x2c7   : > { %v2108_v40 = vpop.eup %2107 }
 0x2c8   : > { %v1523_v60 = vadd.f32 %v2622_v51, %v1487_v25  ;;  %v1456_v11 = vmul.f32 %v2108_v40, %v2619_v50  ;;  %v1392_v59 = vadd.f32 1e-12, %v1360_v48 }
 0x2c9   : > { %v1320_v1 = vpop.xlane.xlu0 %1319 }
 0x2ca   : > { %1555 = vst [vmem:[%s2987_s26 + $0x80] sm:$0xff] %v1523_v60  ;;  %v1488_v58 = vmul.f32 %v1456_v11, %v2907_v23  ;;  %2115 = vrsqrt.f32 %v1392_v59  ;;  %v1361_v34 = vmul.f32 0.0078125, %v1320_v1 }
 0x2cb   : > { %v2110_v8 = vpop.eup %2109 }
 0x2cc   : > { %v1524_v18 = vadd.f32 %v2622_v51, %v1488_v58  ;;  %v1457_v16 = vmul.f32 %v2110_v8, %v2619_v50  ;;  %v1393_v5 = vadd.f32 1e-12, %v1361_v34 }
 0x2cd   : > { %v1322_v19 = vpop.xlane.xlu1 %1321 }
 0x2ce   : > { %1556 = vst [vmem:[%s2987_s26 + $0x88] sm:$0xff] %v1524_v18  ;;  %v1489_v63 = vmul.f32 %v1457_v16, %v2912_v32  ;;  %2117 = vrsqrt.f32 %v1393_v5  ;;  %v1362_v35 = vmul.f32 0.0078125, %v1322_v19 }
 0x2cf   : > { %v2112_v43 = vpop.eup %2111 }
 0x2d0   : > { %v1525_v20 = vadd.f32 %v2622_v51, %v1489_v63  ;;  %v1458_v23 = vmul.f32 %v2112_v43, %v2619_v50  ;;  %v1394_v30 = vadd.f32 1e-12, %v1362_v35 }
 0x2d1   : > { %v1324_v36 = vpop.xlane.xlu0 %1323 }
 0x2d2   : > { %1557 = vst [vmem:[%s2987_s26 + $0x90] sm:$0xff] %v1525_v20  ;;  %v1490_v56 = vmul.f32 %v1458_v23, %v2917_v39  ;;  %2119 = vrsqrt.f32 %v1394_v30  ;;  %v1363_v33 = vmul.f32 0.0078125, %v1324_v36 }
 0x2d3   : > { %v2114_v6 = vpop.eup %2113 }
 0x2d4   : > { %v1526_v53 = vadd.f32 %v2622_v51, %v1490_v56  ;;  %v1459_v32 = vmul.f32 %v2114_v6, %v2619_v50  ;;  %v1395_v41 = vadd.f32 1e-12, %v1363_v33 }
 0x2d5   : > { %v1326_v10 = vpop.xlane.xlu1 %1325 }
 0x2d6   : > { %1558 = vst [vmem:[%s2987_s26 + $0x98] sm:$0xff] %v1526_v53  ;;  %v1491_v49 = vmul.f32 %v1459_v32, %v2922_v47  ;;  %2121 = vrsqrt.f32 %v1395_v41  ;;  %v1364_v57 = vmul.f32 0.0078125, %v1326_v10 }
 0x2d7   : > { %v2116_v17 = vpop.eup %2115 }
 0x2d8   : > { %v1527_v0 = vadd.f32 %v2622_v51, %v1491_v49  ;;  %v1460_v39 = vmul.f32 %v2116_v17, %v2619_v50  ;;  %v1396_v42 = vadd.f32 1e-12, %v1364_v57 }
 0x2d9   : > { %v1328_v12 = vpop.xlane.xlu0 %1327 }
 0x2da   : > { %1559 = vst [vmem:[%s2987_s26 + $0xa0] sm:$0xff] %v1527_v0  ;;  %v1492_v24 = vmul.f32 %v1460_v39, %v2927_v55  ;;  %2123 = vrsqrt.f32 %v1396_v42  ;;  %v1365_v44 = vmul.f32 0.0078125, %v1328_v12 }
 0x2db   : > { %v2118_v3 = vpop.eup %2117 }
 0x2dc   : > { %v1528_v27 = vadd.f32 %v2622_v51, %v1492_v24  ;;  %v1461_v47 = vmul.f32 %v2118_v3, %v2619_v50  ;;  %v1397_v14 = vadd.f32 1e-12, %v1365_v44 }
 0x2dd   : > { %v1330_v62 = vpop.xlane.xlu1 %1329 }
 0x2de   : > { %1560 = vst [vmem:[%s2987_s26 + $0xa8] sm:$0xff] %v1528_v27  ;;  %v1493_v15 = vmul.f32 %v1461_v47, %v2932_v46  ;;  %2125 = vrsqrt.f32 %v1397_v14  ;;  %v1366_v21 = vmul.f32 0.0078125, %v1330_v62 }
 0x2df   : > { %v2120_v37 = vpop.eup %2119 }
 0x2e0   : > { %v1529_v29 = vadd.f32 %v2622_v51, %v1493_v15  ;;  %v1462_v55 = vmul.f32 %v2120_v37, %v2619_v50  ;;  %v1398_v54 = vadd.f32 1e-12, %v1366_v21 }
 0x2e1   : > { %v1332_v31 = vpop.xlane.xlu0 %1331 }
 0x2e2   : > { %1561 = vst [vmem:[%s2987_s26 + $0xb0] sm:$0xff] %v1529_v29  ;;  %v1494_v4 = vmul.f32 %v1462_v55, %v2937_v2  ;;  %2127 = vrsqrt.f32 %v1398_v54  ;;  %v1367_v28 = vmul.f32 0.0078125, %v1332_v31 }
 0x2e3   : > { %v2122_v52 = vpop.eup %2121 }
 0x2e4   : > { %v1530_v25 = vadd.f32 %v2622_v51, %v1494_v4  ;;  %v1463_v46 = vmul.f32 %v2122_v52, %v2619_v50  ;;  %v1399_v48 = vadd.f32 1e-12, %v1367_v28 }
 0x2e5   : > { %v1334_v40 = vpop.xlane.xlu1 %1333 }
 0x2e6   : > { %1562 = vst [vmem:[%s2987_s26 + $0xb8] sm:$0xff] %v1530_v25  ;;  %v1495_v60 = vmul.f32 %v1463_v46, %v2942_v9  ;;  %2129 = vrsqrt.f32 %v1399_v48  ;;  %v1368_v11 = vmul.f32 0.0078125, %v1334_v40 }
 0x2e7   : > { %v2124_v59 = vpop.eup %2123 }
 0x2e8   : > { %v1531_v1 = vadd.f32 %v2622_v51, %v1495_v60  ;;  %v1464_v2 = vmul.f32 %v2124_v59, %v2619_v50  ;;  %v1400_v58 = vadd.f32 1e-12, %v1368_v11 }
 0x2e9   : > { %v1336_v34 = vpop.xlane.xlu0 %1335 }
 0x2ea   : > { %1563 = vst [vmem:[%s2987_s26 + $0xc0] sm:$0xff] %v1531_v1  ;;  %v1496_v8 = vmul.f32 %v1464_v2, %v2947_v13  ;;  %2131 = vrsqrt.f32 %v1400_v58  ;;  %v1369_v18 = vmul.f32 0.0078125, %v1336_v34 }
 0x2eb   : > { %v2126_v16 = vpop.eup %2125 }
 0x2ec   : > { %v1532_v5 = vadd.f32 %v2622_v51, %v1496_v8  ;;  %v1465_v9 = vmul.f32 %v2126_v16, %v2619_v50  ;;  %v1401_v19 = vadd.f32 1e-12, %v1369_v18 }
 0x2ed   : > { %v1338_v63 = vpop.xlane.xlu1 %1337 }
 0x2ee   : > { %1564 = vst [vmem:[%s2987_s26 + $0xc8] sm:$0xff] %v1532_v5  ;;  %v1497_v35 = vmul.f32 %v1465_v9, %v2952_v22  ;;  %2133 = vrsqrt.f32 %v1401_v19  ;;  %v1370_v43 = vmul.f32 0.0078125, %v1338_v63 }
 0x2ef   : > { %v2128_v20 = vpop.eup %2127 }
 0x2f0   : > { %v1533_v13 = vadd.f32 %v2622_v51, %v1497_v35  ;;  %v1466_v23 = vmul.f32 %v2128_v20, %v2619_v50  ;;  %v1402_v30 = vadd.f32 1e-12, %v1370_v43 }
 0x2f2   : > { %1565 = vst [vmem:[%s2987_s26 + $0xd0] sm:$0xff] %v1533_v13  ;;  %v1498_v36 = vmul.f32 %v1466_v23, %v2957_v26  ;;  %2135 = vrsqrt.f32 %v1402_v30 }
 0x2f3   : > { %v2130_v56 = vpop.eup %2129 }
 0x2f4   : > { %v1534_v33 = vadd.f32 %v2622_v51, %v1498_v36  ;;  %v1467_v6 = vmul.f32 %v2130_v56, %v2619_v50 }
 0x2f6   : > { %1566 = vst [vmem:[%s2987_s26 + $0xd8] sm:$0xff] %v1534_v33  ;;  %v1499_v22 = vmul.f32 %v1467_v6, %v2962_v38 }
 0x2f7   : > { %v2132_v53 = vpop.eup %2131 }
 0x2f8   : > { %v1535_v32 = vadd.f32 %v2622_v51, %v1499_v22  ;;  %v1468_v41 = vmul.f32 %v2132_v53, %v2619_v50 }
 0x2fa   : > { %1567 = vst [vmem:[%s2987_s26 + $0xe0] sm:$0xff] %v1535_v32  ;;  %v1500_v26 = vmul.f32 %v1468_v41, %v2967_v45 }
 0x2fb   : > { %v2134_v10 = vpop.eup %2133 }
 0x2fc   : > { %v1536_v49 = vadd.f32 %v2622_v51, %v1500_v26  ;;  %v1469_v57 = vmul.f32 %v2134_v10, %v2619_v50 }
 0x2fe   : > { %1568 = vst [vmem:[%s2987_s26 + $0xe8] sm:$0xff] %v1536_v49  ;;  %v1501_v38 = vmul.f32 %v1469_v57, %v2972_v61 }
 0x2ff   : > { %v2136_v17 = vpop.eup %2135 }
 0x300   : > { %v1537_v0 = vadd.f32 %v2622_v51, %v1501_v38  ;;  %v1470_v39 = vmul.f32 %v2136_v17, %v2619_v50 }
 0x302   : > { %1569 = vst [vmem:[%s2987_s26 + $0xf0] sm:$0xff] %v1537_v0  ;;  %v1502_v45 = vmul.f32 %v1470_v39, %v2977_v7 }
 0x304   : > { %v1538_v61 = vadd.f32 %v2622_v51, %v1502_v45 }
 0x306   : > { %1570 = vst [vmem:[%s2987_s26 + $0xf8] sm:$0xff] %v1538_v61 }
 0x307   : > { %2232 = shalt.err (!%p2229_p10)
}
 0x308   : > { %s2233_s11 = scalar_lea.hbm %s3116_s7, 4096  ;;  %s2237_s23 = scalar_lea.hbm %s3167_s4, 8192 }
 0x309   : > { %p2234_p1 = scmp.ne.s32.totalorder %s3116_s7, %s2233_s11  ;;  %p2238_p7 = scmp.lt.s32.totalorder %s3116_s7, %s3167_s4 }
 0x30a   : > { %p2239_p8 = scmp.lt.s32.totalorder %s2237_s23, %s2233_s11 }
 0x30b   : > { %p2235_p4 = pnand %p2234_p1, %p3185_p12 }
 0x30c   : > { %p2240_p11 = por %p2239_p8, %p2238_p7 }
 0x30d   : > { %p2236_p3 = pneg %p2235_p4 }
 0x30f   : > { %p2241_p6 = pnand %p2240_p11, %p2236_p3 }
 0x311   : > { %2244 = shalt.err (!%p2241_p6)
}
 0x312   : > { %s2303_s21 = smov 128   ;;  %s2304_s25 = smov 8  }
 0x313   : > { %1979 = dma.vmem_to_hbm [thread:$0]  (%p3185_p12), %s3118_s30, 4096, %s3116_s7, %s1572_s8, %s2303_s21, %s2303_s21, %s2304_s25  }
 0x314 PF: > { %s1600_s26 = sand.u32 1, %s2279_s15   ;;  %p3186_p2 = scmp.ne.s32.totalorder %s3174_s22, 0 }
 0x315   : > { %p3187_p13 = scmp.ge.s32.totalorder %s2291_s18, 2  ;;  %s1601_s29 = scalar_lea.sflag [#allocation4], %s1600_s26 }
 0x317   : > { %p1993_p0 = pnand %p3187_p13, %p3186_p2 }
 0x319   : > { %p1994_p5 = pneg %p1993_p0 }
 0x31b   : > { %2274 = dma.done.wait (%p1994_p5), %s1601_s29, 4096  }
 0x31c   : > { %2276 = vsyncadd (%p1994_p5), %s1601_s29, 4294963200  ;;  %p20_p9 = scmp.ge.s32.totalorder %s2384_s27, 4   ;;  %s3188_s15 = smov %s2283_s16 }
 0x31d   : > { %s3189_s16 = smov %s2287_s17  ;;  %s3190_s17 = smov %s2401_s9 }
 0x31e   : > { %s3191_s18 = smov %s2384_s27  ;;  %22 = sbr.rel (!%p20_p9) target bundleno = 10 (0xa), region = 98 }
 0x323   :  { %1606 = vsyncpa [#allocation3], 1 }
 0x324   :  { %1608 = vsyncpa [#allocation3 + $0x1], 1 }
 0x325   :  { %1609 = vsyncpa [#allocation6], 1 }
 0x326   :  { %1611 = vsyncpa [#allocation6 + $0x1], 1 }
 0x327   :  { %1612 = vsyncpa [#allocation4], 1 }
 0x328   :  { %1614 = vsyncpa [#allocation4 + $0x1], 1 }

</bundles_post_ra>
